<compile_context>
chip_gen: v7x
topology: tpu7x:2x2x1
jax: 0.10.0
libtpu: 0.0.40
codegen_flags: <defaults>
</compile_context>

<pallas_src>
import math
from functools import partial

import jax
import jax.numpy as jnp
from jax import lax
from jax.experimental import pallas as pl
from jax.experimental.pallas import tpu as pltpu


# ----------------------------------------------------------------------------
# generation-aware scoped-VMEM limit (128 MiB on v5e/v6e, 64 MiB on v7x)
# ----------------------------------------------------------------------------
def _default_vmem_limit():
    try:
        info = pltpu.get_tpu_info()
        cap = int(getattr(info, "vmem_capacity_bytes", 0) or 0)
        if cap > 0:
            return min((cap * 3) // 4, 96 * 1024 * 1024)
    except Exception:
        pass
    return 48 * 1024 * 1024  # safe on all generations (v7x physical = 64 MiB)


_VMEM_LIMIT = _default_vmem_limit()


# ----------------------------------------------------------------------------
# tile helper
# ----------------------------------------------------------------------------
def _pick_tile(dim, target, quantum):
    """Largest tile <= target that divides dim and is a multiple of quantum,
    falling back to the full dim (a single full block is always legal).
    TODO(synk): real configs should keep d_model / d_ff / 3*d_model multiples
    of 128 so this fallback never silently pads vregs (demo d_model=32)."""
    if dim <= target:
        return dim
    t = (target // quantum) * quantum
    while t >= quantum:
        if dim % t == 0:
            return t
        t -= quantum
    return dim


# ----------------------------------------------------------------------------
# kernels
# ----------------------------------------------------------------------------
def _norm_linear_kernel(x_ref, alpha_ref, beta_ref, w_ref, b_ref, o_ref,
                        xn_ref, *, eps, activation):
    """Fused Norm (torch Norm: unbiased std, eps added to std) -> matmul.
    The normalized row tile is cached in a bf16 VMEM scratch at j == 0 and
    reused for all remaining N-column tiles of the same row tile."""
    j = pl.program_id(1)

    @pl.when(j == 0)
    def _():
        x = x_ref[...]                                    # (tm, K) f32 full row
        d = x.shape[-1]
        mean = jnp.mean(x, axis=-1, keepdims=True)
        xc = x - mean
        var = jnp.sum(xc * xc, axis=-1, keepdims=True) * (1.0 / (d - 1))
        std = jnp.sqrt(var)
        xn = alpha_ref[...] * xc * (1.0 / (std + eps)) + beta_ref[...]
        xn_ref[...] = xn.astype(xn_ref.dtype)             # bf16 matmul operand

    y = jnp.dot(xn_ref[...], w_ref[...].astype(jnp.bfloat16),
                preferred_element_type=jnp.float32) + b_ref[...]
    if activation == "relu":
        y = jnp.maximum(y, 0.0)
    o_ref[...] = y.astype(o_ref.dtype)


def _matmul_kernel(x_ref, w_ref, b_ref, *rest, activation, has_residual):
    """K-tiled matmul (bf16 operands, f32 VMEM accumulator); bias / relu /
    residual fused into the epilogue."""
    if has_residual:
        r_ref, o_ref, acc_ref = rest
    else:
        o_ref, acc_ref = rest
    k = pl.program_id(2)

    @pl.when(k == 0)
    def _():
        acc_ref[...] = jnp.zeros_like(acc_ref)

    acc_ref[...] += jnp.dot(x_ref[...].astype(jnp.bfloat16),
                            w_ref[...].astype(jnp.bfloat16),
                            preferred_element_type=jnp.float32)

    @pl.when(k == pl.num_programs(2) - 1)
    def _():
        y = acc_ref[...] + b_ref[...]
        if activation == "relu":
            y = jnp.maximum(y, 0.0)
        if has_residual:
            y = y + r_ref[...]
        o_ref[...] = y.astype(o_ref.dtype)


def _fused_mha_core(q_ref, kv_ref, mq_ref, mk_ref, wo_ref, bo_ref, res_ref,
                    o_ref, cat_ref, *, heads, d_k, q_off, k_off, v_off, scale):
    """One batch element of multi-head attention + out-projection + residual.
    q_ref/kv_ref hold lane-dense (S, d_model-multiple) slabs; heads are static
    lane slices. Mask matches the torch reference: outer product of a single
    (S,) mask vector; zero entries filled with -1e9 before softmax."""
    masked_out = (mq_ref[...] * mk_ref[...]) == 0.0        # (Sq, Sk)
    for h in range(heads):                                  # static unroll
        q = q_ref[:, q_off + h * d_k: q_off + (h + 1) * d_k].astype(jnp.bfloat16)
        k = kv_ref[:, k_off + h * d_k: k_off + (h + 1) * d_k].astype(jnp.bfloat16)
        v = kv_ref[:, v_off + h * d_k: v_off + (h + 1) * d_k].astype(jnp.bfloat16)
        # q @ k.T without materializing a transpose
        s = lax.dot_general(q, k, (((1,), (1,)), ((), ())),
                            preferred_element_type=jnp.float32) * scale
        s = jnp.where(masked_out, -1000000000.0, s)
        s = s - jnp.max(s, axis=-1, keepdims=True)
        p = jnp.exp(s)
        p = p / jnp.sum(p, axis=-1, keepdims=True)          # exact softmax
        cat_ref[:, h * d_k:(h + 1) * d_k] = jnp.dot(
            p.astype(jnp.bfloat16), v, preferred_element_type=jnp.float32)
    # fused out-projection + residual, single lane-dense (Sq, d_model) store
    y = jnp.dot(cat_ref[...].astype(jnp.bfloat16), wo_ref[...].astype(jnp.bfloat16),
                preferred_element_type=jnp.float32) + bo_ref[...]
    o_ref[...] = (y + res_ref[...]).astype(o_ref.dtype)
    # TODO(synk): long sequences / many heads -> (B, H) grid + KV-blocked
    # online softmax so the (Sq, Sk) score tile never exceeds VMEM.


def _self_attn_kernel(qkv_ref, mq_ref, mk_ref, wo_ref, bo_ref, res_ref,
                      o_ref, cat_ref, *, heads, d_k, d_model, scale):
    _fused_mha_core(qkv_ref, qkv_ref, mq_ref, mk_ref, wo_ref, bo_ref, res_ref,
                    o_ref, cat_ref, heads=heads, d_k=d_k,
                    q_off=0, k_off=d_model, v_off=2 * d_model, scale=scale)


def _cross_attn_kernel(q_ref, kv_ref, mq_ref, mk_ref, wo_ref, bo_ref, res_ref,
                       o_ref, cat_ref, *, heads, d_k, d_model, scale):
    _fused_mha_core(q_ref, kv_ref, mq_ref, mk_ref, wo_ref, bo_ref, res_ref,
                    o_ref, cat_ref, heads=heads, d_k=d_k,
                    q_off=0, k_off=0, v_off=d_model, scale=scale)


def _norm_kernel(x_ref, alpha_ref, beta_ref, o_ref, *, eps):
    x = x_ref[...]
    d = x.shape[-1]
    mean = jnp.mean(x, axis=-1, keepdims=True)
    xc = x - mean
    var = jnp.sum(xc * xc, axis=-1, keepdims=True) * (1.0 / (d - 1))
    std = jnp.sqrt(var)
    o_ref[...] = (alpha_ref[...] * xc * (1.0 / (std + eps))
                  + beta_ref[...]).astype(o_ref.dtype)


# ----------------------------------------------------------------------------
# pallas_call wrappers
# ----------------------------------------------------------------------------
def norm_linear(x2d, alpha, beta, w, b, activation=None, eps=1e-6,
                out_dtype=jnp.float32, tm_target=512, tn_target=1024):
    M, K = x2d.shape
    N = w.shape[1]
    tm = _pick_tile(M, tm_target, 8)
    tn = _pick_tile(N, tn_target, 128)
    return pl.pallas_call(
        partial(_norm_linear_kernel, eps=eps, activation=activation),
        out_shape=jax.ShapeDtypeStruct((M, N), out_dtype),
        grid=(M // tm, N // tn),
        in_specs=[
            pl.BlockSpec((tm, K), lambda i, j: (i, 0)),   # full K: norm needs row
            pl.BlockSpec((1, K), lambda i, j: (0, 0)),
            pl.BlockSpec((1, K), lambda i, j: (0, 0)),
            pl.BlockSpec((K, tn), lambda i, j: (0, j)),
            pl.BlockSpec((1, tn), lambda i, j: (0, j)),
        ],
        out_specs=pl.BlockSpec((tm, tn), lambda i, j: (i, j)),
        scratch_shapes=[pltpu.VMEM((tm, K), jnp.bfloat16)],   # cached normed rows
        compiler_params=pltpu.CompilerParams(
            # j must be sequential per row tile so the cached norm is valid
            dimension_semantics=("parallel", "arbitrary"),
            vmem_limit_bytes=_VMEM_LIMIT),
    )(x2d, alpha, beta, w, b)


def linear(x2d, w, b, residual=None, activation=None, out_dtype=jnp.float32,
           tm_target=512, tn_target=1024, tk_target=1024):
    M, K = x2d.shape
    N = w.shape[1]
    tm = _pick_tile(M, tm_target, 8)
    tn = _pick_tile(N, tn_target, 128)
    tk = _pick_tile(K, tk_target, 128)
    in_specs = [
        pl.BlockSpec((tm, tk), lambda i, j, k: (i, k)),
        pl.BlockSpec((tk, tn), lambda i, j, k: (k, j)),
        pl.BlockSpec((1, tn), lambda i, j, k: (0, j)),
    ]
    args = [x2d, w, b]
    if residual is not None:
        in_specs.append(pl.BlockSpec((tm, tn), lambda i, j, k: (i, j)))
        args.append(residual)
    return pl.pallas_call(
        partial(_matmul_kernel, activation=activation,
                has_residual=residual is not None),
        out_shape=jax.ShapeDtypeStruct((M, N), out_dtype),
        grid=(M // tm, N // tn, K // tk),
        in_specs=in_specs,
        out_specs=pl.BlockSpec((tm, tn), lambda i, j, k: (i, j)),
        scratch_shapes=[pltpu.VMEM((tm, tn), jnp.float32)],
        compiler_params=pltpu.CompilerParams(
            dimension_semantics=("parallel", "parallel", "arbitrary"),
            vmem_limit_bytes=_VMEM_LIMIT),
    )(*args)


def self_attention_block(qkv, mask_q, mask_k, w_out, b_out, x_res, d_k, heads):
    # qkv: (B, S, 3*d_model) bf16; mask_q: (B, S, 1); mask_k: (B, 1, S)
    # x_res: (B, S, d_model) f32 residual; returns (B, S, d_model) f32.
    B, S, threeD = qkv.shape
    d_model = threeD // 3
    scale = 1.0 / math.sqrt(d_k)
    return pl.pallas_call(
        partial(_self_attn_kernel, heads=heads, d_k=d_k, d_model=d_model,
                scale=scale),
        out_shape=jax.ShapeDtypeStruct((B, S, d_model), jnp.float32),
        grid=(B,),
        in_specs=[pl.BlockSpec((None, S, threeD), lambda b: (b, 0, 0)),
                  pl.BlockSpec((None, S, 1), lambda b: (b, 0, 0)),
                  pl.BlockSpec((None, 1, S), lambda b: (b, 0, 0)),
                  pl.BlockSpec((d_model, d_model), lambda b: (0, 0)),
                  pl.BlockSpec((1, d_model), lambda b: (0, 0)),
                  pl.BlockSpec((None, S, d_model), lambda b: (b, 0, 0))],
        out_specs=pl.BlockSpec((None, S, d_model), lambda b: (b, 0, 0)),
        scratch_shapes=[pltpu.VMEM((S, d_model), jnp.float32)],
        compiler_params=pltpu.CompilerParams(
            dimension_semantics=("parallel",), vmem_limit_bytes=_VMEM_LIMIT),
    )(qkv, mask_q, mask_k, w_out, b_out, x_res)


def cross_attention_block(q, kv, mask_q, mask_k, w_out, b_out, x_res, d_k, heads):
    # q: (B, Sq, d_model) bf16; kv: (B, Sk, 2*d_model) bf16
    # TODO(synk): like the torch reference, the mask is a single (B, S) vector
    # applied to rows and columns, which assumes Sq == Sk when masking.
    B, Sq, d_model = q.shape
    Sk = kv.shape[1]
    scale = 1.0 / math.sqrt(d_k)
    return pl.pallas_call(
        partial(_cross_attn_kernel, heads=heads, d_k=d_k, d_model=d_model,
                scale=scale),
        out_shape=jax.ShapeDtypeStruct((B, Sq, d_model), jnp.float32),
        grid=(B,),
        in_specs=[pl.BlockSpec((None, Sq, d_model), lambda b: (b, 0, 0)),
                  pl.BlockSpec((None, Sk, 2 * d_model), lambda b: (b, 0, 0)),
                  pl.BlockSpec((None, mask_q.shape[1], 1), lambda b: (b, 0, 0)),
                  pl.BlockSpec((None, 1, mask_k.shape[2]), lambda b: (b, 0, 0)),
                  pl.BlockSpec((d_model, d_model), lambda b: (0, 0)),
                  pl.BlockSpec((1, d_model), lambda b: (0, 0)),
                  pl.BlockSpec((None, Sq, d_model), lambda b: (b, 0, 0))],
        out_specs=pl.BlockSpec((None, Sq, d_model), lambda b: (b, 0, 0)),
        scratch_shapes=[pltpu.VMEM((Sq, d_model), jnp.float32)],
        compiler_params=pltpu.CompilerParams(
            dimension_semantics=("parallel",), vmem_limit_bytes=_VMEM_LIMIT),
    )(q, kv, mask_q, mask_k, w_out, b_out, x_res)


def norm(x2d, alpha, beta, eps=1e-6, tm_target=512):
    M, D = x2d.shape
    tm = _pick_tile(M, tm_target, 8)
    return pl.pallas_call(
        partial(_norm_kernel, eps=eps),
        out_shape=jax.ShapeDtypeStruct((M, D), jnp.float32),
        grid=(M // tm,),
        in_specs=[pl.BlockSpec((tm, D), lambda i: (i, 0)),
                  pl.BlockSpec((1, D), lambda i: (0, 0)),
                  pl.BlockSpec((1, D), lambda i: (0, 0))],
        out_specs=pl.BlockSpec((tm, D), lambda i: (i, 0)),
        compiler_params=pltpu.CompilerParams(
            dimension_semantics=("parallel",), vmem_limit_bytes=_VMEM_LIMIT),
    )(x2d, alpha, beta)


# ----------------------------------------------------------------------------
# model glue (only free reshapes + parameter plumbing in plain JAX)
# ----------------------------------------------------------------------------
def decoder_layer(p, x, e_outputs, src_masks, trg_masks, heads, d_model):
    # TODO(synk): dropout_1/2/3 and attention dropout are identity (eval mode).
    B, S, _ = x.shape
    Se = e_outputs.shape[1]
    d_k = d_model // heads
    M = B * S
    src_q, src_k = src_masks
    trg_q, trg_k = trg_masks
    x2d = x.reshape(M, d_model)

    # --- self-attention: norm_1 fused into the concatenated QKV projection;
    #     out-projection + residual fused into the attention kernel ---------
    qkv = norm_linear(x2d, p["norm_1"]["alpha"], p["norm_1"]["bias"],
                      p["attn_1"]["wqkv"], p["attn_1"]["bqkv"],
                      out_dtype=jnp.bfloat16)
    x = self_attention_block(qkv.reshape(B, S, 3 * d_model), trg_q, trg_k,
                             p["attn_1"]["out"]["w"], p["attn_1"]["out"]["b"],
                             x, d_k, heads)

    # --- cross-attention: norm_2 fused into Q; concatenated KV on e_outputs -
    x2d = x.reshape(M, d_model)
    q = norm_linear(x2d, p["norm_2"]["alpha"], p["norm_2"]["bias"],
                    p["attn_2"]["wq"], p["attn_2"]["bq"],
                    out_dtype=jnp.bfloat16)
    kv = linear(e_outputs.reshape(B * Se, d_model),
                p["attn_2"]["wkv"], p["attn_2"]["bkv"],
                out_dtype=jnp.bfloat16)
    x = cross_attention_block(q.reshape(B, S, d_model),
                              kv.reshape(B, Se, 2 * d_model),
                              src_q, src_k,
                              p["attn_2"]["out"]["w"], p["attn_2"]["out"]["b"],
                              x, d_k, heads)

    # --- feed-forward: norm_3 fused into l1 (+ReLU); residual fused into l2 -
    x2d = x.reshape(M, d_model)
    h = norm_linear(x2d, p["norm_3"]["alpha"], p["norm_3"]["bias"],
                    p["ff"]["l1"]["w"], p["ff"]["l1"]["b"],
                    activation="relu", out_dtype=jnp.bfloat16)
    x2d = linear(h, p["ff"]["l2"]["w"], p["ff"]["l2"]["b"], residual=x2d)

    return x2d.reshape(B, S, d_model)


def decoder_forward(params, trg, e_outputs, src_mask, trg_mask, heads, d_model):
    B, S, _ = trg.shape
    src_f = src_mask.astype(jnp.float32)
    trg_f = trg_mask.astype(jnp.float32)
    src_masks = (src_f.reshape(B, -1, 1), src_f.reshape(B, 1, -1))
    trg_masks = (trg_f.reshape(B, -1, 1), trg_f.reshape(B, 1, -1))
    x = trg
    for lp in params["layers"]:
        x = decoder_layer(lp, x, e_outputs, src_masks, trg_masks, heads, d_model)
    out2d = norm(x.reshape(B * S, d_model),
                 params["norm"]["alpha"], params["norm"]["bias"])
    return out2d.reshape(B, S, d_model)


# ----------------------------------------------------------------------------
# deterministic parameter init (mimics nn.Linear uniform init); weights bf16
# ----------------------------------------------------------------------------
def _init_linear(key, d_in, d_out):
    k1, k2 = jax.random.split(key)
    bound = 1.0 / math.sqrt(d_in)
    w = jax.random.uniform(k1, (d_in, d_out), jnp.float32, -bound, bound)
    b = jax.random.uniform(k2, (1, d_out), jnp.float32, -bound, bound)
    return {"w": w.astype(jnp.bfloat16), "b": b}


def _init_norm(d):
    return {"alpha": jnp.ones((1, d), jnp.float32),
            "bias": jnp.zeros((1, d), jnp.float32)}


def _init_mha_self(key, d_model):
    ks = jax.random.split(key, 4)
    q = _init_linear(ks[0], d_model, d_model)
    k = _init_linear(ks[1], d_model, d_model)
    v = _init_linear(ks[2], d_model, d_model)
    return {"wqkv": jnp.concatenate([q["w"], k["w"], v["w"]], axis=1),
            "bqkv": jnp.concatenate([q["b"], k["b"], v["b"]], axis=1),
            "out": _init_linear(ks[3], d_model, d_model)}


def _init_mha_cross(key, d_model):
    ks = jax.random.split(key, 4)
    q = _init_linear(ks[0], d_model, d_model)
    k = _init_linear(ks[1], d_model, d_model)
    v = _init_linear(ks[2], d_model, d_model)
    return {"wq": q["w"], "bq": q["b"],
            "wkv": jnp.concatenate([k["w"], v["w"]], axis=1),
            "bkv": jnp.concatenate([k["b"], v["b"]], axis=1),
            "out": _init_linear(ks[3], d_model, d_model)}


def init_decoder_params(key, d_model, N, d_ff=2048):
    layers = []
    for lk in jax.random.split(key, N):
        k1, k2, k3, k4 = jax.random.split(lk, 4)
        layers.append({
            "norm_1": _init_norm(d_model),
            "norm_2": _init_norm(d_model),
            "norm_3": _init_norm(d_model),
            "attn_1": _init_mha_self(k1, d_model),
            "attn_2": _init_mha_cross(k2, d_model),
            "ff": {"l1": _init_linear(k3, d_model, d_ff),
                   "l2": _init_linear(k4, d_ff, d_model)},
        })
    return {"layers": layers, "norm": _init_norm(d_model)}


# ----------------------------------------------------------------------------
if __name__ == "__main__":
    d_model, N_layers, heads, dropout = 32, 2, 4, 0.1
    B, S = 2, 8
    assert d_model % heads == 0

    key = jax.random.PRNGKey(0)
    kp, kt, ke = jax.random.split(key, 3)

    params = init_decoder_params(kp, d_model, N_layers)
    trg = jax.random.normal(kt, (B, S, d_model), jnp.float32)
    e_outputs = jax.random.normal(ke, (B, S, d_model), jnp.float32)
    src_mask = jnp.ones((B, S), jnp.float32)
    trg_mask = jnp.concatenate(
        [jnp.ones((B, S - 1), jnp.float32), jnp.zeros((B, 1), jnp.float32)],
        axis=1)

    fwd = jax.jit(decoder_forward, static_argnums=(5, 6))
    out = fwd(params, trg, e_outputs, src_mask, trg_mask, heads, d_model)
    out = jax.block_until_ready(out)
    assert out.shape == (B, S, d_model) and out.dtype == jnp.float32
    print("KERNEL_OK")
</pallas_src>

<mosaic_0001>
module attributes {stable_mosaic.version = 11 : i64} {
  func.func @_norm_linear_kernel(%arg0: i32, %arg1: i32, %arg2: memref<16x32xf32, #tpu.memory_space<vmem>>, %arg3: memref<1x32xf32, #tpu.memory_space<vmem>>, %arg4: memref<1x32xf32, #tpu.memory_space<vmem>>, %arg5: memref<32x32xbf16, #tpu.memory_space<vmem>>, %arg6: memref<1x32xf32, #tpu.memory_space<vmem>>, %arg7: memref<16x32xbf16, #tpu.memory_space<vmem>>, %arg8: memref<16x32xbf16, #tpu.memory_space<vmem>>) attributes {dimension_semantics = [#tpu.dimension_semantics<parallel>, #tpu.dimension_semantics<arbitrary>], iteration_bounds = array<i64: 1, 1>, scalar_prefetch = 0 : i64, scratch_operands = 1 : i64, tpu.core_type = #tpu.core_type<tc>, window_params = [{transform_indices = @transform_0, window_bounds = array<i64: 16, 32>}, {pipeline_mode = #tpu.pipeline_mode<synchronous>, transform_indices = @transform_1, window_bounds = array<i64: 1, 32>}, {pipeline_mode = #tpu.pipeline_mode<synchronous>, transform_indices = @transform_2, window_bounds = array<i64: 1, 32>}, {transform_indices = @transform_3, window_bounds = array<i64: 32, 32>}, {transform_indices = @transform_4, window_bounds = array<i64: 1, 32>}, {transform_indices = @transform_5, window_bounds = array<i64: 16, 32>}]} {
    %c0_i32 = arith.constant 0 : i32
    %0 = arith.cmpi eq, %arg1, %c0_i32 : i32
    %1 = arith.extui %0 : i1 to i32
    %c0_i32_0 = arith.constant 0 : i32
    %2 = arith.cmpi ne, %1, %c0_i32_0 : i32
    scf.if %2 {
      %c0_8 = arith.constant 0 : index
      %c0_9 = arith.constant 0 : index
      %11 = vector.load %arg2[%c0_8, %c0_9] : memref<16x32xf32, #tpu.memory_space<vmem>>, vector<16x32xf32>
      %cst_10 = arith.constant dense<0.000000e+00> : vector<16xf32>
      %12 = vector.multi_reduction <add>, %11, %cst_10 [1] : vector<16x32xf32> to vector<16xf32>
      %13 = vector.shape_cast %12 : vector<16xf32> to vector<16x1xf32>
      %cst_11 = arith.constant 3.200000e+01 : f32
      %14 = vector.broadcast %cst_11 : f32 to vector<16x1xf32>
      %15 = arith.divf %13, %14 : vector<16x1xf32>
      %16 = vector.broadcast %15 : vector<16x1xf32> to vector<16x32xf32>
      %17 = arith.subf %11, %16 : vector<16x32xf32>
      %18 = arith.mulf %17, %17 : vector<16x32xf32>
      %cst_12 = arith.constant dense<0.000000e+00> : vector<16xf32>
      %19 = vector.multi_reduction <add>, %18, %cst_12 [1] : vector<16x32xf32> to vector<16xf32>
      %20 = vector.shape_cast %19 : vector<16xf32> to vector<16x1xf32>
      %cst_13 = arith.constant 0.0322580636 : f32
      %21 = vector.broadcast %cst_13 : f32 to vector<16x1xf32>
      %22 = arith.mulf %20, %21 : vector<16x1xf32>
      %23 = math.sqrt %22 : vector<16x1xf32>
      %c0_14 = arith.constant 0 : index
      %c0_15 = arith.constant 0 : index
      %24 = vector.load %arg3[%c0_14, %c0_15] : memref<1x32xf32, #tpu.memory_space<vmem>>, vector<1x32xf32>
      %25 = vector.broadcast %24 : vector<1x32xf32> to vector<16x32xf32>
      %26 = arith.mulf %25, %17 : vector<16x32xf32>
      %cst_16 = arith.constant 9.99999997E-7 : f32
      %27 = vector.broadcast %cst_16 : f32 to vector<16x1xf32>
      %28 = arith.addf %23, %27 : vector<16x1xf32>
      %cst_17 = arith.constant 1.000000e+00 : f32
      %29 = vector.broadcast %cst_17 : f32 to vector<16x1xf32>
      %30 = arith.divf %29, %28 : vector<16x1xf32>
      %31 = vector.broadcast %30 : vector<16x1xf32> to vector<16x32xf32>
      %32 = arith.mulf %26, %31 : vector<16x32xf32>
      %c0_18 = arith.constant 0 : index
      %c0_19 = arith.constant 0 : index
      %33 = vector.load %arg4[%c0_18, %c0_19] : memref<1x32xf32, #tpu.memory_space<vmem>>, vector<1x32xf32>
      %34 = vector.broadcast %33 : vector<1x32xf32> to vector<16x32xf32>
      %35 = arith.addf %32, %34 : vector<16x32xf32>
      %36 = arith.truncf %35 : vector<16x32xf32> to vector<16x32xbf16>
      %c0_20 = arith.constant 0 : index
      %c0_21 = arith.constant 0 : index
      %37 = vector.load %arg8[%c0_20, %c0_21] : memref<16x32xbf16, #tpu.memory_space<vmem>>, vector<16x32xbf16>
      tpu.vector_store %arg8[%c0_20, %c0_21], %36 {strides = array<i32>} : memref<16x32xbf16, #tpu.memory_space<vmem>>, vector<16x32xbf16>,
    } else {
    }
    %c0 = arith.constant 0 : index
    %c0_1 = arith.constant 0 : index
    %3 = vector.load %arg8[%c0, %c0_1] : memref<16x32xbf16, #tpu.memory_space<vmem>>, vector<16x32xbf16>
    %c0_2 = arith.constant 0 : index
    %c0_3 = arith.constant 0 : index
    %4 = vector.load %arg5[%c0_2, %c0_3] : memref<32x32xbf16, #tpu.memory_space<vmem>>, vector<32x32xbf16>
    %cst = arith.constant dense<0.000000e+00> : vector<16x32xf32>
    %5 = tpu.matmul %3, %4, %cst {dimension_numbers = #tpu.dot_dimension_numbers<[1], [0], [0], [1], [0, 0, 1, 1], [], []>} : vector<16x32xbf16>, vector<32x32xbf16>, vector<16x32xf32> -> vector<16x32xf32>
    %c0_4 = arith.constant 0 : index
    %c0_5 = arith.constant 0 : index
    %6 = vector.load %arg6[%c0_4, %c0_5] : memref<1x32xf32, #tpu.memory_space<vmem>>, vector<1x32xf32>
    %7 = vector.broadcast %6 : vector<1x32xf32> to vector<16x32xf32>
    %8 = arith.addf %5, %7 : vector<16x32xf32>
    %9 = arith.truncf %8 : vector<16x32xf32> to vector<16x32xbf16>
    %c0_6 = arith.constant 0 : index
    %c0_7 = arith.constant 0 : index
    %10 = vector.load %arg7[%c0_6, %c0_7] : memref<16x32xbf16, #tpu.memory_space<vmem>>, vector<16x32xbf16>
    tpu.vector_store %arg7[%c0_6, %c0_7], %9 {strides = array<i32>} : memref<16x32xbf16, #tpu.memory_space<vmem>>, vector<16x32xbf16>,
    return
  }
  func.func @transform_0(%arg0: i32, %arg1: i32) -> (i32, i32) {
    %c0_i32 = arith.constant 0 : i32
    %c0_i32_0 = arith.constant 0 : i32
    return %arg0, %c0_i32 : i32, i32
  }
  func.func @transform_1(%arg0: i32, %arg1: i32) -> (i32, i32) {
    %c0_i32 = arith.constant 0 : i32
    %c0_i32_0 = arith.constant 0 : i32
    %c0_i32_1 = arith.constant 0 : i32
    return %c0_i32, %c0_i32_0 : i32, i32
  }
  func.func @transform_2(%arg0: i32, %arg1: i32) -> (i32, i32) {
    %c0_i32 = arith.constant 0 : i32
    %c0_i32_0 = arith.constant 0 : i32
    %c0_i32_1 = arith.constant 0 : i32
    return %c0_i32, %c0_i32_0 : i32, i32
  }
  func.func @transform_3(%arg0: i32, %arg1: i32) -> (i32, i32) {
    %c0_i32 = arith.constant 0 : i32
    %c0_i32_0 = arith.constant 0 : i32
    return %c0_i32, %arg1 : i32, i32
  }
  func.func @transform_4(%arg0: i32, %arg1: i32) -> (i32, i32) {
    %c0_i32 = arith.constant 0 : i32
    %c0_i32_0 = arith.constant 0 : i32
    return %c0_i32, %arg1 : i32, i32
  }
  func.func @transform_5(%arg0: i32, %arg1: i32) -> (i32, i32) {
    %c0_i32 = arith.constant 0 : i32
    return %arg0, %arg1 : i32, i32
  }
}

module attributes {stable_mosaic.version = 11 : i64} {
  func.func @_self_attn_kernel(%arg0: i32, %arg1: memref<1x8x96xbf16, #tpu.memory_space<vmem>>, %arg2: memref<1x8x1xf32, #tpu.memory_space<vmem>>, %arg3: memref<1x1x8xf32, #tpu.memory_space<vmem>>, %arg4: memref<32x32xbf16, #tpu.memory_space<vmem>>, %arg5: memref<1x32xf32, #tpu.memory_space<vmem>>, %arg6: memref<1x8x32xf32, #tpu.memory_space<vmem>>, %arg7: memref<1x8x32xf32, #tpu.memory_space<vmem>>, %arg8: memref<8x32xf32, #tpu.memory_space<vmem>>) attributes {dimension_semantics = [#tpu.dimension_semantics<parallel>], iteration_bounds = array<i64: 2>, scalar_prefetch = 0 : i64, scratch_operands = 1 : i64, tpu.core_type = #tpu.core_type<tc>, window_params = [{transform_indices = @transform_0, window_bounds = array<i64: 1, 8, 96>}, {transform_indices = @transform_1, window_bounds = array<i64: 1, 8, 1>}, {transform_indices = @transform_2, window_bounds = array<i64: 1, 1, 8>}, {pipeline_mode = #tpu.pipeline_mode<synchronous>, transform_indices = @transform_3, window_bounds = array<i64: 32, 32>}, {pipeline_mode = #tpu.pipeline_mode<synchronous>, transform_indices = @transform_4, window_bounds = array<i64: 1, 32>}, {transform_indices = @transform_5, window_bounds = array<i64: 1, 8, 32>}, {transform_indices = @transform_6, window_bounds = array<i64: 1, 8, 32>}]} {
    %c0 = arith.constant 0 : index
    %c0_0 = arith.constant 0 : index
    %c0_1 = arith.constant 0 : index
    %0 = vector.load %arg2[%c0, %c0_0, %c0_1] : memref<1x8x1xf32, #tpu.memory_space<vmem>>, vector<1x8x1xf32>
    %1 = vector.shape_cast %0 : vector<1x8x1xf32> to vector<8x1xf32>
    %c0_2 = arith.constant 0 : index
    %c0_3 = arith.constant 0 : index
    %c0_4 = arith.constant 0 : index
    %2 = vector.load %arg3[%c0_2, %c0_3, %c0_4] : memref<1x1x8xf32, #tpu.memory_space<vmem>>, vector<1x1x8xf32>
    %3 = vector.shape_cast %2 : vector<1x1x8xf32> to vector<1x8xf32>
    %4 = vector.broadcast %1 : vector<8x1xf32> to vector<8x8xf32>
    %5 = vector.broadcast %3 : vector<1x8xf32> to vector<8x8xf32>
    %6 = arith.mulf %4, %5 : vector<8x8xf32>
    %cst = arith.constant 0.000000e+00 : f32
    %7 = vector.broadcast %cst : f32 to vector<8x8xf32>
    %8 = arith.cmpf oeq, %6, %7 : vector<8x8xf32>
    %c0_5 = arith.constant 0 : index
    %c0_6 = arith.constant 0 : index
    %c0_7 = arith.constant 0 : index
    %9 = vector.load %arg1[%c0_5, %c0_6, %c0_7] : memref<1x8x96xbf16, #tpu.memory_space<vmem>>, vector<1x8x8xbf16>
    %10 = vector.shape_cast %9 : vector<1x8x8xbf16> to vector<8x8xbf16>
    %c0_8 = arith.constant 0 : index
    %c0_9 = arith.constant 0 : index
    %c32 = arith.constant 32 : index
    %11 = vector.load %arg1[%c0_8, %c0_9, %c32] : memref<1x8x96xbf16, #tpu.memory_space<vmem>>, vector<1x8x8xbf16>
    %12 = vector.shape_cast %11 : vector<1x8x8xbf16> to vector<8x8xbf16>
    %c0_10 = arith.constant 0 : index
    %c0_11 = arith.constant 0 : index
    %c64 = arith.constant 64 : index
    %13 = vector.load %arg1[%c0_10, %c0_11, %c64] : memref<1x8x96xbf16, #tpu.memory_space<vmem>>, vector<1x8x8xbf16>
    %14 = vector.shape_cast %13 : vector<1x8x8xbf16> to vector<8x8xbf16>
    %cst_12 = arith.constant dense<0.000000e+00> : vector<8x8xf32>
    %15 = tpu.matmul %10, %12, %cst_12 {dimension_numbers = #tpu.dot_dimension_numbers<[1], [1], [0], [0], [0, 0, 1, 0], [], []>} : vector<8x8xbf16>, vector<8x8xbf16>, vector<8x8xf32> -> vector<8x8xf32>
    %cst_13 = arith.constant 0.353553385 : f32
    %16 = vector.broadcast %cst_13 : f32 to vector<8x8xf32>
    %17 = arith.mulf %15, %16 : vector<8x8xf32>
    %cst_14 = arith.constant -1.000000e+09 : f32
    %18 = vector.broadcast %cst_14 : f32 to vector<8x8xf32>
    %19 = arith.select %8, %18, %17 : vector<8x8xi1>, vector<8x8xf32>
    %cst_15 = arith.constant dense<0xFF800000> : vector<8xf32>
    %20 = vector.multi_reduction <maximumf>, %19, %cst_15 [1] : vector<8x8xf32> to vector<8xf32>
    %21 = vector.shape_cast %20 : vector<8xf32> to vector<8x1xf32>
    %22 = vector.broadcast %21 : vector<8x1xf32> to vector<8x8xf32>
    %23 = arith.subf %19, %22 : vector<8x8xf32>
    %24 = math.exp %23 : vector<8x8xf32>
    %cst_16 = arith.constant dense<0.000000e+00> : vector<8xf32>
    %25 = vector.multi_reduction <add>, %24, %cst_16 [1] : vector<8x8xf32> to vector<8xf32>
    %26 = vector.shape_cast %25 : vector<8xf32> to vector<8x1xf32>
    %27 = vector.broadcast %26 : vector<8x1xf32> to vector<8x8xf32>
    %28 = arith.divf %24, %27 : vector<8x8xf32>
    %29 = arith.truncf %28 : vector<8x8xf32> to vector<8x8xbf16>
    %cst_17 = arith.constant dense<0.000000e+00> : vector<8x8xf32>
    %30 = tpu.matmul %29, %14, %cst_17 {dimension_numbers = #tpu.dot_dimension_numbers<[1], [0], [0], [1], [0, 0, 1, 1], [], []>} : vector<8x8xbf16>, vector<8x8xbf16>, vector<8x8xf32> -> vector<8x8xf32>
    %c0_18 = arith.constant 0 : index
    %c0_19 = arith.constant 0 : index
    %31 = vector.load %arg8[%c0_18, %c0_19] : memref<8x32xf32, #tpu.memory_space<vmem>>, vector<8x8xf32>
    tpu.vector_store %arg8[%c0_18, %c0_19], %30 {strides = array<i32>} : memref<8x32xf32, #tpu.memory_space<vmem>>, vector<8x8xf32>,
    %c0_20 = arith.constant 0 : index
    %c0_21 = arith.constant 0 : index
    %c8 = arith.constant 8 : index
    %32 = vector.load %arg1[%c0_20, %c0_21, %c8] : memref<1x8x96xbf16, #tpu.memory_space<vmem>>, vector<1x8x8xbf16>
    %33 = vector.shape_cast %32 : vector<1x8x8xbf16> to vector<8x8xbf16>
    %c0_22 = arith.constant 0 : index
    %c0_23 = arith.constant 0 : index
    %c40 = arith.constant 40 : index
    %34 = vector.load %arg1[%c0_22, %c0_23, %c40] : memref<1x8x96xbf16, #tpu.memory_space<vmem>>, vector<1x8x8xbf16>
    %35 = vector.shape_cast %34 : vector<1x8x8xbf16> to vector<8x8xbf16>
    %c0_24 = arith.constant 0 : index
    %c0_25 = arith.constant 0 : index
    %c72 = arith.constant 72 : index
    %36 = vector.load %arg1[%c0_24, %c0_25, %c72] : memref<1x8x96xbf16, #tpu.memory_space<vmem>>, vector<1x8x8xbf16>
    %37 = vector.shape_cast %36 : vector<1x8x8xbf16> to vector<8x8xbf16>
    %cst_26 = arith.constant dense<0.000000e+00> : vector<8x8xf32>
    %38 = tpu.matmul %33, %35, %cst_26 {dimension_numbers = #tpu.dot_dimension_numbers<[1], [1], [0], [0], [0, 0, 1, 0], [], []>} : vector<8x8xbf16>, vector<8x8xbf16>, vector<8x8xf32> -> vector<8x8xf32>
    %cst_27 = arith.constant 0.353553385 : f32
    %39 = vector.broadcast %cst_27 : f32 to vector<8x8xf32>
    %40 = arith.mulf %38, %39 : vector<8x8xf32>
    %cst_28 = arith.constant -1.000000e+09 : f32
    %41 = vector.broadcast %cst_28 : f32 to vector<8x8xf32>
    %42 = arith.select %8, %41, %40 : vector<8x8xi1>, vector<8x8xf32>
    %cst_29 = arith.constant dense<0xFF800000> : vector<8xf32>
    %43 = vector.multi_reduction <maximumf>, %42, %cst_29 [1] : vector<8x8xf32> to vector<8xf32>
    %44 = vector.shape_cast %43 : vector<8xf32> to vector<8x1xf32>
    %45 = vector.broadcast %44 : vector<8x1xf32> to vector<8x8xf32>
    %46 = arith.subf %42, %45 : vector<8x8xf32>
    %47 = math.exp %46 : vector<8x8xf32>
    %cst_30 = arith.constant dense<0.000000e+00> : vector<8xf32>
    %48 = vector.multi_reduction <add>, %47, %cst_30 [1] : vector<8x8xf32> to vector<8xf32>
    %49 = vector.shape_cast %48 : vector<8xf32> to vector<8x1xf32>
    %50 = vector.broadcast %49 : vector<8x1xf32> to vector<8x8xf32>
    %51 = arith.divf %47, %50 : vector<8x8xf32>
    %52 = arith.truncf %51 : vector<8x8xf32> to vector<8x8xbf16>
    %cst_31 = arith.constant dense<0.000000e+00> : vector<8x8xf32>
    %53 = tpu.matmul %52, %37, %cst_31 {dimension_numbers = #tpu.dot_dimension_numbers<[1], [0], [0], [1], [0, 0, 1, 1], [], []>} : vector<8x8xbf16>, vector<8x8xbf16>, vector<8x8xf32> -> vector<8x8xf32>
    %c0_32 = arith.constant 0 : index
    %c8_33 = arith.constant 8 : index
    %54 = vector.load %arg8[%c0_32, %c8_33] : memref<8x32xf32, #tpu.memory_space<vmem>>, vector<8x8xf32>
    tpu.vector_store %arg8[%c0_32, %c8_33], %53 {strides = array<i32>} : memref<8x32xf32, #tpu.memory_space<vmem>>, vector<8x8xf32>,
    %c0_34 = arith.constant 0 : index
    %c0_35 = arith.constant 0 : index
    %c16 = arith.constant 16 : index
    %55 = vector.load %arg1[%c0_34, %c0_35, %c16] : memref<1x8x96xbf16, #tpu.memory_space<vmem>>, vector<1x8x8xbf16>
    %56 = vector.shape_cast %55 : vector<1x8x8xbf16> to vector<8x8xbf16>
    %c0_36 = arith.constant 0 : index
    %c0_37 = arith.constant 0 : index
    %c48 = arith.constant 48 : index
    %57 = vector.load %arg1[%c0_36, %c0_37, %c48] : memref<1x8x96xbf16, #tpu.memory_space<vmem>>, vector<1x8x8xbf16>
    %58 = vector.shape_cast %57 : vector<1x8x8xbf16> to vector<8x8xbf16>
    %c0_38 = arith.constant 0 : index
    %c0_39 = arith.constant 0 : index
    %c80 = arith.constant 80 : index
    %59 = vector.load %arg1[%c0_38, %c0_39, %c80] : memref<1x8x96xbf16, #tpu.memory_space<vmem>>, vector<1x8x8xbf16>
    %60 = vector.shape_cast %59 : vector<1x8x8xbf16> to vector<8x8xbf16>
    %cst_40 = arith.constant dense<0.000000e+00> : vector<8x8xf32>
    %61 = tpu.matmul %56, %58, %cst_40 {dimension_numbers = #tpu.dot_dimension_numbers<[1], [1], [0], [0], [0, 0, 1, 0], [], []>} : vector<8x8xbf16>, vector<8x8xbf16>, vector<8x8xf32> -> vector<8x8xf32>
    %cst_41 = arith.constant 0.353553385 : f32
    %62 = vector.broadcast %cst_41 : f32 to vector<8x8xf32>
    %63 = arith.mulf %61, %62 : vector<8x8xf32>
    %cst_42 = arith.constant -1.000000e+09 : f32
    %64 = vector.broadcast %cst_42 : f32 to vector<8x8xf32>
    %65 = arith.select %8, %64, %63 : vector<8x8xi1>, vector<8x8xf32>
    %cst_43 = arith.constant dense<0xFF800000> : vector<8xf32>
    %66 = vector.multi_reduction <maximumf>, %65, %cst_43 [1] : vector<8x8xf32> to vector<8xf32>
    %67 = vector.shape_cast %66 : vector<8xf32> to vector<8x1xf32>
    %68 = vector.broadcast %67 : vector<8x1xf32> to vector<8x8xf32>
    %69 = arith.subf %65, %68 : vector<8x8xf32>
    %70 = math.exp %69 : vector<8x8xf32>
    %cst_44 = arith.constant dense<0.000000e+00> : vector<8xf32>
    %71 = vector.multi_reduction <add>, %70, %cst_44 [1] : vector<8x8xf32> to vector<8xf32>
    %72 = vector.shape_cast %71 : vector<8xf32> to vector<8x1xf32>
    %73 = vector.broadcast %72 : vector<8x1xf32> to vector<8x8xf32>
    %74 = arith.divf %70, %73 : vector<8x8xf32>
    %75 = arith.truncf %74 : vector<8x8xf32> to vector<8x8xbf16>
    %cst_45 = arith.constant dense<0.000000e+00> : vector<8x8xf32>
    %76 = tpu.matmul %75, %60, %cst_45 {dimension_numbers = #tpu.dot_dimension_numbers<[1], [0], [0], [1], [0, 0, 1, 1], [], []>} : vector<8x8xbf16>, vector<8x8xbf16>, vector<8x8xf32> -> vector<8x8xf32>
    %c0_46 = arith.constant 0 : index
    %c16_47 = arith.constant 16 : index
    %77 = vector.load %arg8[%c0_46, %c16_47] : memref<8x32xf32, #tpu.memory_space<vmem>>, vector<8x8xf32>
    tpu.vector_store %arg8[%c0_46, %c16_47], %76 {strides = array<i32>} : memref<8x32xf32, #tpu.memory_space<vmem>>, vector<8x8xf32>,
    %c0_48 = arith.constant 0 : index
    %c0_49 = arith.constant 0 : index
    %c24 = arith.constant 24 : index
    %78 = vector.load %arg1[%c0_48, %c0_49, %c24] : memref<1x8x96xbf16, #tpu.memory_space<vmem>>, vector<1x8x8xbf16>
    %79 = vector.shape_cast %78 : vector<1x8x8xbf16> to vector<8x8xbf16>
    %c0_50 = arith.constant 0 : index
    %c0_51 = arith.constant 0 : index
    %c56 = arith.constant 56 : index
    %80 = vector.load %arg1[%c0_50, %c0_51, %c56] : memref<1x8x96xbf16, #tpu.memory_space<vmem>>, vector<1x8x8xbf16>
    %81 = vector.shape_cast %80 : vector<1x8x8xbf16> to vector<8x8xbf16>
    %c0_52 = arith.constant 0 : index
    %c0_53 = arith.constant 0 : index
    %c88 = arith.constant 88 : index
    %82 = vector.load %arg1[%c0_52, %c0_53, %c88] : memref<1x8x96xbf16, #tpu.memory_space<vmem>>, vector<1x8x8xbf16>
    %83 = vector.shape_cast %82 : vector<1x8x8xbf16> to vector<8x8xbf16>
    %cst_54 = arith.constant dense<0.000000e+00> : vector<8x8xf32>
    %84 = tpu.matmul %79, %81, %cst_54 {dimension_numbers = #tpu.dot_dimension_numbers<[1], [1], [0], [0], [0, 0, 1, 0], [], []>} : vector<8x8xbf16>, vector<8x8xbf16>, vector<8x8xf32> -> vector<8x8xf32>
    %cst_55 = arith.constant 0.353553385 : f32
    %85 = vector.broadcast %cst_55 : f32 to vector<8x8xf32>
    %86 = arith.mulf %84, %85 : vector<8x8xf32>
    %cst_56 = arith.constant -1.000000e+09 : f32
    %87 = vector.broadcast %cst_56 : f32 to vector<8x8xf32>
    %88 = arith.select %8, %87, %86 : vector<8x8xi1>, vector<8x8xf32>
    %cst_57 = arith.constant dense<0xFF800000> : vector<8xf32>
    %89 = vector.multi_reduction <maximumf>, %88, %cst_57 [1] : vector<8x8xf32> to vector<8xf32>
    %90 = vector.shape_cast %89 : vector<8xf32> to vector<8x1xf32>
    %91 = vector.broadcast %90 : vector<8x1xf32> to vector<8x8xf32>
    %92 = arith.subf %88, %91 : vector<8x8xf32>
    %93 = math.exp %92 : vector<8x8xf32>
    %cst_58 = arith.constant dense<0.000000e+00> : vector<8xf32>
    %94 = vector.multi_reduction <add>, %93, %cst_58 [1] : vector<8x8xf32> to vector<8xf32>
    %95 = vector.shape_cast %94 : vector<8xf32> to vector<8x1xf32>
    %96 = vector.broadcast %95 : vector<8x1xf32> to vector<8x8xf32>
    %97 = arith.divf %93, %96 : vector<8x8xf32>
    %98 = arith.truncf %97 : vector<8x8xf32> to vector<8x8xbf16>
    %cst_59 = arith.constant dense<0.000000e+00> : vector<8x8xf32>
    %99 = tpu.matmul %98, %83, %cst_59 {dimension_numbers = #tpu.dot_dimension_numbers<[1], [0], [0], [1], [0, 0, 1, 1], [], []>} : vector<8x8xbf16>, vector<8x8xbf16>, vector<8x8xf32> -> vector<8x8xf32>
    %c0_60 = arith.constant 0 : index
    %c24_61 = arith.constant 24 : index
    %100 = vector.load %arg8[%c0_60, %c24_61] : memref<8x32xf32, #tpu.memory_space<vmem>>, vector<8x8xf32>
    tpu.vector_store %arg8[%c0_60, %c24_61], %99 {strides = array<i32>} : memref<8x32xf32, #tpu.memory_space<vmem>>, vector<8x8xf32>,
    %c0_62 = arith.constant 0 : index
    %c0_63 = arith.constant 0 : index
    %101 = vector.load %arg8[%c0_62, %c0_63] : memref<8x32xf32, #tpu.memory_space<vmem>>, vector<8x32xf32>
    %102 = arith.truncf %101 : vector<8x32xf32> to vector<8x32xbf16>
    %c0_64 = arith.constant 0 : index
    %c0_65 = arith.constant 0 : index
    %103 = vector.load %arg4[%c0_64, %c0_65] : memref<32x32xbf16, #tpu.memory_space<vmem>>, vector<32x32xbf16>
    %cst_66 = arith.constant dense<0.000000e+00> : vector<8x32xf32>
    %104 = tpu.matmul %102, %103, %cst_66 {dimension_numbers = #tpu.dot_dimension_numbers<[1], [0], [0], [1], [0, 0, 1, 1], [], []>} : vector<8x32xbf16>, vector<32x32xbf16>, vector<8x32xf32> -> vector<8x32xf32>
    %c0_67 = arith.constant 0 : index
    %c0_68 = arith.constant 0 : index
    %105 = vector.load %arg5[%c0_67, %c0_68] : memref<1x32xf32, #tpu.memory_space<vmem>>, vector<1x32xf32>
    %106 = vector.broadcast %105 : vector<1x32xf32> to vector<8x32xf32>
    %107 = arith.addf %104, %106 : vector<8x32xf32>
    %c0_69 = arith.constant 0 : index
    %c0_70 = arith.constant 0 : index
    %c0_71 = arith.constant 0 : index
    %108 = vector.load %arg6[%c0_69, %c0_70, %c0_71] : memref<1x8x32xf32, #tpu.memory_space<vmem>>, vector<1x8x32xf32>
    %109 = vector.shape_cast %108 : vector<1x8x32xf32> to vector<8x32xf32>
    %110 = arith.addf %107, %109 : vector<8x32xf32>
    %c0_72 = arith.constant 0 : index
    %c0_73 = arith.constant 0 : index
    %c0_74 = arith.constant 0 : index
    %111 = vector.load %arg7[%c0_72, %c0_73, %c0_74] : memref<1x8x32xf32, #tpu.memory_space<vmem>>, vector<1x8x32xf32>
    %112 = vector.shape_cast %111 : vector<1x8x32xf32> to vector<8x32xf32>
    %113 = vector.shape_cast %110 : vector<8x32xf32> to vector<1x8x32xf32>
    tpu.vector_store %arg7[%c0_72, %c0_73, %c0_74], %113 {strides = array<i32>} : memref<1x8x32xf32, #tpu.memory_space<vmem>>, vector<1x8x32xf32>,
    return
  }
  func.func @transform_0(%arg0: i32) -> (i32, i32, i32) {
    %c0_i32 = arith.constant 0 : i32
    %c0_i32_0 = arith.constant 0 : i32
    %c0_i32_1 = arith.constant 0 : i32
    return %arg0, %c0_i32, %c0_i32_0 : i32, i32, i32
  }
  func.func @transform_1(%arg0: i32) -> (i32, i32, i32) {
    %c0_i32 = arith.constant 0 : i32
    %c0_i32_0 = arith.constant 0 : i32
    %c0_i32_1 = arith.constant 0 : i32
    return %arg0, %c0_i32, %c0_i32_0 : i32, i32, i32
  }
  func.func @transform_2(%arg0: i32) -> (i32, i32, i32) {
    %c0_i32 = arith.constant 0 : i32
    %c0_i32_0 = arith.constant 0 : i32
    %c0_i32_1 = arith.constant 0 : i32
    return %arg0, %c0_i32, %c0_i32_0 : i32, i32, i32
  }
  func.func @transform_3(%arg0: i32) -> (i32, i32) {
    %c0_i32 = arith.constant 0 : i32
    %c0_i32_0 = arith.constant 0 : i32
    %c0_i32_1 = arith.constant 0 : i32
    return %c0_i32, %c0_i32_0 : i32, i32
  }
  func.func @transform_4(%arg0: i32) -> (i32, i32) {
    %c0_i32 = arith.constant 0 : i32
    %c0_i32_0 = arith.constant 0 : i32
    %c0_i32_1 = arith.constant 0 : i32
    return %c0_i32, %c0_i32_0 : i32, i32
  }
  func.func @transform_5(%arg0: i32) -> (i32, i32, i32) {
    %c0_i32 = arith.constant 0 : i32
    %c0_i32_0 = arith.constant 0 : i32
    %c0_i32_1 = arith.constant 0 : i32
    return %arg0, %c0_i32, %c0_i32_0 : i32, i32, i32
  }
  func.func @transform_6(%arg0: i32) -> (i32, i32, i32) {
    %c0_i32 = arith.constant 0 : i32
    %c0_i32_0 = arith.constant 0 : i32
    %c0_i32_1 = arith.constant 0 : i32
    return %arg0, %c0_i32, %c0_i32_0 : i32, i32, i32
  }
}

module attributes {stable_mosaic.version = 11 : i64} {
  func.func @_norm_linear_kernel(%arg0: i32, %arg1: i32, %arg2: memref<16x32xf32, #tpu.memory_space<vmem>>, %arg3: memref<1x32xf32, #tpu.memory_space<vmem>>, %arg4: memref<1x32xf32, #tpu.memory_space<vmem>>, %arg5: memref<32x96xbf16, #tpu.memory_space<vmem>>, %arg6: memref<1x96xf32, #tpu.memory_space<vmem>>, %arg7: memref<16x96xbf16, #tpu.memory_space<vmem>>, %arg8: memref<16x32xbf16, #tpu.memory_space<vmem>>) attributes {dimension_semantics = [#tpu.dimension_semantics<parallel>, #tpu.dimension_semantics<arbitrary>], iteration_bounds = array<i64: 1, 1>, scalar_prefetch = 0 : i64, scratch_operands = 1 : i64, tpu.core_type = #tpu.core_type<tc>, window_params = [{transform_indices = @transform_0, window_bounds = array<i64: 16, 32>}, {pipeline_mode = #tpu.pipeline_mode<synchronous>, transform_indices = @transform_1, window_bounds = array<i64: 1, 32>}, {pipeline_mode = #tpu.pipeline_mode<synchronous>, transform_indices = @transform_2, window_bounds = array<i64: 1, 32>}, {transform_indices = @transform_3, window_bounds = array<i64: 32, 96>}, {transform_indices = @transform_4, window_bounds = array<i64: 1, 96>}, {transform_indices = @transform_5, window_bounds = array<i64: 16, 96>}]} {
    %c0_i32 = arith.constant 0 : i32
    %0 = arith.cmpi eq, %arg1, %c0_i32 : i32
    %1 = arith.extui %0 : i1 to i32
    %c0_i32_0 = arith.constant 0 : i32
    %2 = arith.cmpi ne, %1, %c0_i32_0 : i32
    scf.if %2 {
      %c0_8 = arith.constant 0 : index
      %c0_9 = arith.constant 0 : index
      %11 = vector.load %arg2[%c0_8, %c0_9] : memref<16x32xf32, #tpu.memory_space<vmem>>, vector<16x32xf32>
      %cst_10 = arith.constant dense<0.000000e+00> : vector<16xf32>
      %12 = vector.multi_reduction <add>, %11, %cst_10 [1] : vector<16x32xf32> to vector<16xf32>
      %13 = vector.shape_cast %12 : vector<16xf32> to vector<16x1xf32>
      %cst_11 = arith.constant 3.200000e+01 : f32
      %14 = vector.broadcast %cst_11 : f32 to vector<16x1xf32>
      %15 = arith.divf %13, %14 : vector<16x1xf32>
      %16 = vector.broadcast %15 : vector<16x1xf32> to vector<16x32xf32>
      %17 = arith.subf %11, %16 : vector<16x32xf32>
      %18 = arith.mulf %17, %17 : vector<16x32xf32>
      %cst_12 = arith.constant dense<0.000000e+00> : vector<16xf32>
      %19 = vector.multi_reduction <add>, %18, %cst_12 [1] : vector<16x32xf32> to vector<16xf32>
      %20 = vector.shape_cast %19 : vector<16xf32> to vector<16x1xf32>
      %cst_13 = arith.constant 0.0322580636 : f32
      %21 = vector.broadcast %cst_13 : f32 to vector<16x1xf32>
      %22 = arith.mulf %20, %21 : vector<16x1xf32>
      %23 = math.sqrt %22 : vector<16x1xf32>
      %c0_14 = arith.constant 0 : index
      %c0_15 = arith.constant 0 : index
      %24 = vector.load %arg3[%c0_14, %c0_15] : memref<1x32xf32, #tpu.memory_space<vmem>>, vector<1x32xf32>
      %25 = vector.broadcast %24 : vector<1x32xf32> to vector<16x32xf32>
      %26 = arith.mulf %25, %17 : vector<16x32xf32>
      %cst_16 = arith.constant 9.99999997E-7 : f32
      %27 = vector.broadcast %cst_16 : f32 to vector<16x1xf32>
      %28 = arith.addf %23, %27 : vector<16x1xf32>
      %cst_17 = arith.constant 1.000000e+00 : f32
      %29 = vector.broadcast %cst_17 : f32 to vector<16x1xf32>
      %30 = arith.divf %29, %28 : vector<16x1xf32>
      %31 = vector.broadcast %30 : vector<16x1xf32> to vector<16x32xf32>
      %32 = arith.mulf %26, %31 : vector<16x32xf32>
      %c0_18 = arith.constant 0 : index
      %c0_19 = arith.constant 0 : index
      %33 = vector.load %arg4[%c0_18, %c0_19] : memref<1x32xf32, #tpu.memory_space<vmem>>, vector<1x32xf32>
      %34 = vector.broadcast %33 : vector<1x32xf32> to vector<16x32xf32>
      %35 = arith.addf %32, %34 : vector<16x32xf32>
      %36 = arith.truncf %35 : vector<16x32xf32> to vector<16x32xbf16>
      %c0_20 = arith.constant 0 : index
      %c0_21 = arith.constant 0 : index
      %37 = vector.load %arg8[%c0_20, %c0_21] : memref<16x32xbf16, #tpu.memory_space<vmem>>, vector<16x32xbf16>
      tpu.vector_store %arg8[%c0_20, %c0_21], %36 {strides = array<i32>} : memref<16x32xbf16, #tpu.memory_space<vmem>>, vector<16x32xbf16>,
    } else {
    }
    %c0 = arith.constant 0 : index
    %c0_1 = arith.constant 0 : index
    %3 = vector.load %arg8[%c0, %c0_1] : memref<16x32xbf16, #tpu.memory_space<vmem>>, vector<16x32xbf16>
    %c0_2 = arith.constant 0 : index
    %c0_3 = arith.constant 0 : index
    %4 = vector.load %arg5[%c0_2, %c0_3] : memref<32x96xbf16, #tpu.memory_space<vmem>>, vector<32x96xbf16>
    %cst = arith.constant dense<0.000000e+00> : vector<16x96xf32>
    %5 = tpu.matmul %3, %4, %cst {dimension_numbers = #tpu.dot_dimension_numbers<[1], [0], [0], [1], [0, 0, 1, 1], [], []>} : vector<16x32xbf16>, vector<32x96xbf16>, vector<16x96xf32> -> vector<16x96xf32>
    %c0_4 = arith.constant 0 : index
    %c0_5 = arith.constant 0 : index
    %6 = vector.load %arg6[%c0_4, %c0_5] : memref<1x96xf32, #tpu.memory_space<vmem>>, vector<1x96xf32>
    %7 = vector.broadcast %6 : vector<1x96xf32> to vector<16x96xf32>
    %8 = arith.addf %5, %7 : vector<16x96xf32>
    %9 = arith.truncf %8 : vector<16x96xf32> to vector<16x96xbf16>
    %c0_6 = arith.constant 0 : index
    %c0_7 = arith.constant 0 : index
    %10 = vector.load %arg7[%c0_6, %c0_7] : memref<16x96xbf16, #tpu.memory_space<vmem>>, vector<16x96xbf16>
    tpu.vector_store %arg7[%c0_6, %c0_7], %9 {strides = array<i32>} : memref<16x96xbf16, #tpu.memory_space<vmem>>, vector<16x96xbf16>,
    return
  }
  func.func @transform_0(%arg0: i32, %arg1: i32) -> (i32, i32) {
    %c0_i32 = arith.constant 0 : i32
    %c0_i32_0 = arith.constant 0 : i32
    return %arg0, %c0_i32 : i32, i32
  }
  func.func @transform_1(%arg0: i32, %arg1: i32) -> (i32, i32) {
    %c0_i32 = arith.constant 0 : i32
    %c0_i32_0 = arith.constant 0 : i32
    %c0_i32_1 = arith.constant 0 : i32
    return %c0_i32, %c0_i32_0 : i32, i32
  }
  func.func @transform_2(%arg0: i32, %arg1: i32) -> (i32, i32) {
    %c0_i32 = arith.constant 0 : i32
    %c0_i32_0 = arith.constant 0 : i32
    %c0_i32_1 = arith.constant 0 : i32
    return %c0_i32, %c0_i32_0 : i32, i32
  }
  func.func @transform_3(%arg0: i32, %arg1: i32) -> (i32, i32) {
    %c0_i32 = arith.constant 0 : i32
    %c0_i32_0 = arith.constant 0 : i32
    return %c0_i32, %arg1 : i32, i32
  }
  func.func @transform_4(%arg0: i32, %arg1: i32) -> (i32, i32) {
    %c0_i32 = arith.constant 0 : i32
    %c0_i32_0 = arith.constant 0 : i32
    return %c0_i32, %arg1 : i32, i32
  }
  func.func @transform_5(%arg0: i32, %arg1: i32) -> (i32, i32) {
    %c0_i32 = arith.constant 0 : i32
    return %arg0, %arg1 : i32, i32
  }
}

module attributes {stable_mosaic.version = 11 : i64} {
  func.func @_matmul_kernel(%arg0: i32, %arg1: i32, %arg2: i32, %arg3: memref<16x32xf32, #tpu.memory_space<vmem>>, %arg4: memref<32x64xbf16, #tpu.memory_space<vmem>>, %arg5: memref<1x64xf32, #tpu.memory_space<vmem>>, %arg6: memref<16x64xbf16, #tpu.memory_space<vmem>>, %arg7: memref<16x64xf32, #tpu.memory_space<vmem>>) attributes {dimension_semantics = [#tpu.dimension_semantics<parallel>, #tpu.dimension_semantics<parallel>, #tpu.dimension_semantics<arbitrary>], iteration_bounds = array<i64: 1, 1, 1>, scalar_prefetch = 0 : i64, scratch_operands = 1 : i64, tpu.core_type = #tpu.core_type<tc>, window_params = [{transform_indices = @transform_0, window_bounds = array<i64: 16, 32>}, {transform_indices = @transform_1, window_bounds = array<i64: 32, 64>}, {transform_indices = @transform_2, window_bounds = array<i64: 1, 64>}, {transform_indices = @transform_3, window_bounds = array<i64: 16, 64>}]} {
    %c0_i32 = arith.constant 0 : i32
    %0 = arith.cmpi eq, %arg2, %c0_i32 : i32
    %1 = arith.extui %0 : i1 to i32
    %c0_i32_0 = arith.constant 0 : i32
    %2 = arith.cmpi ne, %1, %c0_i32_0 : i32
    scf.if %2 {
      %cst_10 = arith.constant 0.000000e+00 : f32
      %13 = vector.broadcast %cst_10 : f32 to vector<16x64xf32>
      %c0_11 = arith.constant 0 : index
      %c0_12 = arith.constant 0 : index
      %14 = vector.load %arg7[%c0_11, %c0_12] : memref<16x64xf32, #tpu.memory_space<vmem>>, vector<16x64xf32>
      tpu.vector_store %arg7[%c0_11, %c0_12], %13 {strides = array<i32>} : memref<16x64xf32, #tpu.memory_space<vmem>>, vector<16x64xf32>,
    } else {
    }
    %c0 = arith.constant 0 : index
    %c0_1 = arith.constant 0 : index
    %3 = vector.load %arg7[%c0, %c0_1] : memref<16x64xf32, #tpu.memory_space<vmem>>, vector<16x64xf32>
    %c0_2 = arith.constant 0 : index
    %c0_3 = arith.constant 0 : index
    %4 = vector.load %arg3[%c0_2, %c0_3] : memref<16x32xf32, #tpu.memory_space<vmem>>, vector<16x32xf32>
    %5 = arith.truncf %4 : vector<16x32xf32> to vector<16x32xbf16>
    %c0_4 = arith.constant 0 : index
    %c0_5 = arith.constant 0 : index
    %6 = vector.load %arg4[%c0_4, %c0_5] : memref<32x64xbf16, #tpu.memory_space<vmem>>, vector<32x64xbf16>
    %cst = arith.constant dense<0.000000e+00> : vector<16x64xf32>
    %7 = tpu.matmul %5, %6, %cst {dimension_numbers = #tpu.dot_dimension_numbers<[1], [0], [0], [1], [0, 0, 1, 1], [], []>} : vector<16x32xbf16>, vector<32x64xbf16>, vector<16x64xf32> -> vector<16x64xf32>
    %8 = arith.addf %3, %7 : vector<16x64xf32>
    %c0_6 = arith.constant 0 : index
    %c0_7 = arith.constant 0 : index
    %9 = vector.load %arg7[%c0_6, %c0_7] : memref<16x64xf32, #tpu.memory_space<vmem>>, vector<16x64xf32>
    tpu.vector_store %arg7[%c0_6, %c0_7], %8 {strides = array<i32>} : memref<16x64xf32, #tpu.memory_space<vmem>>, vector<16x64xf32>,
    %c0_i32_8 = arith.constant 0 : i32
    %10 = arith.cmpi eq, %arg2, %c0_i32_8 : i32
    %11 = arith.extui %10 : i1 to i32
    %c0_i32_9 = arith.constant 0 : i32
    %12 = arith.cmpi ne, %11, %c0_i32_9 : i32
    scf.if %12 {
      %c0_10 = arith.constant 0 : index
      %c0_11 = arith.constant 0 : index
      %13 = vector.load %arg7[%c0_10, %c0_11] : memref<16x64xf32, #tpu.memory_space<vmem>>, vector<16x64xf32>
      %c0_12 = arith.constant 0 : index
      %c0_13 = arith.constant 0 : index
      %14 = vector.load %arg5[%c0_12, %c0_13] : memref<1x64xf32, #tpu.memory_space<vmem>>, vector<1x64xf32>
      %15 = vector.broadcast %14 : vector<1x64xf32> to vector<16x64xf32>
      %16 = arith.addf %13, %15 : vector<16x64xf32>
      %17 = arith.truncf %16 : vector<16x64xf32> to vector<16x64xbf16>
      %c0_14 = arith.constant 0 : index
      %c0_15 = arith.constant 0 : index
      %18 = vector.load %arg6[%c0_14, %c0_15] : memref<16x64xbf16, #tpu.memory_space<vmem>>, vector<16x64xbf16>
      tpu.vector_store %arg6[%c0_14, %c0_15], %17 {strides = array<i32>} : memref<16x64xbf16, #tpu.memory_space<vmem>>, vector<16x64xbf16>,
    } else {
    }
    return
  }
  func.func @transform_0(%arg0: i32, %arg1: i32, %arg2: i32) -> (i32, i32) {
    %c0_i32 = arith.constant 0 : i32
    return %arg0, %arg2 : i32, i32
  }
  func.func @transform_1(%arg0: i32, %arg1: i32, %arg2: i32) -> (i32, i32) {
    %c0_i32 = arith.constant 0 : i32
    return %arg2, %arg1 : i32, i32
  }
  func.func @transform_2(%arg0: i32, %arg1: i32, %arg2: i32) -> (i32, i32) {
    %c0_i32 = arith.constant 0 : i32
    %c0_i32_0 = arith.constant 0 : i32
    return %c0_i32, %arg1 : i32, i32
  }
  func.func @transform_3(%arg0: i32, %arg1: i32, %arg2: i32) -> (i32, i32) {
    %c0_i32 = arith.constant 0 : i32
    return %arg0, %arg1 : i32, i32
  }
}

module attributes {stable_mosaic.version = 11 : i64} {
  func.func @_norm_linear_kernel(%arg0: i32, %arg1: i32, %arg2: memref<16x32xf32, #tpu.memory_space<vmem>>, %arg3: memref<1x32xf32, #tpu.memory_space<vmem>>, %arg4: memref<1x32xf32, #tpu.memory_space<vmem>>, %arg5: memref<32x1024xbf16, #tpu.memory_space<vmem>>, %arg6: memref<1x1024xf32, #tpu.memory_space<vmem>>, %arg7: memref<16x1024xbf16, #tpu.memory_space<vmem>>, %arg8: memref<16x32xbf16, #tpu.memory_space<vmem>>) attributes {dimension_semantics = [#tpu.dimension_semantics<parallel>, #tpu.dimension_semantics<arbitrary>], iteration_bounds = array<i64: 1, 2>, scalar_prefetch = 0 : i64, scratch_operands = 1 : i64, tpu.core_type = #tpu.core_type<tc>, window_params = [{transform_indices = @transform_0, window_bounds = array<i64: 16, 32>}, {pipeline_mode = #tpu.pipeline_mode<synchronous>, transform_indices = @transform_1, window_bounds = array<i64: 1, 32>}, {pipeline_mode = #tpu.pipeline_mode<synchronous>, transform_indices = @transform_2, window_bounds = array<i64: 1, 32>}, {transform_indices = @transform_3, window_bounds = array<i64: 32, 1024>}, {transform_indices = @transform_4, window_bounds = array<i64: 1, 1024>}, {transform_indices = @transform_5, window_bounds = array<i64: 16, 1024>}]} {
    %c0_i32 = arith.constant 0 : i32
    %0 = arith.cmpi eq, %arg1, %c0_i32 : i32
    %1 = arith.extui %0 : i1 to i32
    %c0_i32_0 = arith.constant 0 : i32
    %2 = arith.cmpi ne, %1, %c0_i32_0 : i32
    scf.if %2 {
      %c0_9 = arith.constant 0 : index
      %c0_10 = arith.constant 0 : index
      %13 = vector.load %arg2[%c0_9, %c0_10] : memref<16x32xf32, #tpu.memory_space<vmem>>, vector<16x32xf32>
      %cst_11 = arith.constant dense<0.000000e+00> : vector<16xf32>
      %14 = vector.multi_reduction <add>, %13, %cst_11 [1] : vector<16x32xf32> to vector<16xf32>
      %15 = vector.shape_cast %14 : vector<16xf32> to vector<16x1xf32>
      %cst_12 = arith.constant 3.200000e+01 : f32
      %16 = vector.broadcast %cst_12 : f32 to vector<16x1xf32>
      %17 = arith.divf %15, %16 : vector<16x1xf32>
      %18 = vector.broadcast %17 : vector<16x1xf32> to vector<16x32xf32>
      %19 = arith.subf %13, %18 : vector<16x32xf32>
      %20 = arith.mulf %19, %19 : vector<16x32xf32>
      %cst_13 = arith.constant dense<0.000000e+00> : vector<16xf32>
      %21 = vector.multi_reduction <add>, %20, %cst_13 [1] : vector<16x32xf32> to vector<16xf32>
      %22 = vector.shape_cast %21 : vector<16xf32> to vector<16x1xf32>
      %cst_14 = arith.constant 0.0322580636 : f32
      %23 = vector.broadcast %cst_14 : f32 to vector<16x1xf32>
      %24 = arith.mulf %22, %23 : vector<16x1xf32>
      %25 = math.sqrt %24 : vector<16x1xf32>
      %c0_15 = arith.constant 0 : index
      %c0_16 = arith.constant 0 : index
      %26 = vector.load %arg3[%c0_15, %c0_16] : memref<1x32xf32, #tpu.memory_space<vmem>>, vector<1x32xf32>
      %27 = vector.broadcast %26 : vector<1x32xf32> to vector<16x32xf32>
      %28 = arith.mulf %27, %19 : vector<16x32xf32>
      %cst_17 = arith.constant 9.99999997E-7 : f32
      %29 = vector.broadcast %cst_17 : f32 to vector<16x1xf32>
      %30 = arith.addf %25, %29 : vector<16x1xf32>
      %cst_18 = arith.constant 1.000000e+00 : f32
      %31 = vector.broadcast %cst_18 : f32 to vector<16x1xf32>
      %32 = arith.divf %31, %30 : vector<16x1xf32>
      %33 = vector.broadcast %32 : vector<16x1xf32> to vector<16x32xf32>
      %34 = arith.mulf %28, %33 : vector<16x32xf32>
      %c0_19 = arith.constant 0 : index
      %c0_20 = arith.constant 0 : index
      %35 = vector.load %arg4[%c0_19, %c0_20] : memref<1x32xf32, #tpu.memory_space<vmem>>, vector<1x32xf32>
      %36 = vector.broadcast %35 : vector<1x32xf32> to vector<16x32xf32>
      %37 = arith.addf %34, %36 : vector<16x32xf32>
      %38 = arith.truncf %37 : vector<16x32xf32> to vector<16x32xbf16>
      %c0_21 = arith.constant 0 : index
      %c0_22 = arith.constant 0 : index
      %39 = vector.load %arg8[%c0_21, %c0_22] : memref<16x32xbf16, #tpu.memory_space<vmem>>, vector<16x32xbf16>
      tpu.vector_store %arg8[%c0_21, %c0_22], %38 {strides = array<i32>} : memref<16x32xbf16, #tpu.memory_space<vmem>>, vector<16x32xbf16>,
    } else {
    }
    %c0 = arith.constant 0 : index
    %c0_1 = arith.constant 0 : index
    %3 = vector.load %arg8[%c0, %c0_1] : memref<16x32xbf16, #tpu.memory_space<vmem>>, vector<16x32xbf16>
    %c0_2 = arith.constant 0 : index
    %c0_3 = arith.constant 0 : index
    %4 = vector.load %arg5[%c0_2, %c0_3] : memref<32x1024xbf16, #tpu.memory_space<vmem>>, vector<32x1024xbf16>
    %cst = arith.constant dense<0.000000e+00> : vector<16x1024xf32>
    %5 = tpu.matmul %3, %4, %cst {dimension_numbers = #tpu.dot_dimension_numbers<[1], [0], [0], [1], [0, 0, 1, 1], [], []>} : vector<16x32xbf16>, vector<32x1024xbf16>, vector<16x1024xf32> -> vector<16x1024xf32>
    %c0_4 = arith.constant 0 : index
    %c0_5 = arith.constant 0 : index
    %6 = vector.load %arg6[%c0_4, %c0_5] : memref<1x1024xf32, #tpu.memory_space<vmem>>, vector<1x1024xf32>
    %7 = vector.broadcast %6 : vector<1x1024xf32> to vector<16x1024xf32>
    %8 = arith.addf %5, %7 : vector<16x1024xf32>
    %cst_6 = arith.constant 0.000000e+00 : f32
    %9 = vector.broadcast %cst_6 : f32 to vector<16x1024xf32>
    %10 = arith.maximumf %8, %9 : vector<16x1024xf32>
    %11 = arith.truncf %10 : vector<16x1024xf32> to vector<16x1024xbf16>
    %c0_7 = arith.constant 0 : index
    %c0_8 = arith.constant 0 : index
    %12 = vector.load %arg7[%c0_7, %c0_8] : memref<16x1024xbf16, #tpu.memory_space<vmem>>, vector<16x1024xbf16>
    tpu.vector_store %arg7[%c0_7, %c0_8], %11 {strides = array<i32>} : memref<16x1024xbf16, #tpu.memory_space<vmem>>, vector<16x1024xbf16>,
    return
  }
  func.func @transform_0(%arg0: i32, %arg1: i32) -> (i32, i32) {
    %c0_i32 = arith.constant 0 : i32
    %c0_i32_0 = arith.constant 0 : i32
    return %arg0, %c0_i32 : i32, i32
  }
  func.func @transform_1(%arg0: i32, %arg1: i32) -> (i32, i32) {
    %c0_i32 = arith.constant 0 : i32
    %c0_i32_0 = arith.constant 0 : i32
    %c0_i32_1 = arith.constant 0 : i32
    return %c0_i32, %c0_i32_0 : i32, i32
  }
  func.func @transform_2(%arg0: i32, %arg1: i32) -> (i32, i32) {
    %c0_i32 = arith.constant 0 : i32
    %c0_i32_0 = arith.constant 0 : i32
    %c0_i32_1 = arith.constant 0 : i32
    return %c0_i32, %c0_i32_0 : i32, i32
  }
  func.func @transform_3(%arg0: i32, %arg1: i32) -> (i32, i32) {
    %c0_i32 = arith.constant 0 : i32
    %c0_i32_0 = arith.constant 0 : i32
    return %c0_i32, %arg1 : i32, i32
  }
  func.func @transform_4(%arg0: i32, %arg1: i32) -> (i32, i32) {
    %c0_i32 = arith.constant 0 : i32
    %c0_i32_0 = arith.constant 0 : i32
    return %c0_i32, %arg1 : i32, i32
  }
  func.func @transform_5(%arg0: i32, %arg1: i32) -> (i32, i32) {
    %c0_i32 = arith.constant 0 : i32
    return %arg0, %arg1 : i32, i32
  }
}

module attributes {stable_mosaic.version = 11 : i64} {
  func.func @_matmul_kernel(%arg0: i32, %arg1: i32, %arg2: i32, %arg3: memref<16x1024xbf16, #tpu.memory_space<vmem>>, %arg4: memref<1024x32xbf16, #tpu.memory_space<vmem>>, %arg5: memref<1x32xf32, #tpu.memory_space<vmem>>, %arg6: memref<16x32xf32, #tpu.memory_space<vmem>>, %arg7: memref<16x32xf32, #tpu.memory_space<vmem>>, %arg8: memref<16x32xf32, #tpu.memory_space<vmem>>) attributes {dimension_semantics = [#tpu.dimension_semantics<parallel>, #tpu.dimension_semantics<parallel>, #tpu.dimension_semantics<arbitrary>], iteration_bounds = array<i64: 1, 1, 2>, scalar_prefetch = 0 : i64, scratch_operands = 1 : i64, tpu.core_type = #tpu.core_type<tc>, window_params = [{transform_indices = @transform_0, window_bounds = array<i64: 16, 1024>}, {transform_indices = @transform_1, window_bounds = array<i64: 1024, 32>}, {transform_indices = @transform_2, window_bounds = array<i64: 1, 32>}, {transform_indices = @transform_3, window_bounds = array<i64: 16, 32>}, {transform_indices = @transform_4, window_bounds = array<i64: 16, 32>}]} {
    %c0_i32 = arith.constant 0 : i32
    %0 = arith.cmpi eq, %arg2, %c0_i32 : i32
    %1 = arith.extui %0 : i1 to i32
    %c0_i32_0 = arith.constant 0 : i32
    %2 = arith.cmpi ne, %1, %c0_i32_0 : i32
    scf.if %2 {
      %cst_9 = arith.constant 0.000000e+00 : f32
      %12 = vector.broadcast %cst_9 : f32 to vector<16x32xf32>
      %c0_10 = arith.constant 0 : index
      %c0_11 = arith.constant 0 : index
      %13 = vector.load %arg8[%c0_10, %c0_11] : memref<16x32xf32, #tpu.memory_space<vmem>>, vector<16x32xf32>
      tpu.vector_store %arg8[%c0_10, %c0_11], %12 {strides = array<i32>} : memref<16x32xf32, #tpu.memory_space<vmem>>, vector<16x32xf32>,
    } else {
    }
    %c0 = arith.constant 0 : index
    %c0_1 = arith.constant 0 : index
    %3 = vector.load %arg8[%c0, %c0_1] : memref<16x32xf32, #tpu.memory_space<vmem>>, vector<16x32xf32>
    %c0_2 = arith.constant 0 : index
    %c0_3 = arith.constant 0 : index
    %4 = vector.load %arg3[%c0_2, %c0_3] : memref<16x1024xbf16, #tpu.memory_space<vmem>>, vector<16x1024xbf16>
    %c0_4 = arith.constant 0 : index
    %c0_5 = arith.constant 0 : index
    %5 = vector.load %arg4[%c0_4, %c0_5] : memref<1024x32xbf16, #tpu.memory_space<vmem>>, vector<1024x32xbf16>
    %cst = arith.constant dense<0.000000e+00> : vector<16x32xf32>
    %6 = tpu.matmul %4, %5, %cst {dimension_numbers = #tpu.dot_dimension_numbers<[1], [0], [0], [1], [0, 0, 1, 1], [], []>} : vector<16x1024xbf16>, vector<1024x32xbf16>, vector<16x32xf32> -> vector<16x32xf32>
    %7 = arith.addf %3, %6 : vector<16x32xf32>
    %c0_6 = arith.constant 0 : index
    %c0_7 = arith.constant 0 : index
    %8 = vector.load %arg8[%c0_6, %c0_7] : memref<16x32xf32, #tpu.memory_space<vmem>>, vector<16x32xf32>
    tpu.vector_store %arg8[%c0_6, %c0_7], %7 {strides = array<i32>} : memref<16x32xf32, #tpu.memory_space<vmem>>, vector<16x32xf32>,
    %c1_i32 = arith.constant 1 : i32
    %9 = arith.cmpi eq, %arg2, %c1_i32 : i32
    %10 = arith.extui %9 : i1 to i32
    %c0_i32_8 = arith.constant 0 : i32
    %11 = arith.cmpi ne, %10, %c0_i32_8 : i32
    scf.if %11 {
      %c0_9 = arith.constant 0 : index
      %c0_10 = arith.constant 0 : index
      %12 = vector.load %arg8[%c0_9, %c0_10] : memref<16x32xf32, #tpu.memory_space<vmem>>, vector<16x32xf32>
      %c0_11 = arith.constant 0 : index
      %c0_12 = arith.constant 0 : index
      %13 = vector.load %arg5[%c0_11, %c0_12] : memref<1x32xf32, #tpu.memory_space<vmem>>, vector<1x32xf32>
      %14 = vector.broadcast %13 : vector<1x32xf32> to vector<16x32xf32>
      %15 = arith.addf %12, %14 : vector<16x32xf32>
      %c0_13 = arith.constant 0 : index
      %c0_14 = arith.constant 0 : index
      %16 = vector.load %arg6[%c0_13, %c0_14] : memref<16x32xf32, #tpu.memory_space<vmem>>, vector<16x32xf32>
      %17 = arith.addf %15, %16 : vector<16x32xf32>
      %c0_15 = arith.constant 0 : index
      %c0_16 = arith.constant 0 : index
      %18 = vector.load %arg7[%c0_15, %c0_16] : memref<16x32xf32, #tpu.memory_space<vmem>>, vector<16x32xf32>
      tpu.vector_store %arg7[%c0_15, %c0_16], %17 {strides = array<i32>} : memref<16x32xf32, #tpu.memory_space<vmem>>, vector<16x32xf32>,
    } else {
    }
    return
  }
  func.func @transform_0(%arg0: i32, %arg1: i32, %arg2: i32) -> (i32, i32) {
    %c0_i32 = arith.constant 0 : i32
    return %arg0, %arg2 : i32, i32
  }
  func.func @transform_1(%arg0: i32, %arg1: i32, %arg2: i32) -> (i32, i32) {
    %c0_i32 = arith.constant 0 : i32
    return %arg2, %arg1 : i32, i32
  }
  func.func @transform_2(%arg0: i32, %arg1: i32, %arg2: i32) -> (i32, i32) {
    %c0_i32 = arith.constant 0 : i32
    %c0_i32_0 = arith.constant 0 : i32
    return %c0_i32, %arg1 : i32, i32
  }
  func.func @transform_3(%arg0: i32, %arg1: i32, %arg2: i32) -> (i32, i32) {
    %c0_i32 = arith.constant 0 : i32
    return %arg0, %arg1 : i32, i32
  }
  func.func @transform_4(%arg0: i32, %arg1: i32, %arg2: i32) -> (i32, i32) {
    %c0_i32 = arith.constant 0 : i32
    return %arg0, %arg1 : i32, i32
  }
}

module attributes {stable_mosaic.version = 11 : i64} {
  func.func @_cross_attn_kernel(%arg0: i32, %arg1: memref<1x8x32xbf16, #tpu.memory_space<vmem>>, %arg2: memref<1x8x64xbf16, #tpu.memory_space<vmem>>, %arg3: memref<1x8x1xf32, #tpu.memory_space<vmem>>, %arg4: memref<1x1x8xf32, #tpu.memory_space<vmem>>, %arg5: memref<32x32xbf16, #tpu.memory_space<vmem>>, %arg6: memref<1x32xf32, #tpu.memory_space<vmem>>, %arg7: memref<1x8x32xf32, #tpu.memory_space<vmem>>, %arg8: memref<1x8x32xf32, #tpu.memory_space<vmem>>, %arg9: memref<8x32xf32, #tpu.memory_space<vmem>>) attributes {dimension_semantics = [#tpu.dimension_semantics<parallel>], iteration_bounds = array<i64: 2>, scalar_prefetch = 0 : i64, scratch_operands = 1 : i64, tpu.core_type = #tpu.core_type<tc>, window_params = [{transform_indices = @transform_0, window_bounds = array<i64: 1, 8, 32>}, {transform_indices = @transform_1, window_bounds = array<i64: 1, 8, 64>}, {transform_indices = @transform_2, window_bounds = array<i64: 1, 8, 1>}, {transform_indices = @transform_3, window_bounds = array<i64: 1, 1, 8>}, {pipeline_mode = #tpu.pipeline_mode<synchronous>, transform_indices = @transform_4, window_bounds = array<i64: 32, 32>}, {pipeline_mode = #tpu.pipeline_mode<synchronous>, transform_indices = @transform_5, window_bounds = array<i64: 1, 32>}, {transform_indices = @transform_6, window_bounds = array<i64: 1, 8, 32>}, {transform_indices = @transform_7, window_bounds = array<i64: 1, 8, 32>}]} {
    %c0 = arith.constant 0 : index
    %c0_0 = arith.constant 0 : index
    %c0_1 = arith.constant 0 : index
    %0 = vector.load %arg3[%c0, %c0_0, %c0_1] : memref<1x8x1xf32, #tpu.memory_space<vmem>>, vector<1x8x1xf32>
    %1 = vector.shape_cast %0 : vector<1x8x1xf32> to vector<8x1xf32>
    %c0_2 = arith.constant 0 : index
    %c0_3 = arith.constant 0 : index
    %c0_4 = arith.constant 0 : index
    %2 = vector.load %arg4[%c0_2, %c0_3, %c0_4] : memref<1x1x8xf32, #tpu.memory_space<vmem>>, vector<1x1x8xf32>
    %3 = vector.shape_cast %2 : vector<1x1x8xf32> to vector<1x8xf32>
    %4 = vector.broadcast %1 : vector<8x1xf32> to vector<8x8xf32>
    %5 = vector.broadcast %3 : vector<1x8xf32> to vector<8x8xf32>
    %6 = arith.mulf %4, %5 : vector<8x8xf32>
    %cst = arith.constant 0.000000e+00 : f32
    %7 = vector.broadcast %cst : f32 to vector<8x8xf32>
    %8 = arith.cmpf oeq, %6, %7 : vector<8x8xf32>
    %c0_5 = arith.constant 0 : index
    %c0_6 = arith.constant 0 : index
    %c0_7 = arith.constant 0 : index
    %9 = vector.load %arg1[%c0_5, %c0_6, %c0_7] : memref<1x8x32xbf16, #tpu.memory_space<vmem>>, vector<1x8x8xbf16>
    %10 = vector.shape_cast %9 : vector<1x8x8xbf16> to vector<8x8xbf16>
    %c0_8 = arith.constant 0 : index
    %c0_9 = arith.constant 0 : index
    %c0_10 = arith.constant 0 : index
    %11 = vector.load %arg2[%c0_8, %c0_9, %c0_10] : memref<1x8x64xbf16, #tpu.memory_space<vmem>>, vector<1x8x8xbf16>
    %12 = vector.shape_cast %11 : vector<1x8x8xbf16> to vector<8x8xbf16>
    %c0_11 = arith.constant 0 : index
    %c0_12 = arith.constant 0 : index
    %c32 = arith.constant 32 : index
    %13 = vector.load %arg2[%c0_11, %c0_12, %c32] : memref<1x8x64xbf16, #tpu.memory_space<vmem>>, vector<1x8x8xbf16>
    %14 = vector.shape_cast %13 : vector<1x8x8xbf16> to vector<8x8xbf16>
    %cst_13 = arith.constant dense<0.000000e+00> : vector<8x8xf32>
    %15 = tpu.matmul %10, %12, %cst_13 {dimension_numbers = #tpu.dot_dimension_numbers<[1], [1], [0], [0], [0, 0, 1, 0], [], []>} : vector<8x8xbf16>, vector<8x8xbf16>, vector<8x8xf32> -> vector<8x8xf32>
    %cst_14 = arith.constant 0.353553385 : f32
    %16 = vector.broadcast %cst_14 : f32 to vector<8x8xf32>
    %17 = arith.mulf %15, %16 : vector<8x8xf32>
    %cst_15 = arith.constant -1.000000e+09 : f32
    %18 = vector.broadcast %cst_15 : f32 to vector<8x8xf32>
    %19 = arith.select %8, %18, %17 : vector<8x8xi1>, vector<8x8xf32>
    %cst_16 = arith.constant dense<0xFF800000> : vector<8xf32>
    %20 = vector.multi_reduction <maximumf>, %19, %cst_16 [1] : vector<8x8xf32> to vector<8xf32>
    %21 = vector.shape_cast %20 : vector<8xf32> to vector<8x1xf32>
    %22 = vector.broadcast %21 : vector<8x1xf32> to vector<8x8xf32>
    %23 = arith.subf %19, %22 : vector<8x8xf32>
    %24 = math.exp %23 : vector<8x8xf32>
    %cst_17 = arith.constant dense<0.000000e+00> : vector<8xf32>
    %25 = vector.multi_reduction <add>, %24, %cst_17 [1] : vector<8x8xf32> to vector<8xf32>
    %26 = vector.shape_cast %25 : vector<8xf32> to vector<8x1xf32>
    %27 = vector.broadcast %26 : vector<8x1xf32> to vector<8x8xf32>
    %28 = arith.divf %24, %27 : vector<8x8xf32>
    %29 = arith.truncf %28 : vector<8x8xf32> to vector<8x8xbf16>
    %cst_18 = arith.constant dense<0.000000e+00> : vector<8x8xf32>
    %30 = tpu.matmul %29, %14, %cst_18 {dimension_numbers = #tpu.dot_dimension_numbers<[1], [0], [0], [1], [0, 0, 1, 1], [], []>} : vector<8x8xbf16>, vector<8x8xbf16>, vector<8x8xf32> -> vector<8x8xf32>
    %c0_19 = arith.constant 0 : index
    %c0_20 = arith.constant 0 : index
    %31 = vector.load %arg9[%c0_19, %c0_20] : memref<8x32xf32, #tpu.memory_space<vmem>>, vector<8x8xf32>
    tpu.vector_store %arg9[%c0_19, %c0_20], %30 {strides = array<i32>} : memref<8x32xf32, #tpu.memory_space<vmem>>, vector<8x8xf32>,
    %c0_21 = arith.constant 0 : index
    %c0_22 = arith.constant 0 : index
    %c8 = arith.constant 8 : index
    %32 = vector.load %arg1[%c0_21, %c0_22, %c8] : memref<1x8x32xbf16, #tpu.memory_space<vmem>>, vector<1x8x8xbf16>
    %33 = vector.shape_cast %32 : vector<1x8x8xbf16> to vector<8x8xbf16>
    %c0_23 = arith.constant 0 : index
    %c0_24 = arith.constant 0 : index
    %c8_25 = arith.constant 8 : index
    %34 = vector.load %arg2[%c0_23, %c0_24, %c8_25] : memref<1x8x64xbf16, #tpu.memory_space<vmem>>, vector<1x8x8xbf16>
    %35 = vector.shape_cast %34 : vector<1x8x8xbf16> to vector<8x8xbf16>
    %c0_26 = arith.constant 0 : index
    %c0_27 = arith.constant 0 : index
    %c40 = arith.constant 40 : index
    %36 = vector.load %arg2[%c0_26, %c0_27, %c40] : memref<1x8x64xbf16, #tpu.memory_space<vmem>>, vector<1x8x8xbf16>
    %37 = vector.shape_cast %36 : vector<1x8x8xbf16> to vector<8x8xbf16>
    %cst_28 = arith.constant dense<0.000000e+00> : vector<8x8xf32>
    %38 = tpu.matmul %33, %35, %cst_28 {dimension_numbers = #tpu.dot_dimension_numbers<[1], [1], [0], [0], [0, 0, 1, 0], [], []>} : vector<8x8xbf16>, vector<8x8xbf16>, vector<8x8xf32> -> vector<8x8xf32>
    %cst_29 = arith.constant 0.353553385 : f32
    %39 = vector.broadcast %cst_29 : f32 to vector<8x8xf32>
    %40 = arith.mulf %38, %39 : vector<8x8xf32>
    %cst_30 = arith.constant -1.000000e+09 : f32
    %41 = vector.broadcast %cst_30 : f32 to vector<8x8xf32>
    %42 = arith.select %8, %41, %40 : vector<8x8xi1>, vector<8x8xf32>
    %cst_31 = arith.constant dense<0xFF800000> : vector<8xf32>
    %43 = vector.multi_reduction <maximumf>, %42, %cst_31 [1] : vector<8x8xf32> to vector<8xf32>
    %44 = vector.shape_cast %43 : vector<8xf32> to vector<8x1xf32>
    %45 = vector.broadcast %44 : vector<8x1xf32> to vector<8x8xf32>
    %46 = arith.subf %42, %45 : vector<8x8xf32>
    %47 = math.exp %46 : vector<8x8xf32>
    %cst_32 = arith.constant dense<0.000000e+00> : vector<8xf32>
    %48 = vector.multi_reduction <add>, %47, %cst_32 [1] : vector<8x8xf32> to vector<8xf32>
    %49 = vector.shape_cast %48 : vector<8xf32> to vector<8x1xf32>
    %50 = vector.broadcast %49 : vector<8x1xf32> to vector<8x8xf32>
    %51 = arith.divf %47, %50 : vector<8x8xf32>
    %52 = arith.truncf %51 : vector<8x8xf32> to vector<8x8xbf16>
    %cst_33 = arith.constant dense<0.000000e+00> : vector<8x8xf32>
    %53 = tpu.matmul %52, %37, %cst_33 {dimension_numbers = #tpu.dot_dimension_numbers<[1], [0], [0], [1], [0, 0, 1, 1], [], []>} : vector<8x8xbf16>, vector<8x8xbf16>, vector<8x8xf32> -> vector<8x8xf32>
    %c0_34 = arith.constant 0 : index
    %c8_35 = arith.constant 8 : index
    %54 = vector.load %arg9[%c0_34, %c8_35] : memref<8x32xf32, #tpu.memory_space<vmem>>, vector<8x8xf32>
    tpu.vector_store %arg9[%c0_34, %c8_35], %53 {strides = array<i32>} : memref<8x32xf32, #tpu.memory_space<vmem>>, vector<8x8xf32>,
    %c0_36 = arith.constant 0 : index
    %c0_37 = arith.constant 0 : index
    %c16 = arith.constant 16 : index
    %55 = vector.load %arg1[%c0_36, %c0_37, %c16] : memref<1x8x32xbf16, #tpu.memory_space<vmem>>, vector<1x8x8xbf16>
    %56 = vector.shape_cast %55 : vector<1x8x8xbf16> to vector<8x8xbf16>
    %c0_38 = arith.constant 0 : index
    %c0_39 = arith.constant 0 : index
    %c16_40 = arith.constant 16 : index
    %57 = vector.load %arg2[%c0_38, %c0_39, %c16_40] : memref<1x8x64xbf16, #tpu.memory_space<vmem>>, vector<1x8x8xbf16>
    %58 = vector.shape_cast %57 : vector<1x8x8xbf16> to vector<8x8xbf16>
    %c0_41 = arith.constant 0 : index
    %c0_42 = arith.constant 0 : index
    %c48 = arith.constant 48 : index
    %59 = vector.load %arg2[%c0_41, %c0_42, %c48] : memref<1x8x64xbf16, #tpu.memory_space<vmem>>, vector<1x8x8xbf16>
    %60 = vector.shape_cast %59 : vector<1x8x8xbf16> to vector<8x8xbf16>
    %cst_43 = arith.constant dense<0.000000e+00> : vector<8x8xf32>
    %61 = tpu.matmul %56, %58, %cst_43 {dimension_numbers = #tpu.dot_dimension_numbers<[1], [1], [0], [0], [0, 0, 1, 0], [], []>} : vector<8x8xbf16>, vector<8x8xbf16>, vector<8x8xf32> -> vector<8x8xf32>
    %cst_44 = arith.constant 0.353553385 : f32
    %62 = vector.broadcast %cst_44 : f32 to vector<8x8xf32>
    %63 = arith.mulf %61, %62 : vector<8x8xf32>
    %cst_45 = arith.constant -1.000000e+09 : f32
    %64 = vector.broadcast %cst_45 : f32 to vector<8x8xf32>
    %65 = arith.select %8, %64, %63 : vector<8x8xi1>, vector<8x8xf32>
    %cst_46 = arith.constant dense<0xFF800000> : vector<8xf32>
    %66 = vector.multi_reduction <maximumf>, %65, %cst_46 [1] : vector<8x8xf32> to vector<8xf32>
    %67 = vector.shape_cast %66 : vector<8xf32> to vector<8x1xf32>
    %68 = vector.broadcast %67 : vector<8x1xf32> to vector<8x8xf32>
    %69 = arith.subf %65, %68 : vector<8x8xf32>
    %70 = math.exp %69 : vector<8x8xf32>
    %cst_47 = arith.constant dense<0.000000e+00> : vector<8xf32>
    %71 = vector.multi_reduction <add>, %70, %cst_47 [1] : vector<8x8xf32> to vector<8xf32>
    %72 = vector.shape_cast %71 : vector<8xf32> to vector<8x1xf32>
    %73 = vector.broadcast %72 : vector<8x1xf32> to vector<8x8xf32>
    %74 = arith.divf %70, %73 : vector<8x8xf32>
    %75 = arith.truncf %74 : vector<8x8xf32> to vector<8x8xbf16>
    %cst_48 = arith.constant dense<0.000000e+00> : vector<8x8xf32>
    %76 = tpu.matmul %75, %60, %cst_48 {dimension_numbers = #tpu.dot_dimension_numbers<[1], [0], [0], [1], [0, 0, 1, 1], [], []>} : vector<8x8xbf16>, vector<8x8xbf16>, vector<8x8xf32> -> vector<8x8xf32>
    %c0_49 = arith.constant 0 : index
    %c16_50 = arith.constant 16 : index
    %77 = vector.load %arg9[%c0_49, %c16_50] : memref<8x32xf32, #tpu.memory_space<vmem>>, vector<8x8xf32>
    tpu.vector_store %arg9[%c0_49, %c16_50], %76 {strides = array<i32>} : memref<8x32xf32, #tpu.memory_space<vmem>>, vector<8x8xf32>,
    %c0_51 = arith.constant 0 : index
    %c0_52 = arith.constant 0 : index
    %c24 = arith.constant 24 : index
    %78 = vector.load %arg1[%c0_51, %c0_52, %c24] : memref<1x8x32xbf16, #tpu.memory_space<vmem>>, vector<1x8x8xbf16>
    %79 = vector.shape_cast %78 : vector<1x8x8xbf16> to vector<8x8xbf16>
    %c0_53 = arith.constant 0 : index
    %c0_54 = arith.constant 0 : index
    %c24_55 = arith.constant 24 : index
    %80 = vector.load %arg2[%c0_53, %c0_54, %c24_55] : memref<1x8x64xbf16, #tpu.memory_space<vmem>>, vector<1x8x8xbf16>
    %81 = vector.shape_cast %80 : vector<1x8x8xbf16> to vector<8x8xbf16>
    %c0_56 = arith.constant 0 : index
    %c0_57 = arith.constant 0 : index
    %c56 = arith.constant 56 : index
    %82 = vector.load %arg2[%c0_56, %c0_57, %c56] : memref<1x8x64xbf16, #tpu.memory_space<vmem>>, vector<1x8x8xbf16>
    %83 = vector.shape_cast %82 : vector<1x8x8xbf16> to vector<8x8xbf16>
    %cst_58 = arith.constant dense<0.000000e+00> : vector<8x8xf32>
    %84 = tpu.matmul %79, %81, %cst_58 {dimension_numbers = #tpu.dot_dimension_numbers<[1], [1], [0], [0], [0, 0, 1, 0], [], []>} : vector<8x8xbf16>, vector<8x8xbf16>, vector<8x8xf32> -> vector<8x8xf32>
    %cst_59 = arith.constant 0.353553385 : f32
    %85 = vector.broadcast %cst_59 : f32 to vector<8x8xf32>
    %86 = arith.mulf %84, %85 : vector<8x8xf32>
    %cst_60 = arith.constant -1.000000e+09 : f32
    %87 = vector.broadcast %cst_60 : f32 to vector<8x8xf32>
    %88 = arith.select %8, %87, %86 : vector<8x8xi1>, vector<8x8xf32>
    %cst_61 = arith.constant dense<0xFF800000> : vector<8xf32>
    %89 = vector.multi_reduction <maximumf>, %88, %cst_61 [1] : vector<8x8xf32> to vector<8xf32>
    %90 = vector.shape_cast %89 : vector<8xf32> to vector<8x1xf32>
    %91 = vector.broadcast %90 : vector<8x1xf32> to vector<8x8xf32>
    %92 = arith.subf %88, %91 : vector<8x8xf32>
    %93 = math.exp %92 : vector<8x8xf32>
    %cst_62 = arith.constant dense<0.000000e+00> : vector<8xf32>
    %94 = vector.multi_reduction <add>, %93, %cst_62 [1] : vector<8x8xf32> to vector<8xf32>
    %95 = vector.shape_cast %94 : vector<8xf32> to vector<8x1xf32>
    %96 = vector.broadcast %95 : vector<8x1xf32> to vector<8x8xf32>
    %97 = arith.divf %93, %96 : vector<8x8xf32>
    %98 = arith.truncf %97 : vector<8x8xf32> to vector<8x8xbf16>
    %cst_63 = arith.constant dense<0.000000e+00> : vector<8x8xf32>
    %99 = tpu.matmul %98, %83, %cst_63 {dimension_numbers = #tpu.dot_dimension_numbers<[1], [0], [0], [1], [0, 0, 1, 1], [], []>} : vector<8x8xbf16>, vector<8x8xbf16>, vector<8x8xf32> -> vector<8x8xf32>
    %c0_64 = arith.constant 0 : index
    %c24_65 = arith.constant 24 : index
    %100 = vector.load %arg9[%c0_64, %c24_65] : memref<8x32xf32, #tpu.memory_space<vmem>>, vector<8x8xf32>
    tpu.vector_store %arg9[%c0_64, %c24_65], %99 {strides = array<i32>} : memref<8x32xf32, #tpu.memory_space<vmem>>, vector<8x8xf32>,
    %c0_66 = arith.constant 0 : index
    %c0_67 = arith.constant 0 : index
    %101 = vector.load %arg9[%c0_66, %c0_67] : memref<8x32xf32, #tpu.memory_space<vmem>>, vector<8x32xf32>
    %102 = arith.truncf %101 : vector<8x32xf32> to vector<8x32xbf16>
    %c0_68 = arith.constant 0 : index
    %c0_69 = arith.constant 0 : index
    %103 = vector.load %arg5[%c0_68, %c0_69] : memref<32x32xbf16, #tpu.memory_space<vmem>>, vector<32x32xbf16>
    %cst_70 = arith.constant dense<0.000000e+00> : vector<8x32xf32>
    %104 = tpu.matmul %102, %103, %cst_70 {dimension_numbers = #tpu.dot_dimension_numbers<[1], [0], [0], [1], [0, 0, 1, 1], [], []>} : vector<8x32xbf16>, vector<32x32xbf16>, vector<8x32xf32> -> vector<8x32xf32>
    %c0_71 = arith.constant 0 : index
    %c0_72 = arith.constant 0 : index
    %105 = vector.load %arg6[%c0_71, %c0_72] : memref<1x32xf32, #tpu.memory_space<vmem>>, vector<1x32xf32>
    %106 = vector.broadcast %105 : vector<1x32xf32> to vector<8x32xf32>
    %107 = arith.addf %104, %106 : vector<8x32xf32>
    %c0_73 = arith.constant 0 : index
    %c0_74 = arith.constant 0 : index
    %c0_75 = arith.constant 0 : index
    %108 = vector.load %arg7[%c0_73, %c0_74, %c0_75] : memref<1x8x32xf32, #tpu.memory_space<vmem>>, vector<1x8x32xf32>
    %109 = vector.shape_cast %108 : vector<1x8x32xf32> to vector<8x32xf32>
    %110 = arith.addf %107, %109 : vector<8x32xf32>
    %c0_76 = arith.constant 0 : index
    %c0_77 = arith.constant 0 : index
    %c0_78 = arith.constant 0 : index
    %111 = vector.load %arg8[%c0_76, %c0_77, %c0_78] : memref<1x8x32xf32, #tpu.memory_space<vmem>>, vector<1x8x32xf32>
    %112 = vector.shape_cast %111 : vector<1x8x32xf32> to vector<8x32xf32>
    %113 = vector.shape_cast %110 : vector<8x32xf32> to vector<1x8x32xf32>
    tpu.vector_store %arg8[%c0_76, %c0_77, %c0_78], %113 {strides = array<i32>} : memref<1x8x32xf32, #tpu.memory_space<vmem>>, vector<1x8x32xf32>,
    return
  }
  func.func @transform_0(%arg0: i32) -> (i32, i32, i32) {
    %c0_i32 = arith.constant 0 : i32
    %c0_i32_0 = arith.constant 0 : i32
    %c0_i32_1 = arith.constant 0 : i32
    return %arg0, %c0_i32, %c0_i32_0 : i32, i32, i32
  }
  func.func @transform_1(%arg0: i32) -> (i32, i32, i32) {
    %c0_i32 = arith.constant 0 : i32
    %c0_i32_0 = arith.constant 0 : i32
    %c0_i32_1 = arith.constant 0 : i32
    return %arg0, %c0_i32, %c0_i32_0 : i32, i32, i32
  }
  func.func @transform_2(%arg0: i32) -> (i32, i32, i32) {
    %c0_i32 = arith.constant 0 : i32
    %c0_i32_0 = arith.constant 0 : i32
    %c0_i32_1 = arith.constant 0 : i32
    return %arg0, %c0_i32, %c0_i32_0 : i32, i32, i32
  }
  func.func @transform_3(%arg0: i32) -> (i32, i32, i32) {
    %c0_i32 = arith.constant 0 : i32
    %c0_i32_0 = arith.constant 0 : i32
    %c0_i32_1 = arith.constant 0 : i32
    return %arg0, %c0_i32, %c0_i32_0 : i32, i32, i32
  }
  func.func @transform_4(%arg0: i32) -> (i32, i32) {
    %c0_i32 = arith.constant 0 : i32
    %c0_i32_0 = arith.constant 0 : i32
    %c0_i32_1 = arith.constant 0 : i32
    return %c0_i32, %c0_i32_0 : i32, i32
  }
  func.func @transform_5(%arg0: i32) -> (i32, i32) {
    %c0_i32 = arith.constant 0 : i32
    %c0_i32_0 = arith.constant 0 : i32
    %c0_i32_1 = arith.constant 0 : i32
    return %c0_i32, %c0_i32_0 : i32, i32
  }
  func.func @transform_6(%arg0: i32) -> (i32, i32, i32) {
    %c0_i32 = arith.constant 0 : i32
    %c0_i32_0 = arith.constant 0 : i32
    %c0_i32_1 = arith.constant 0 : i32
    return %arg0, %c0_i32, %c0_i32_0 : i32, i32, i32
  }
  func.func @transform_7(%arg0: i32) -> (i32, i32, i32) {
    %c0_i32 = arith.constant 0 : i32
    %c0_i32_0 = arith.constant 0 : i32
    %c0_i32_1 = arith.constant 0 : i32
    return %arg0, %c0_i32, %c0_i32_0 : i32, i32, i32
  }
}

module attributes {stable_mosaic.version = 11 : i64} {
  func.func @_matmul_kernel(%arg0: i32, %arg1: i32, %arg2: i32, %arg3: memref<16x32xf32, #tpu.memory_space<vmem>>, %arg4: memref<32x64xbf16, #tpu.memory_space<vmem>>, %arg5: memref<1x64xf32, #tpu.memory_space<vmem>>, %arg6: memref<16x64xbf16, #tpu.memory_space<vmem>>, %arg7: memref<16x64xf32, #tpu.memory_space<vmem>>) attributes {dimension_semantics = [#tpu.dimension_semantics<parallel>, #tpu.dimension_semantics<parallel>, #tpu.dimension_semantics<arbitrary>], iteration_bounds = array<i64: 1, 1, 1>, scalar_prefetch = 0 : i64, scratch_operands = 1 : i64, tpu.core_type = #tpu.core_type<tc>, window_params = [{transform_indices = @transform_0, window_bounds = array<i64: 16, 32>}, {transform_indices = @transform_1, window_bounds = array<i64: 32, 64>}, {transform_indices = @transform_2, window_bounds = array<i64: 1, 64>}, {transform_indices = @transform_3, window_bounds = array<i64: 16, 64>}]} {
    %c0_i32 = arith.constant 0 : i32
    %0 = arith.cmpi eq, %arg2, %c0_i32 : i32
    %1 = arith.extui %0 : i1 to i32
    %c0_i32_0 = arith.constant 0 : i32
    %2 = arith.cmpi ne, %1, %c0_i32_0 : i32
    scf.if %2 {
      %cst_10 = arith.constant 0.000000e+00 : f32
      %13 = vector.broadcast %cst_10 : f32 to vector<16x64xf32>
      %c0_11 = arith.constant 0 : index
      %c0_12 = arith.constant 0 : index
      %14 = vector.load %arg7[%c0_11, %c0_12] : memref<16x64xf32, #tpu.memory_space<vmem>>, vector<16x64xf32>
      tpu.vector_store %arg7[%c0_11, %c0_12], %13 {strides = array<i32>} : memref<16x64xf32, #tpu.memory_space<vmem>>, vector<16x64xf32>,
    } else {
    }
    %c0 = arith.constant 0 : index
    %c0_1 = arith.constant 0 : index
    %3 = vector.load %arg7[%c0, %c0_1] : memref<16x64xf32, #tpu.memory_space<vmem>>, vector<16x64xf32>
    %c0_2 = arith.constant 0 : index
    %c0_3 = arith.constant 0 : index
    %4 = vector.load %arg3[%c0_2, %c0_3] : memref<16x32xf32, #tpu.memory_space<vmem>>, vector<16x32xf32>
    %5 = arith.truncf %4 : vector<16x32xf32> to vector<16x32xbf16>
    %c0_4 = arith.constant 0 : index
    %c0_5 = arith.constant 0 : index
    %6 = vector.load %arg4[%c0_4, %c0_5] : memref<32x64xbf16, #tpu.memory_space<vmem>>, vector<32x64xbf16>
    %cst = arith.constant dense<0.000000e+00> : vector<16x64xf32>
    %7 = tpu.matmul %5, %6, %cst {dimension_numbers = #tpu.dot_dimension_numbers<[1], [0], [0], [1], [0, 0, 1, 1], [], []>} : vector<16x32xbf16>, vector<32x64xbf16>, vector<16x64xf32> -> vector<16x64xf32>
    %8 = arith.addf %3, %7 : vector<16x64xf32>
    %c0_6 = arith.constant 0 : index
    %c0_7 = arith.constant 0 : index
    %9 = vector.load %arg7[%c0_6, %c0_7] : memref<16x64xf32, #tpu.memory_space<vmem>>, vector<16x64xf32>
    tpu.vector_store %arg7[%c0_6, %c0_7], %8 {strides = array<i32>} : memref<16x64xf32, #tpu.memory_space<vmem>>, vector<16x64xf32>,
    %c0_i32_8 = arith.constant 0 : i32
    %10 = arith.cmpi eq, %arg2, %c0_i32_8 : i32
    %11 = arith.extui %10 : i1 to i32
    %c0_i32_9 = arith.constant 0 : i32
    %12 = arith.cmpi ne, %11, %c0_i32_9 : i32
    scf.if %12 {
      %c0_10 = arith.constant 0 : index
      %c0_11 = arith.constant 0 : index
      %13 = vector.load %arg7[%c0_10, %c0_11] : memref<16x64xf32, #tpu.memory_space<vmem>>, vector<16x64xf32>
      %c0_12 = arith.constant 0 : index
      %c0_13 = arith.constant 0 : index
      %14 = vector.load %arg5[%c0_12, %c0_13] : memref<1x64xf32, #tpu.memory_space<vmem>>, vector<1x64xf32>
      %15 = vector.broadcast %14 : vector<1x64xf32> to vector<16x64xf32>
      %16 = arith.addf %13, %15 : vector<16x64xf32>
      %17 = arith.truncf %16 : vector<16x64xf32> to vector<16x64xbf16>
      %c0_14 = arith.constant 0 : index
      %c0_15 = arith.constant 0 : index
      %18 = vector.load %arg6[%c0_14, %c0_15] : memref<16x64xbf16, #tpu.memory_space<vmem>>, vector<16x64xbf16>
      tpu.vector_store %arg6[%c0_14, %c0_15], %17 {strides = array<i32>} : memref<16x64xbf16, #tpu.memory_space<vmem>>, vector<16x64xbf16>,
    } else {
    }
    return
  }
  func.func @transform_0(%arg0: i32, %arg1: i32, %arg2: i32) -> (i32, i32) {
    %c0_i32 = arith.constant 0 : i32
    return %arg0, %arg2 : i32, i32
  }
  func.func @transform_1(%arg0: i32, %arg1: i32, %arg2: i32) -> (i32, i32) {
    %c0_i32 = arith.constant 0 : i32
    return %arg2, %arg1 : i32, i32
  }
  func.func @transform_2(%arg0: i32, %arg1: i32, %arg2: i32) -> (i32, i32) {
    %c0_i32 = arith.constant 0 : i32
    %c0_i32_0 = arith.constant 0 : i32
    return %c0_i32, %arg1 : i32, i32
  }
  func.func @transform_3(%arg0: i32, %arg1: i32, %arg2: i32) -> (i32, i32) {
    %c0_i32 = arith.constant 0 : i32
    return %arg0, %arg1 : i32, i32
  }
}

module attributes {stable_mosaic.version = 11 : i64} {
  func.func @_norm_kernel(%arg0: i32, %arg1: memref<16x32xf32, #tpu.memory_space<vmem>>, %arg2: memref<1x32xf32, #tpu.memory_space<vmem>>, %arg3: memref<1x32xf32, #tpu.memory_space<vmem>>, %arg4: memref<16x32xf32, #tpu.memory_space<vmem>>) attributes {dimension_semantics = [#tpu.dimension_semantics<parallel>], iteration_bounds = array<i64: 1>, scalar_prefetch = 0 : i64, scratch_operands = 0 : i64, tpu.core_type = #tpu.core_type<tc>, window_params = [{transform_indices = @transform_0, window_bounds = array<i64: 16, 32>}, {pipeline_mode = #tpu.pipeline_mode<synchronous>, transform_indices = @transform_1, window_bounds = array<i64: 1, 32>}, {pipeline_mode = #tpu.pipeline_mode<synchronous>, transform_indices = @transform_2, window_bounds = array<i64: 1, 32>}, {transform_indices = @transform_3, window_bounds = array<i64: 16, 32>}]} {
    %c0 = arith.constant 0 : index
    %c0_0 = arith.constant 0 : index
    %0 = vector.load %arg1[%c0, %c0_0] : memref<16x32xf32, #tpu.memory_space<vmem>>, vector<16x32xf32>
    %cst = arith.constant dense<0.000000e+00> : vector<16xf32>
    %1 = vector.multi_reduction <add>, %0, %cst [1] : vector<16x32xf32> to vector<16xf32>
    %2 = vector.shape_cast %1 : vector<16xf32> to vector<16x1xf32>
    %cst_1 = arith.constant 3.200000e+01 : f32
    %3 = vector.broadcast %cst_1 : f32 to vector<16x1xf32>
    %4 = arith.divf %2, %3 : vector<16x1xf32>
    %5 = vector.broadcast %4 : vector<16x1xf32> to vector<16x32xf32>
    %6 = arith.subf %0, %5 : vector<16x32xf32>
    %7 = arith.mulf %6, %6 : vector<16x32xf32>
    %cst_2 = arith.constant dense<0.000000e+00> : vector<16xf32>
    %8 = vector.multi_reduction <add>, %7, %cst_2 [1] : vector<16x32xf32> to vector<16xf32>
    %9 = vector.shape_cast %8 : vector<16xf32> to vector<16x1xf32>
    %cst_3 = arith.constant 0.0322580636 : f32
    %10 = vector.broadcast %cst_3 : f32 to vector<16x1xf32>
    %11 = arith.mulf %9, %10 : vector<16x1xf32>
    %12 = math.sqrt %11 : vector<16x1xf32>
    %c0_4 = arith.constant 0 : index
    %c0_5 = arith.constant 0 : index
    %13 = vector.load %arg2[%c0_4, %c0_5] : memref<1x32xf32, #tpu.memory_space<vmem>>, vector<1x32xf32>
    %14 = vector.broadcast %13 : vector<1x32xf32> to vector<16x32xf32>
    %15 = arith.mulf %14, %6 : vector<16x32xf32>
    %cst_6 = arith.constant 9.99999997E-7 : f32
    %16 = vector.broadcast %cst_6 : f32 to vector<16x1xf32>
    %17 = arith.addf %12, %16 : vector<16x1xf32>
    %cst_7 = arith.constant 1.000000e+00 : f32
    %18 = vector.broadcast %cst_7 : f32 to vector<16x1xf32>
    %19 = arith.divf %18, %17 : vector<16x1xf32>
    %20 = vector.broadcast %19 : vector<16x1xf32> to vector<16x32xf32>
    %21 = arith.mulf %15, %20 : vector<16x32xf32>
    %c0_8 = arith.constant 0 : index
    %c0_9 = arith.constant 0 : index
    %22 = vector.load %arg3[%c0_8, %c0_9] : memref<1x32xf32, #tpu.memory_space<vmem>>, vector<1x32xf32>
    %23 = vector.broadcast %22 : vector<1x32xf32> to vector<16x32xf32>
    %24 = arith.addf %21, %23 : vector<16x32xf32>
    %c0_10 = arith.constant 0 : index
    %c0_11 = arith.constant 0 : index
    %25 = vector.load %arg4[%c0_10, %c0_11] : memref<16x32xf32, #tpu.memory_space<vmem>>, vector<16x32xf32>
    tpu.vector_store %arg4[%c0_10, %c0_11], %24 {strides = array<i32>} : memref<16x32xf32, #tpu.memory_space<vmem>>, vector<16x32xf32>,
    return
  }
  func.func @transform_0(%arg0: i32) -> (i32, i32) {
    %c0_i32 = arith.constant 0 : i32
    %c0_i32_0 = arith.constant 0 : i32
    return %arg0, %c0_i32 : i32, i32
  }
  func.func @transform_1(%arg0: i32) -> (i32, i32) {
    %c0_i32 = arith.constant 0 : i32
    %c0_i32_0 = arith.constant 0 : i32
    %c0_i32_1 = arith.constant 0 : i32
    return %c0_i32, %c0_i32_0 : i32, i32
  }
  func.func @transform_2(%arg0: i32) -> (i32, i32) {
    %c0_i32 = arith.constant 0 : i32
    %c0_i32_0 = arith.constant 0 : i32
    %c0_i32_1 = arith.constant 0 : i32
    return %c0_i32, %c0_i32_0 : i32, i32
  }
  func.func @transform_3(%arg0: i32) -> (i32, i32) {
    %c0_i32 = arith.constant 0 : i32
    %c0_i32_0 = arith.constant 0 : i32
    return %arg0, %c0_i32 : i32, i32
  }
}

</mosaic_0001>

<bundles_post_ra>
// kernel: decoder_forward.15
= control target key start
LH: loop header
LB: loop body
LE: loop exit
PB: predicated region body
PF: predicated region fallthrough
CT: control target
= control target key end

     0   :  { %vm27_vm0 = vcmask 261120   ;;  %v208_v15 = vmov 0.0   ;;  %vm209_vm1 = vmmov 0   ;;  %vm168_vm6 = vcmask 781312   ;;  %s273_s0 = inlined_call_operand.vmem [shape: f32[16,32], index: 0, kind: input, shape index: {}]   ;;  %s274_s3 = inlined_call_operand.vmem [shape: bf16[32,96], index: 3, kind: input, shape index: {}]   ;;  %s275_s1 = inlined_call_operand.vmem [shape: f32[1,32], index: 1, kind: input, shape index: {}]   ;;  %s276_s2 = inlined_call_operand.vmem [shape: f32[1,32], index: 2, kind: input, shape index: {}]   ;;  %s277_s4 = inlined_call_operand.vmem [shape: f32[1,96], index: 4, kind: input, shape index: {}]   ;;  %s278_s5 = inlined_call_operand.vmem [shape: bf16[16,96], index: 5, kind: output, shape index: {}]  }
   0x1   :  { %v25_v0 = vld [vmem:[%s273_s0] sm:$0xff]  ;;  %v26_v1 = vld [vmem:[%s273_s0 + $0x8] sm:$0xff]  ;;  %188 = vmatprep.subr.bf16.mxu0 %v208_v15  ;;  %192 = vmatprep.mubr.msk.bf16.mxu0 %vm209_vm1, %v208_v15 }
   0x2   :  { %v28_v2 = vsel %vm27_vm0, %v25_v0, 0.0  ;;  %v31_v3 = vsel %vm27_vm0, %v26_v1, 0.0  ;;  %v198_v14 = vld [vmem:[%s274_s3] sm:$0xff]   ;;  %v199_v16 = vld [vmem:[%s274_s3 + $0x8] sm:$0xff]  }
   0x3   :  { %29 = vadd.xlane.f32.xlu0 %v28_v2  ;;  %189 = vmatpush3.bf16.msra.mxu0 %v198_v14  ;;  %v175_v33 = vld [vmem:[%s275_s1] ss:$0 sm:$0xff] }
   0x4   :  { %190 = vmatprep.subr.bf16.mxu0 %v208_v15  ;;  %v176_v39 = vld [vmem:[%s276_s2] ss:$0 sm:$0xff] }
   0x5   :  { %v177_v45 = vld [vmem:[%s277_s4] ss:$0 sm:$0xff] }
   0x7   :  { %32 = vadd.xlane.f32.xlu0 %v31_v3  ;;  %191 = vmatpush3.bf16.msra.mxu0 %v199_v16 }
  0x90   :  { %v30_v4 = vpop.xlane.xlu0 %29 }
  0x91   :  { %v35_v5 = vmul.f32 0.03125, %v30_v4 }
  0x93   :  { %v37_v6 = vsub.f32 %v25_v0, %v35_v5 }
  0x94   :  { %v33_v7 = vpop.xlane.xlu0 %32 }
  0x95   :  { %v36_v8 = vmul.f32 0.03125, %v33_v7  ;;  %v39_v9 = vmul.f32 %v37_v6, %v37_v6  ;;  %v70_v35 = vmul.f32 %v175_v33, %v37_v6 }
  0x97   :  { %v38_v10 = vsub.f32 %v26_v1, %v36_v8  ;;  %v41_v11 = vsel %vm27_vm0, %v39_v9, 0.0 }
  0x98   :  { %42 = vadd.xlane.f32.xlu1 %v41_v11 }
  0x99   :  { %v40_v12 = vmul.f32 %v38_v10, %v38_v10  ;;  %v71_v36 = vmul.f32 %v175_v33, %v38_v10 }
  0x9b   :  { %v44_v13 = vsel %vm27_vm0, %v40_v12, 0.0 }
  0x9c   :  { %45 = vadd.xlane.f32.xlu1 %v44_v13 }
 0x125   :  { %v43_v17 = vpop.xlane.xlu1 %42 }
 0x126   :  { %v47_v18 = vmul.f32 0.032258064, %v43_v17 }
 0x128   :  { %200 = vrsqrt.f32 %v47_v18  ;;  %vm51_vm2 = vcmp.eq.f32.partialorder %v47_v18, inf  ;;  %v54_v23 = vand.u32 2147483648, %v47_v18  ;;  %vm53_vm3 = vcmp.eq.f32.partialorder %v47_v18, 0.0 }
 0x129   :  { %v46_v19 = vpop.xlane.xlu1 %45 }
 0x12a   :  { %v48_v20 = vmul.f32 0.032258064, %v46_v19 }
 0x12c   :  { %202 = vrsqrt.f32 %v48_v20  ;;  %vm58_vm4 = vcmp.eq.f32.partialorder %v48_v20, inf  ;;  %v61_v29 = vand.u32 2147483648, %v48_v20  ;;  %vm60_vm5 = vcmp.eq.f32.partialorder %v48_v20, 0.0 }
 0x132   :  { %v201_v21 = vpop.eup %200 }
 0x133   :  { %v50_v22 = vmul.f32 %v201_v21, %v47_v18 }
 0x135   :  { %v52_v24 = vsel %vm51_vm2, %v47_v18, %v50_v22 }
 0x136   :  { %v203_v25 = vpop.eup %202  ;;  %v55_v26 = vsel %vm53_vm3, %v54_v23, %v52_v24 }
 0x137   :  { %v72_v27 = vadd.f32 1e-06, %v55_v26  ;;  %v57_v28 = vmul.f32 %v203_v25, %v48_v20 }
 0x139   :  { %204 = vrcp.f32 %v72_v27  ;;  %v59_v30 = vsel %vm58_vm4, %v48_v20, %v57_v28 }
 0x13a   :  { %v62_v31 = vsel %vm60_vm5, %v61_v29, %v59_v30 }
 0x13b   :  { %v73_v32 = vadd.f32 1e-06, %v62_v31 }
 0x13d   :  { %206 = vrcp.f32 %v73_v32 }
 0x143   :  { %v205_v34 = vpop.eup %204 }
 0x144   :  { %v78_v37 = vmul.f32 %v205_v34, %v70_v35 }
 0x146   :  { %v87_v41 = vadd.f32 %v176_v39, %v78_v37 }
 0x147   :  { %v207_v38 = vpop.eup %206 }
 0x148   :  { %v79_v40 = vmul.f32 %v207_v38, %v71_v36 }
 0x14a   :  { %v88_v42 = vadd.f32 %v176_v39, %v79_v40 }
 0x14c   :  { %v89_v43 = vpack.c.bf16 %v88_v42, %v87_v41 }
 0x14e   :  { %90 = vst.msk [vmem:[#allocation2] sm:$0xff] %vm27_vm0, %v89_v43 }
 0x155   :  { %v91_v44 = vld [vmem:[#allocation2] sm:$0xff] }
 0x156   :  { %193 = vmatmul.mubr.msk.bf16.vlgmr.msra.gmra.mrb[0].mxu0 %vm27_vm0, %v91_v44 }
 0x229   :  { %v153_v46 = vpop.f32.mrb[0].mxu0 }
 0x22a   :  { %v154_v47 = vadd.f32 %v177_v45, %v153_v46  ;;  %v194_v48 = vpop.f32.mrb[1].mxu0 }
 0x22b   :  { %v156_v49 = vpop.f32.mrb[2].mxu0 }
 0x22c   :  { %v183_v50 = vpack.c.bf16 %v154_v47, %v154_v47  ;;  %v157_v51 = vadd.f32 %v177_v45, %v156_v49  ;;  %v195_v52 = vpop.f32.mrb[3].mxu0 }
 0x22e   :  { %169 = vst.msk [vmem:[%s278_s5] sm:$0xf] %vm168_vm6, %v183_v50  ;;  %v184_v53 = vpack.c.bf16 %v157_v51, %v157_v51 }
 0x230   :  { %170 = vst.msk [vmem:[%s278_s5 + $0x4] sm:$0xf] %vm168_vm6, %v184_v53 }

// kernel: decoder_forward.17
= control target key start
LH: loop header
LB: loop body
LE: loop exit
PB: predicated region body
PF: predicated region fallthrough
CT: control target
= control target key end

     0   :  { %vm27_vm0 = vcmask 261120   ;;  %v208_v15 = vmov 0.0   ;;  %vm209_vm1 = vmmov 0   ;;  %vm168_vm6 = vcmask 257024   ;;  %s273_s0 = inlined_call_operand.vmem [shape: f32[16,32], index: 0, kind: input, shape index: {}]   ;;  %s274_s3 = inlined_call_operand.vmem [shape: bf16[32,32], index: 3, kind: input, shape index: {}]   ;;  %s275_s1 = inlined_call_operand.vmem [shape: f32[1,32], index: 1, kind: input, shape index: {}]   ;;  %s276_s2 = inlined_call_operand.vmem [shape: f32[1,32], index: 2, kind: input, shape index: {}]   ;;  %s277_s4 = inlined_call_operand.vmem [shape: f32[1,32], index: 4, kind: input, shape index: {}]   ;;  %s278_s5 = inlined_call_operand.vmem [shape: bf16[16,32], index: 5, kind: output, shape index: {}]  }
   0x1   :  { %v25_v0 = vld [vmem:[%s273_s0] sm:$0xff]  ;;  %v26_v1 = vld [vmem:[%s273_s0 + $0x8] sm:$0xff]  ;;  %188 = vmatprep.subr.bf16.mxu0 %v208_v15  ;;  %192 = vmatprep.mubr.msk.bf16.mxu0 %vm209_vm1, %v208_v15 }
   0x2   :  { %v28_v2 = vsel %vm27_vm0, %v25_v0, 0.0  ;;  %v31_v3 = vsel %vm27_vm0, %v26_v1, 0.0  ;;  %v198_v14 = vld [vmem:[%s274_s3] sm:$0xff]   ;;  %v199_v16 = vld [vmem:[%s274_s3 + $0x8] sm:$0xff]  }
   0x3   :  { %29 = vadd.xlane.f32.xlu0 %v28_v2  ;;  %189 = vmatpush3.bf16.msra.mxu0 %v198_v14  ;;  %v175_v33 = vld [vmem:[%s275_s1] ss:$0 sm:$0xff] }
   0x4   :  { %190 = vmatprep.subr.bf16.mxu0 %v208_v15  ;;  %v176_v39 = vld [vmem:[%s276_s2] ss:$0 sm:$0xff] }
   0x5   :  { %v177_v45 = vld [vmem:[%s277_s4] ss:$0 sm:$0xff] }
   0x7   :  { %32 = vadd.xlane.f32.xlu0 %v31_v3  ;;  %191 = vmatpush3.bf16.msra.mxu0 %v199_v16 }
  0x90   :  { %v30_v4 = vpop.xlane.xlu0 %29 }
  0x91   :  { %v35_v5 = vmul.f32 0.03125, %v30_v4 }
  0x93   :  { %v37_v6 = vsub.f32 %v25_v0, %v35_v5 }
  0x94   :  { %v33_v7 = vpop.xlane.xlu0 %32 }
  0x95   :  { %v36_v8 = vmul.f32 0.03125, %v33_v7  ;;  %v39_v9 = vmul.f32 %v37_v6, %v37_v6  ;;  %v70_v35 = vmul.f32 %v175_v33, %v37_v6 }
  0x97   :  { %v38_v10 = vsub.f32 %v26_v1, %v36_v8  ;;  %v41_v11 = vsel %vm27_vm0, %v39_v9, 0.0 }
  0x98   :  { %42 = vadd.xlane.f32.xlu1 %v41_v11 }
  0x99   :  { %v40_v12 = vmul.f32 %v38_v10, %v38_v10  ;;  %v71_v36 = vmul.f32 %v175_v33, %v38_v10 }
  0x9b   :  { %v44_v13 = vsel %vm27_vm0, %v40_v12, 0.0 }
  0x9c   :  { %45 = vadd.xlane.f32.xlu1 %v44_v13 }
 0x125   :  { %v43_v17 = vpop.xlane.xlu1 %42 }
 0x126   :  { %v47_v18 = vmul.f32 0.032258064, %v43_v17 }
 0x128   :  { %200 = vrsqrt.f32 %v47_v18  ;;  %vm51_vm2 = vcmp.eq.f32.partialorder %v47_v18, inf  ;;  %v54_v23 = vand.u32 2147483648, %v47_v18  ;;  %vm53_vm3 = vcmp.eq.f32.partialorder %v47_v18, 0.0 }
 0x129   :  { %v46_v19 = vpop.xlane.xlu1 %45 }
 0x12a   :  { %v48_v20 = vmul.f32 0.032258064, %v46_v19 }
 0x12c   :  { %202 = vrsqrt.f32 %v48_v20  ;;  %vm58_vm4 = vcmp.eq.f32.partialorder %v48_v20, inf  ;;  %v61_v29 = vand.u32 2147483648, %v48_v20  ;;  %vm60_vm5 = vcmp.eq.f32.partialorder %v48_v20, 0.0 }
 0x132   :  { %v201_v21 = vpop.eup %200 }
 0x133   :  { %v50_v22 = vmul.f32 %v201_v21, %v47_v18 }
 0x135   :  { %v52_v24 = vsel %vm51_vm2, %v47_v18, %v50_v22 }
 0x136   :  { %v203_v25 = vpop.eup %202  ;;  %v55_v26 = vsel %vm53_vm3, %v54_v23, %v52_v24 }
 0x137   :  { %v72_v27 = vadd.f32 1e-06, %v55_v26  ;;  %v57_v28 = vmul.f32 %v203_v25, %v48_v20 }
 0x139   :  { %204 = vrcp.f32 %v72_v27  ;;  %v59_v30 = vsel %vm58_vm4, %v48_v20, %v57_v28 }
 0x13a   :  { %v62_v31 = vsel %vm60_vm5, %v61_v29, %v59_v30 }
 0x13b   :  { %v73_v32 = vadd.f32 1e-06, %v62_v31 }
 0x13d   :  { %206 = vrcp.f32 %v73_v32 }
 0x143   :  { %v205_v34 = vpop.eup %204 }
 0x144   :  { %v78_v37 = vmul.f32 %v205_v34, %v70_v35 }
 0x146   :  { %v87_v41 = vadd.f32 %v176_v39, %v78_v37 }
 0x147   :  { %v207_v38 = vpop.eup %206 }
 0x148   :  { %v79_v40 = vmul.f32 %v207_v38, %v71_v36 }
 0x14a   :  { %v88_v42 = vadd.f32 %v176_v39, %v79_v40 }
 0x14c   :  { %v89_v43 = vpack.c.bf16 %v88_v42, %v87_v41 }
 0x14e   :  { %90 = vst.msk [vmem:[#allocation2] sm:$0xff] %vm27_vm0, %v89_v43 }
 0x155   :  { %v91_v44 = vld [vmem:[#allocation2] sm:$0xff] }
 0x156   :  { %193 = vmatmul.mubr.msk.bf16.vlgmr.msra.gmra.mrb[0].mxu0 %vm27_vm0, %v91_v44 }
 0x229   :  { %v153_v46 = vpop.f32.mrb[0].mxu0 }
 0x22a   :  { %v154_v47 = vadd.f32 %v177_v45, %v153_v46  ;;  %v194_v48 = vpop.f32.mrb[1].mxu0 }
 0x22b   :  { %v156_v49 = vpop.f32.mrb[2].mxu0 }
 0x22c   :  { %v183_v50 = vpack.c.bf16 %v154_v47, %v154_v47  ;;  %v157_v51 = vadd.f32 %v177_v45, %v156_v49  ;;  %v195_v52 = vpop.f32.mrb[3].mxu0 }
 0x22e   :  { %169 = vst.msk [vmem:[%s278_s5] sm:$0xf] %vm168_vm6, %v183_v50  ;;  %v184_v53 = vpack.c.bf16 %v157_v51, %v157_v51 }
 0x230   :  { %170 = vst.msk [vmem:[%s278_s5 + $0x4] sm:$0xf] %vm168_vm6, %v184_v53 }

// kernel: decoder_forward.16
= control target key start
LH: loop header
LB: loop body
LE: loop exit
PB: predicated region body
PF: predicated region fallthrough
CT: control target
= control target key end

     0   :  { %s1163_s21 = smov 0   ;;  %s1288_s0 = inlined_call_operand.vmem [shape: bf16[2,8,96], index: 0, kind: input, shape index: {}]   ;;  %s1289_s1 = inlined_call_operand.vmem [shape: f32[2,8,1], index: 1, kind: input, shape index: {}]   ;;  %s1290_s2 = inlined_call_operand.vmem [shape: f32[2,1,8], index: 2, kind: input, shape index: {}]   ;;  %s1291_s3 = inlined_call_operand.vmem [shape: bf16[32,32], index: 3, kind: input, shape index: {}]   ;;  %s1292_s4 = inlined_call_operand.vmem [shape: f32[1,32], index: 4, kind: input, shape index: {}]   ;;  %s1293_s5 = inlined_call_operand.vmem [shape: f32[2,8,32], index: 5, kind: input, shape index: {}]   ;;  %s1294_s6 = inlined_call_operand.vmem [shape: f32[2,8,32], index: 6, kind: output, shape index: {}]  }
   0x1 LB: > { %s952_s22 = sadd.s32 4294967295, %s1109_s21   ;;  %p956_p0 = scmp.ge.s32.totalorder %s1109_s21, 1  ;;  %s1109_s21 = sphi %s1163_s21, %s16_s21  }
   0x2   : > { %p237_p1 = scmp.lt.s32.totalorder %s1109_s21, 3 }
   0x4   : > { %p238_p2 = pnand %p956_p0, %p237_p1 }
   0x5   : > { %p276_p3 = scmp.lt.s32.totalorder (!%p238_p2), %s952_s22, 1  ;;  %v1111_v0 = vmov (!%p238_p2), 0.0   ;;  %vm1112_vm0 = vmmov (!%p238_p2), 0   ;;  %v1113_v1 = vmov (!%p238_p2), 0   ;;  %s1114_s7 = smov (!%p238_p2), 96   ;;  %vm317_vm1 = vcmask (!%p238_p2), 64512  }
   0x6   : > { %241 = sbr.rel (%p238_p2) target bundleno = 1819 (0x71b), region = 44  ;;  %999 = vmatprep.subr.bf16.mxu0 (!%p238_p2), %v1111_v0  ;;  %1001 = vmatprep.mubr.msk.bf16.mxu0 (!%p238_p2), %vm1112_vm0, %v1111_v0  ;;  %s1115_s11 = smov (!%p238_p2), 88   ;;  %vm383_vm3 = vcmask (!%p238_p2), 1043456   ;;  %vm548_vm4 = vcmask (!%p238_p2), 130112   ;;  %vm670_vm5 = vcmask (!%p238_p2), 195712   ;;  %vm792_vm6 = vcmask (!%p238_p2), 261312  }
   0x7   : > { %1005 = vmatprep.subr.bf16.mxu1 (!%p238_p2), %v1111_v0  ;;  %1007 = vmatprep.mubr.msk.bf16.mxu1 (!%p238_p2), %vm1112_vm0, %v1111_v0  ;;  %s1116_s12 = smov (!%p238_p2), 120   ;;  %s1117_s13 = smov (!%p238_p2), 80   ;;  %vm819_vm7 = vcmask (!%p238_p2), 261120  }
   0x8   : > { %1080 = vset.pattern.permute.xlu0 (!%p238_p2), %v1113_v1  ;;  %s1118_s14 = smov (!%p238_p2), 112   ;;  %s1119_s15 = smov (!%p238_p2), 104  }
   0x9   : > { %s1120_s16 = smov (!%p238_p2), 64   ;;  %s1121_s17 = smov (!%p238_p2), 72  }
   0xa   : > { %s1122_s18 = smov (!%p238_p2), 48   ;;  %s1123_s19 = smov (!%p238_p2), 56  }
   0xb   : > { %s1124_s20 = smov (!%p238_p2), 40   ;;  %s1127_s29 = smov (!%p238_p2), 24  }
   0xd   : > { %s1296_s22 = smov (!%p276_p3, %s952_s22), 1 }
   0xe   : > { %s957_s23 = sshll.u32 %s1296_s22, 2  ;;  %s1177_s24 = sshll.u32 %s1296_s22, 3 }
   0xf   : > { %s1182_s27 = scalar_lea.vmem %s1288_s0, %s957_s23  ;;  %s283_s30 = scalar_lea.vmem %s1289_s1, %s1177_s24 }
  0x10   : > { %v311_v2 = vld [vmem:[%s1182_s27] sm:$0xf]  ;;  %s286_s10 = scalar_lea.vmem %s1290_s2, %s1296_s22  ;;  %s1125_s22 = smov 8  }
  0x11   : > { %v962_v3 = vcombine.low %v311_v2, %v311_v2  ;;  %v296_v4 = vld [vmem:[%s283_s30] sm:$0xff]  ;;  %s1126_s23 = smov 16   ;;  %s290_s8 = scalar_lea.vmem %s1293_s5, %s1177_s24 }
  0x12   : > { %v961_v7 = vld [vmem:[%s286_s10] ss:$0 sm:$0xff] }
  0x13   : > { %315 = vrot.lane.b32.xlu0 %v962_v3, %s1114_s7  ;;  %v1204_v17 = vld [vmem:[%s1182_s27] ss:$0 sps:$4 sm:$0xff]  }
  0x14   : > { %v1209_v18 = vld [vmem:[%s1182_s27] ss:$0 sps:$4 sm:$0xff]  }
  0x15   : > { %v1214_v19 = vld [vmem:[%s1182_s27] ss:$0 sps:$4 sm:$0xff]  }
  0x17   : > { %300 = vperm.xlu0 %1080, %v296_v4  }
  0x1b   : > { %434 = vrot.lane.b32.xlu0 %v1204_v17, %s1115_s11 }
  0x1f   : > { %432 = vrot.lane.b32.xlu0 %v1204_v17, %s1116_s12 }
  0x23   : > { %556 = vrot.lane.b32.xlu0 %v1209_v18, %s1117_s13  ;;  %s294_s13 = scalar_lea.vmem %s1294_s6, %s1177_s24 }
  0x27   : > { %554 = vrot.lane.b32.xlu0 %v1209_v18, %s1118_s14 }
  0x2b   : > { %676 = vrot.lane.b32.xlu0 %v1214_v19, %s1119_s15 }
  0x85   : > { %v316_v5 = vpop.permute.xlu0 %315 }
  0x86   : > { %v322_v6 = vsel %vm317_vm1, %v316_v5, 0 }
  0x87   : > { %1000 = vmatpush3.bf16.xpose.msra.mxu0 %v322_v6 }
  0x88   : > { %1017 = vmatprep.subr.bf16.mxu0 %v1111_v0 }
  0x8e   : > { %1002 = vmatmul.mubr.msk.bf16.vlgmr.msra.gmra.mrb[0].mxu0 %vm317_vm1, %v311_v2 }
  0x8f   : > { %1019 = vmatprep.mubr.msk.bf16.mxu0 %vm1112_vm0, %v1111_v0 }
  0x96   : > { %v301_v8 = vpop.permute.xlu0 %300 }
  0x97   : > { %v1197_v9 = vmul.f32 %v961_v7, %v301_v8 }
  0x99   : > { %vm310_vm2 = vcmp.eq.f32.partialorder %v1197_v9, 0.0 }
  0x9a   : > { %v435_v28 = vpop.permute.xlu0 %434 }
  0x9b   : > { %v440_v32 = vsel %vm317_vm1, %v435_v28, 0 }
  0x9e   : > { %v433_v31 = vpop.permute.xlu0 %432 }
  0xa2   : > { %v557_v34 = vpop.permute.xlu0 %556 }
  0xa3   : > { %v562_v35 = vsel %vm317_vm1, %v557_v34, 0 }
  0xa6   : > { %v555_v37 = vpop.permute.xlu0 %554 }
  0xaa   : > { %v677_v39 = vpop.permute.xlu0 %676 }
 0x161   : > { %v358_v10 = vpop.f32.mrb[0].mxu0 }
 0x162   : > { %v364_v11 = vmul.f32 0.35355338, %v358_v10  ;;  %v1003_v12 = vpop.f32.mrb[1].mxu0 }
 0x163   : > { %v361_v13 = vpop.f32.mrb[2].mxu0 }
 0x164   : > { %v1004_v14 = vpop.f32.mrb[3].mxu0  ;;  %v365_v15 = vsel %vm310_vm2, -1e+09, %v364_v11 }
 0x165   : > { %v366_v16 = vsel %vm317_vm1, %v365_v15, -inf }
 0x166   : > { %367 = vmax.xlane.f32.xlu1 %v366_v16 }
 0x1f3   : > { %v368_v20 = vpop.xlane.xlu1 %367 }
 0x1f4   : > { %v369_v21 = vsub.f32 %v365_v15, %v368_v20 }
 0x1f6   : > { %v370_v22 = vmul.f32 1.442695, %v369_v21 }
 0x1f8   : > { %1087 = vpow2.f32 %v370_v22 }
 0x202   : > { %v1088_v23 = vpop.eup %1087 }
 0x203   : > { %v372_v24 = vsel %vm317_vm1, %v1088_v23, 0.0 }
 0x204   : > { %373 = vadd.xlane.f32.xlu1 %v372_v24 }
 0x215   : > { %378 = vrot.lane.b32.xlu1 %v962_v3, %s1120_s16 }
 0x219   : > { %678 = vrot.lane.b32.xlu1 %v1214_v19, %s1121_s17 }
 0x291   : > { %v374_v25 = vpop.xlane.xlu1 %373 }
 0x292   : > { %1089 = vrcp.f32 %v374_v25 }
 0x295   : > { %v379_v26 = vpop.permute.xlu1 %378 }
 0x296   : > { %v385_v27 = vsel %vm383_vm3, %v379_v26, 0 }
 0x297   : > { %1006 = vmatpush3.bf16.msra.mxu1 %v385_v27 }
 0x298   : > { %1011 = vmatprep.subr.bf16.mxu1 %v1111_v0 }
 0x299   : > { %v679_v36 = vpop.permute.xlu1 %678 }
 0x29a   : > { %v684_v38 = vsel %vm317_vm1, %v679_v36, 0 }
 0x29c   : > { %v1090_v29 = vpop.eup %1089 }
 0x29d   : > { %v376_v30 = vmul.f32 %v1090_v29, %v1088_v23 }
 0x29f   : > { %v377_v33 = vpack.c.bf16 %v376_v30, %v376_v30 }
 0x2a1   : > { %1008 = vmatmul.mubr.msk.bf16.vlgmr.msra.gmra.mrb[0].mxu1 %vm317_vm1, %v377_v33 }
 0x2a2   : > { %1012 = vmatpush3.bf16.xpose.msra.mxu1 %v440_v32  ;;  %1013 = vmatprep.mubr.msk.bf16.mxu1 %vm1112_vm0, %v1111_v0 }
 0x2a3   : > { %1023 = vmatprep.subr.bf16.mxu1 %v1111_v0 }
 0x2a9   : > { %1014 = vmatmul.mubr.msk.bf16.vlgmr.msra.gmra.mrb[4].mxu1 %vm317_vm1, %v433_v31 }
 0x2aa   : > { %1024 = vmatpush3.bf16.xpose.msra.mxu1 %v562_v35  ;;  %1025 = vmatprep.mubr.msk.bf16.mxu1 %vm1112_vm0, %v1111_v0 }
 0x2ab   : > { %1035 = vmatprep.subr.bf16.mxu1 %v1111_v0 }
 0x2b1   : > { %1026 = vmatmul.mubr.msk.bf16.vlgmr.msra.gmra.mrb[8].mxu1 %vm317_vm1, %v555_v37 }
 0x2b2   : > { %1036 = vmatpush3.bf16.xpose.msra.mxu1 %v684_v38  ;;  %1037 = vmatprep.mubr.msk.bf16.mxu1 %vm1112_vm0, %v1111_v0 }
 0x2b3   : > { %1047 = vmatprep.subr.bf16.mxu1 %v1111_v0 }
 0x2b9   : > { %1038 = vmatmul.mubr.msk.bf16.vlgmr.msra.gmra.mrb[12].mxu1 %vm317_vm1, %v677_v39 }
 0x2ba   : > { %1051 = vmatprep.mubr.msk.bf16.mxu1 %vm1112_vm0, %v1111_v0 }
 0x374   : > { %v421_v40 = vpop.f32.mrb[0].mxu1 }
 0x375   : > { %427 = vst.msk [vmem:[#allocation2] sm:$0xff] %vm317_vm1, %v421_v40  ;;  %v1009_v41 = vpop.f32.mrb[1].mxu1 }
 0x376   : > { %v424_v42 = vpop.f32.mrb[2].mxu1 }
 0x377   : > { %v1010_v43 = vpop.f32.mrb[3].mxu1 }
 0x378   : > { %v1085_v43 = vld [vmem:[%s1291_s3] sm:$0xff]  }
 0x379   : > { %1048 = vmatpush3.bf16.msra.mxu1 %v1085_v43 }
 0x37a   : > { %1049 = vmatprep.subr.bf16.mxu1 %v1111_v0 }
 0x37c   : > { %v476_v44 = vpop.f32.mrb[4].mxu1 }
 0x37d   : > { %v482_v45 = vmul.f32 0.35355338, %v476_v44  ;;  %v1015_v46 = vpop.f32.mrb[5].mxu1  ;;  %v1086_v44 = vld [vmem:[%s1291_s3 + $0x8] sm:$0xff]  }
 0x37e   : > { %v479_v47 = vpop.f32.mrb[6].mxu1  ;;  %1050 = vmatpush3.bf16.msra.mxu1 %v1086_v44 }
 0x37f   : > { %v1016_v48 = vpop.f32.mrb[7].mxu1  ;;  %v483_v49 = vsel %vm310_vm2, -1e+09, %v482_v45 }
 0x380   : > { %v484_v50 = vsel %vm317_vm1, %v483_v49, -inf }
 0x381   : > { %485 = vmax.xlane.f32.xlu1 %v484_v50 }
 0x384   : > { %v598_v51 = vpop.f32.mrb[8].mxu1 }
 0x385   : > { %v604_v52 = vmul.f32 0.35355338, %v598_v51  ;;  %v1027_v53 = vpop.f32.mrb[9].mxu1 }
 0x386   : > { %v601_v54 = vpop.f32.mrb[10].mxu1  ;;  %v974_v53 = vld [vmem:[%s1292_s4] ss:$0 sm:$0xff] }
 0x387   : > { %v605_v55 = vsel %vm310_vm2, -1e+09, %v604_v52  ;;  %v1028_v56 = vpop.f32.mrb[11].mxu1 }
 0x388   : > { %v606_v57 = vsel %vm317_vm1, %v605_v55, -inf }
 0x389   : > { %607 = vmax.xlane.f32.xlu0 %v606_v57 }
 0x38c   : > { %v720_v58 = vpop.f32.mrb[12].mxu1 }
 0x38d   : > { %v726_v59 = vmul.f32 0.35355338, %v720_v58  ;;  %v1039_v60 = vpop.f32.mrb[13].mxu1 }
 0x38e   : > { %v723_v61 = vpop.f32.mrb[14].mxu1 }
 0x38f   : > { %v727_v62 = vsel %vm310_vm2, -1e+09, %v726_v59  ;;  %v1040_v63 = vpop.f32.mrb[15].mxu1 }
 0x390   : > { %v728_v1 = vsel %vm317_vm1, %v727_v62, -inf }
 0x391   : > { %729 = vmax.xlane.f32.xlu0 %v728_v1 }
 0x40e   : > { %v486_v2 = vpop.xlane.xlu1 %485 }
 0x40f   : > { %v487_v3 = vsub.f32 %v483_v49, %v486_v2 }
 0x411   : > { %v488_v4 = vmul.f32 1.442695, %v487_v3 }
 0x413   : > { %1091 = vpow2.f32 %v488_v4 }
 0x416   : > { %v608_v5 = vpop.xlane.xlu0 %607 }
 0x417   : > { %v609_v6 = vsub.f32 %v605_v55, %v608_v5  ;;  %v863_v55 = vld [vmem:[%s290_s8] sm:$0xff] }
 0x419   : > { %v610_v7 = vmul.f32 1.442695, %v609_v6 }
 0x41b   : > { %1093 = vpow2.f32 %v610_v7 }
 0x41d   : > { %v1092_v8 = vpop.eup %1091 }
 0x41e   : > { %v490_v10 = vsel %vm317_vm1, %v1092_v8, 0.0  ;;  %v730_v12 = vpop.xlane.xlu0 %729 }
 0x41f   : > { %491 = vadd.xlane.f32.xlu1 %v490_v10  ;;  %v731_v13 = vsub.f32 %v727_v62, %v730_v12 }
 0x421   : > { %v732_v14 = vmul.f32 1.442695, %v731_v13 }
 0x423   : > { %1095 = vpow2.f32 %v732_v14 }
 0x425   : > { %v1094_v11 = vpop.eup %1093 }
 0x426   : > { %v612_v9 = vsel %vm317_vm1, %v1094_v11, 0.0 }
 0x427   : > { %613 = vadd.xlane.f32.xlu0 %v612_v9 }
 0x42d   : > { %v1096_v15 = vpop.eup %1095 }
 0x42e   : > { %v734_v16 = vsel %vm317_vm1, %v1096_v15, 0.0 }
 0x430   : > { %618 = vrot.lane.b32.xlu1 %v1209_v18, %s1122_s18 }
 0x43d   : > { %496 = vrot.lane.b32.xlu0 %v1204_v17, %s1123_s19 }
 0x454   : > { %735 = vadd.xlane.f32.xlu1 %v734_v16 }
 0x465   : > { %740 = vrot.lane.b32.xlu1 %v1214_v19, %s1124_s20 }
 0x4ac   : > { %v492_v20 = vpop.xlane.xlu1 %491 }
 0x4ad   : > { %1097 = vrcp.f32 %v492_v20 }
 0x4b0   : > { %v619_v17 = vpop.permute.xlu1 %618 }
 0x4b1   : > { %v624_v26 = vsel %vm383_vm3, %v619_v17, 0 }
 0x4b4   : > { %v614_v21 = vpop.xlane.xlu0 %613 }
 0x4b5   : > { %1099 = vrcp.f32 %v614_v21 }
 0x4b7   : > { %v1098_v22 = vpop.eup %1097 }
 0x4b8   : > { %v494_v18 = vmul.f32 %v1098_v22, %v1092_v8  ;;  %v497_v23 = vpop.permute.xlu0 %496 }
 0x4b9   : > { %v502_v24 = vsel %vm383_vm3, %v497_v23, 0 }
 0x4ba   : > { %1018 = vmatpush3.bf16.msra.mxu0 %v502_v24  ;;  %v495_v25 = vpack.c.bf16 %v494_v18, %v494_v18 }
 0x4bb   : > { %1029 = vmatprep.subr.bf16.mxu0 %v1111_v0 }
 0x4bd   : > { %1020 = vmatmul.mubr.msk.bf16.vlgmr.msra.gmra.mrb[4].mxu0 %vm317_vm1, %v495_v25 }
 0x4be   : > { %1030 = vmatpush3.bf16.msra.mxu0 %v624_v26  ;;  %1031 = vmatprep.mubr.msk.bf16.mxu0 %vm1112_vm0, %v1111_v0 }
 0x4bf   : > { %v1100_v19 = vpop.eup %1099  ;;  %1041 = vmatprep.subr.bf16.mxu0 %v1111_v0 }
 0x4c0   : > { %v616_v27 = vmul.f32 %v1100_v19, %v1094_v11 }
 0x4c2   : > { %v617_v28 = vpack.c.bf16 %v616_v27, %v616_v27 }
 0x4c5   : > { %1032 = vmatmul.mubr.msk.bf16.vlgmr.msra.gmra.mrb[8].mxu0 %vm317_vm1, %v617_v28 }
 0x4c6   : > { %1043 = vmatprep.mubr.msk.bf16.mxu0 %vm1112_vm0, %v1111_v0 }
 0x4e1   : > { %v736_v29 = vpop.xlane.xlu1 %735 }
 0x4e2   : > { %1101 = vrcp.f32 %v736_v29 }
 0x4e5   : > { %v741_v30 = vpop.permute.xlu1 %740 }
 0x4e6   : > { %v746_v31 = vsel %vm383_vm3, %v741_v30, 0 }
 0x4e7   : > { %1042 = vmatpush3.bf16.msra.mxu0 %v746_v31 }
 0x4ec   : > { %v1102_v32 = vpop.eup %1101 }
 0x4ed   : > { %v738_v33 = vmul.f32 %v1102_v32, %v1096_v15 }
 0x4ef   : > { %v739_v34 = vpack.c.bf16 %v738_v33, %v738_v33 }
 0x4f1   : > { %1044 = vmatmul.mubr.msk.bf16.vlgmr.msra.gmra.mrb[12].mxu0 %vm317_vm1, %v739_v34 }
 0x590   : > { %v538_v35 = vpop.f32.mrb[4].mxu0 }
 0x591   : > { %545 = vrot.lane.b32.xlu0 %v538_v35, %s1125_s22  ;;  %v1021_v36 = vpop.f32.mrb[5].mxu0 }
 0x592   : > { %v541_v37 = vpop.f32.mrb[6].mxu0 }
 0x593   : > { %v1022_v38 = vpop.f32.mrb[7].mxu0 }
 0x598   : > { %v660_v39 = vpop.f32.mrb[8].mxu0 }
 0x599   : > { %667 = vrot.lane.b32.xlu1 %v660_v39, %s1126_s23  ;;  %v1033_v40 = vpop.f32.mrb[9].mxu0 }
 0x59a   : > { %v663_v41 = vpop.f32.mrb[10].mxu0 }
 0x59b   : > { %v1034_v42 = vpop.f32.mrb[11].mxu0 }
 0x5c4   : > { %v782_v45 = vpop.f32.mrb[12].mxu0 }
 0x5c5   : > { %789 = vrot.lane.b32.xlu0 %v782_v45, %s1127_s29  ;;  %v1045_v46 = vpop.f32.mrb[13].mxu0 }
 0x5c6   : > { %v785_v47 = vpop.f32.mrb[14].mxu0 }
 0x5c7   : > { %v1046_v48 = vpop.f32.mrb[15].mxu0 }
 0x603   : > { %v546_v49 = vpop.permute.xlu0 %545 }
 0x604   : > { %549 = vst.msk [vmem:[#allocation2] sm:$0xff] %vm548_vm4, %v546_v49 }
 0x60b   : > { %v668_v50 = vpop.permute.xlu1 %667 }
 0x60c   : > { %671 = vst.msk [vmem:[#allocation2] sm:$0xff] %vm670_vm5, %v668_v50 }
 0x637   : > { %v790_v51 = vpop.permute.xlu0 %789 }
 0x638   : > { %793 = vst.msk [vmem:[#allocation2] sm:$0xff] %vm792_vm6, %v790_v51 }
 0x63f   : > { %v794_v52 = vld [vmem:[#allocation2] sm:$0xff] }
 0x640   : > { %v795_v0 = vpack.c.bf16 %v794_v52, %v794_v52 }
 0x642   : > { %1052 = vmatmul.mubr.msk.bf16.vlgmr.msra.gmra.mrb[16].mxu1 %vm819_vm7, %v795_v0 }
 0x715   : > { %v857_v54 = vpop.f32.mrb[16].mxu1 }
 0x716   : > { %v858_v56 = vadd.f32 %v974_v53, %v857_v54  ;;  %v1053_v57 = vpop.f32.mrb[17].mxu1 }
 0x717   : > { %v860_v58 = vpop.f32.mrb[18].mxu1 }
 0x718   : > { %v864_v59 = vadd.f32 %v863_v55, %v858_v56  ;;  %v1054_v60 = vpop.f32.mrb[19].mxu1 }
 0x71a   : > { %865 = vst.msk [vmem:[%s294_s13] sm:$0xff] %vm819_vm7, %v864_v59 }
 0x71b PF: > { %s16_s21 = sadd.s32 1, %s1109_s21  }
 0x71c   : > { %p13_p4 = scmp.ge.s32.totalorder %s16_s21, 4  }
 0x71e   :  { %15 = sbr.rel (!%p13_p4) target bundleno = 1 (0x1), region = 83 }

// kernel: decoder_forward.18
= control target key start
LH: loop header
LB: loop body
LE: loop exit
PB: predicated region body
PF: predicated region fallthrough
CT: control target
= control target key end

     0   :  { %8 = vsyncpa [#allocation4], 0  ;;  %s187_s12 = smov [#allocation3]   ;;  %s243_s0 = inlined_call_operand.vmem [shape: f32[16,32], index: 0, kind: input, shape index: {}]   ;;  %s244_s1 = inlined_call_operand.hbm [shape: bf16[32,64], index: 1, kind: input, shape index: {}]   ;;  %s245_s2 = inlined_call_operand.vmem [shape: f32[1,64], index: 2, kind: input, shape index: {}]   ;;  %s246_s3 = inlined_call_operand.vmem [shape: bf16[16,64], index: 3, kind: output, shape index: {}]  }
   0x1   :  { %s16_s13 = sshll.u32 %s187_s12, 4  ;;  %s163_s16 = scalar_lea.hbm %s244_s1, 256  ;;  %s17_s13 = int_to_ptr.vmem [resolvable:$true] %s16_s13 }
   0x2   :  { %p164_p0 = scmp.ne.s32.totalorder %s244_s1, %s163_s16  ;;  %p167_p1 = scmp.lt.u32.totalorder %s163_s16, %s244_s1 }
   0x4   :  { %p169_p2 = pnand %p167_p1, %p164_p0 }
   0x6   :  { %172 = shalt.err (!%p169_p2)
}
   0x7   :  { %s173_s21 = scalar_lea.vmem %s17_s13, 256  ;;  %p178_p4 = scmp.lt.s32.totalorder %s17_s13, %s17_s13 }
   0x8   :  { %p174_p3 = scmp.ne.s32.totalorder %s17_s13, %s173_s21  ;;  %p179_p5 = scmp.lt.s32.totalorder %s173_s21, %s173_s21 }
   0xa   :  { %p180_p6 = por %p179_p5, %p178_p4 }
   0xc   :  { %p181_p7 = pnand %p180_p6, %p174_p3 }
   0xe   :  { %184 = shalt.err (!%p181_p7)
}
   0xf   :  { %s188_s22 = smov 64   ;;  %s189_s23 = smov 4  }
  0x10   :  { %22 = dma.hbm_to_vmem [thread:$0]  %s244_s1, 256, %s17_s13, [#allocation4], %s188_s22, %s188_s22, %s189_s23  }
  0x11   :  { %185 = dma.done.wait [#allocation4], 256  }
  0x12   :  { %186 = vsyncadd [#allocation4], 4294967040  ;;  %vm33_vm0 = vcmask 523264   ;;  %v190_v0 = vmov 0.0   ;;  %vm191_vm1 = vmmov 0   ;;  %v161_v1 = vld [vmem:[#allocation3] sm:$0xff]  }
  0x13   :  { %34 = vst.msk [vmem:[#allocation2] sm:$0xff] %vm33_vm0, %v190_v0  ;;  %35 = vst.msk [vmem:[#allocation2 + $0x8] sm:$0xff] %vm33_vm0, %v190_v0  ;;  %148 = vmatprep.subr.bf16.mxu0 %v190_v0  ;;  %152 = vmatprep.mubr.msk.bf16.mxu0 %vm191_vm1, %v190_v0  ;;  %v162_v2 = vld [vmem:[#allocation3 + $0x8] sm:$0xff]   ;;  %v38_v3 = vld [vmem:[%s243_s0] sm:$0xff]  ;;  %vm57_vm2 = vcmask 261120   ;;  %vm129_vm3 = vcmask 519168  }
  0x14   :  { %149 = vmatpush3.bf16.msra.mxu0 %v161_v1  ;;  %v39_v4 = vld [vmem:[%s243_s0 + $0x8] sm:$0xff]  ;;  %v140_v14 = vld [vmem:[%s245_s2] ss:$0 sm:$0xff] }
  0x15   :  { %150 = vmatprep.subr.bf16.mxu0 %v190_v0  ;;  %v40_v5 = vpack.c.bf16 %v39_v4, %v38_v3 }
  0x18   :  { %151 = vmatpush3.bf16.msra.mxu0 %v162_v2 }
  0x1a   :  { %v36_v6 = vld [vmem:[#allocation2] sm:$0xff]  ;;  %v37_v8 = vld [vmem:[#allocation2 + $0x8] sm:$0xff] }
  0x1b   :  { %153 = vmatmul.mubr.msk.bf16.vlgmr.msra.gmra.mrb[0].mxu0 %vm57_vm2, %v40_v5 }
  0xee   :  { %v95_v7 = vpop.f32.mrb[0].mxu0 }
  0xef   :  { %v102_v9 = vadd.f32 %v95_v7, %v36_v6  ;;  %v154_v10 = vpop.f32.mrb[1].mxu0 }
  0xf0   :  { %v98_v11 = vpop.f32.mrb[2].mxu0 }
  0xf1   :  { %105 = vst.msk [vmem:[#allocation2] sm:$0xff] %vm33_vm0, %v102_v9  ;;  %v103_v12 = vadd.f32 %v98_v11, %v37_v8  ;;  %v155_v13 = vpop.f32.mrb[3].mxu0 }
  0xf3   :  { %106 = vst.msk [vmem:[#allocation2 + $0x8] sm:$0xff] %vm33_vm0, %v103_v12 }
  0xf8   :  { %v110_v15 = vld [vmem:[#allocation2] sm:$0xff] }
  0xf9   :  { %v119_v16 = vadd.f32 %v140_v14, %v110_v15 }
  0xfa   :  { %v111_v17 = vld [vmem:[#allocation2 + $0x8] sm:$0xff] }
  0xfb   :  { %v143_v18 = vpack.c.bf16 %v119_v16, %v119_v16  ;;  %v120_v19 = vadd.f32 %v140_v14, %v111_v17 }
  0xfd   :  { %130 = vst.msk [vmem:[%s246_s3] sm:$0xf] %vm129_vm3, %v143_v18  ;;  %v144_v20 = vpack.c.bf16 %v120_v19, %v120_v19 }
  0xff   :  { %131 = vst.msk [vmem:[%s246_s3 + $0x4] sm:$0xf] %vm129_vm3, %v144_v20 }
 0x100   :  { %136 = vsyncpa [#allocation4], 1 }

// kernel: decoder_forward.20
= control target key start
LH: loop header
LB: loop body
LE: loop exit
PB: predicated region body
PF: predicated region fallthrough
CT: control target
= control target key end

     0   :  { %s1099_s18 = smov 0   ;;  %s1101_s19 = smov 0   ;;  %s1259_s0 = inlined_call_operand.vmem [shape: f32[16,32], index: 0, kind: input, shape index: {}]   ;;  %s1260_s1 = inlined_call_operand.vmem [shape: f32[1,32], index: 1, kind: input, shape index: {}]   ;;  %s1261_s2 = inlined_call_operand.vmem [shape: f32[1,32], index: 2, kind: input, shape index: {}]   ;;  %s1262_s3 = inlined_call_operand.vmem [shape: bf16[32,2048], index: 3, kind: input, shape index: {}]   ;;  %s1263_s4 = inlined_call_operand.vmem [shape: f32[1,2048], index: 4, kind: input, shape index: {}]   ;;  %s1264_s5 = inlined_call_operand.vmem [shape: bf16[16,2048], index: 5, kind: output, shape index: {}]  }
   0x1   :  { %s1103_s20 = smov 0   ;;  %s1105_s21 = smov 0  }
   0x2   :  { %s1107_s22 = smov 0  }
   0x3 LB: > { %s24_s23 = sadd.s32 1, %s1062_s21  ;;  %s921_s24 = sadd.s32 4294967295, %s1066_s22   ;;  %s1066_s22 = sphi %s1107_s22, %s15_s22   ;;  %s1062_s21 = sphi %s1105_s21, %s1269_s21   ;;  %s1058_s20 = sphi %s1103_s20, %s1268_s20   ;;  %s1054_s19 = sphi %s1101_s19, %s1267_s19   ;;  %s1050_s18 = sphi %s1099_s18, %s1266_s18  }
   0x4   : > { %p25_p0 = scmp.ge.s32.totalorder %s24_s23, 2  ;;  %p109_p1 = scmp.ne.s32.totalorder %s1054_s19, %s1050_s18 }
   0x5   : > { %p110_p2 = scmp.eq.s32.totalorder %s1066_s22, 0  ;;  %p167_p4 = scmp.eq.s32.totalorder %s921_s24, 1 }
   0x6   : > { %s1271_s23 = smov (%p25_p0, %s24_s23), 0  ;;  %s102_s26 = sadd.s32 1, %s1054_s19 }
   0x7   : > { %p111_p3 = por %p110_p2, %p109_p1  ;;  %s99_s25 = ssub.s32 %s1062_s21, %s1271_s23 }
   0x8   : > { %p100_p5 = scmp.eq.s32.totalorder %s99_s25, 0  ;;  %p1134_p6 = por %p167_p4, %p109_p1 }
   0x9   : > { %p925_p7 = scmp.ge.s32.totalorder %s1066_s22, 2 }
   0xa   : > { %s1139_s28 = scalar_select %p100_p5, %s1054_s19, %s102_s26  }
   0xb   : > { %204 = sbr.rel (%p925_p7) target bundleno = 30 (0x1e), region = 28 }
  0x12   : > { %207 = sbr.rel (!%p111_p3) target bundleno = 30 (0x1e), region = 32  ;;  %s209_s29 = sand.u32 (%p111_p3), 1, %s1054_s19  }
  0x13   : > { %s969_s30 = sshll.u32 (%p111_p3), %s1062_s21, 5  ;;  %s926_s6 = sshll.u32 (%p111_p3), %s209_s29, 7 }
  0x14   : > { %s1147_s9 = scalar_lea.vmem (%p111_p3), %s1262_s3, %s969_s30  ;;  %s211_s10 = scalar_lea.vmem (%p111_p3), [#allocation3], %s926_s6 }
  0x15   : > { %v227_v0 = vld [vmem:[%s1147_s9] sm:$0xff] (%p111_p3)  ;;  %v229_v1 = vld [vmem:[%s1147_s9 + $0x8] sm:$0xff] (%p111_p3)  ;;  %v231_v2 = vld [vmem:[%s1147_s9 + $0x10] sm:$0xff] (%p111_p3) }
  0x16   : > { %228 = vst [vmem:[%s211_s10] sm:$0xff] (%p111_p3), %v227_v0  ;;  %230 = vst [vmem:[%s211_s10 + $0x8] sm:$0xff] (%p111_p3), %v229_v1  ;;  %v233_v3 = vld [vmem:[%s1147_s9 + $0x18] sm:$0xff] (%p111_p3)  ;;  %v235_v4 = vld [vmem:[%s1147_s9 + $0x40] sm:$0xff] (%p111_p3) }
  0x17   : > { %232 = vst [vmem:[%s211_s10 + $0x10] sm:$0xff] (%p111_p3), %v231_v2  ;;  %v237_v5 = vld [vmem:[%s1147_s9 + $0x48] sm:$0xff] (%p111_p3)  ;;  %234 = vst [vmem:[%s211_s10 + $0x18] sm:$0xff] (%p111_p3), %v233_v3  ;;  %v239_v6 = vld [vmem:[%s1147_s9 + $0x50] sm:$0xff] (%p111_p3) }
  0x18   : > { %236 = vst [vmem:[%s211_s10 + $0x20] sm:$0xff] (%p111_p3), %v235_v4  ;;  %238 = vst [vmem:[%s211_s10 + $0x28] sm:$0xff] (%p111_p3), %v237_v5  ;;  %v241_v7 = vld [vmem:[%s1147_s9 + $0x58] sm:$0xff] (%p111_p3)  ;;  %v243_v8 = vld [vmem:[%s1147_s9 + $0x80] sm:$0xff] (%p111_p3) }
  0x19   : > { %240 = vst [vmem:[%s211_s10 + $0x30] sm:$0xff] %v239_v6  ;;  %242 = vst [vmem:[%s211_s10 + $0x38] sm:$0xff] %v241_v7  ;;  %v245_v9 = vld [vmem:[%s1147_s9 + $0x88] sm:$0xff]  ;;  %v247_v10 = vld [vmem:[%s1147_s9 + $0x90] sm:$0xff] }
  0x1a   : > { %244 = vst [vmem:[%s211_s10 + $0x40] sm:$0xff] %v243_v8  ;;  %v249_v11 = vld [vmem:[%s1147_s9 + $0x98] sm:$0xff]  ;;  %246 = vst [vmem:[%s211_s10 + $0x48] sm:$0xff] %v245_v9  ;;  %v251_v12 = vld [vmem:[%s1147_s9 + $0xc0] sm:$0xff] }
  0x1b   : > { %248 = vst [vmem:[%s211_s10 + $0x50] sm:$0xff] %v247_v10  ;;  %250 = vst [vmem:[%s211_s10 + $0x58] sm:$0xff] %v249_v11  ;;  %v253_v13 = vld [vmem:[%s1147_s9 + $0xc8] sm:$0xff]  ;;  %v255_v14 = vld [vmem:[%s1147_s9 + $0xd0] sm:$0xff] }
  0x1c   : > { %252 = vst [vmem:[%s211_s10 + $0x60] sm:$0xff] %v251_v12  ;;  %254 = vst [vmem:[%s211_s10 + $0x68] sm:$0xff] %v253_v13  ;;  %v257_v15 = vld [vmem:[%s1147_s9 + $0xd8] sm:$0xff] }
  0x1d   : > { %256 = vst [vmem:[%s211_s10 + $0x70] sm:$0xff] %v255_v14  ;;  %258 = vst [vmem:[%s211_s10 + $0x78] sm:$0xff] %v257_v15 }
  0x1e PF: > { %p929_p8 = scmp.ge.s32.totalorder %s1066_s22, 1  ;;  %p271_p9 = scmp.lt.s32.totalorder %s1066_s22, 3 }
  0x20   : > { %p272_p10 = pnand %p929_p8, %p271_p9 }
  0x21   : > { %s278_s11 = sand.u32 (!%p272_p10), 1, %s1050_s18   ;;  %s932_s12 = sshll.u32 (!%p272_p10), %s1058_s20, 3 }
  0x22   : > { %275 = sbr.rel (%p272_p10) target bundleno = 626 (0x272), region = 59  ;;  %s930_s13 = sshll.u32 (!%p272_p10), %s278_s11, 7 }
  0x23   : > { %s931_s14 = sshll.u32 (!%p272_p10), %s278_s11, 6  ;;  %p321_p11 = scmp.lt.s32.totalorder (!%p272_p10), %s932_s12, 15 }
  0x24   : > { %s1175_s24 = scalar_lea.vmem (!%p272_p10), [#allocation3], %s930_s13  ;;  %s1177_s25 = scalar_lea.vmem (!%p272_p10), [#allocation4], %s931_s14 }
  0x25   : > { %p933_p12 = scmp.ne.s32.totalorder (!%p272_p10), %s1058_s20, 0 }
  0x29   : > { %s1273_s12 = smov (!%p321_p11, %s932_s12), 15  ;;  %331 = sbr.rel (%p933_p12) target bundleno = 376 (0x178), region = 67 }
  0x2a   : > { %s323_s17 = scalar_lea.vmem %s1263_s4, %s1273_s12  ;;  %v332_v16 = vld [vmem:[%s1259_s0] sm:$0xff] (!%p933_p12)  ;;  %vm334_vm0 = vcmask (!%p933_p12), 261120   ;;  %v333_v17 = vld [vmem:[%s1259_s0 + $0x8] sm:$0xff] (!%p933_p12) }
  0x2b   : > { %v335_v18 = vsel (!%p933_p12), %vm334_vm0, %v332_v16, 0.0  ;;  %v338_v19 = vsel (!%p933_p12), %vm334_vm0, %v333_v17, 0.0  ;;  %v934_v46 = vld [vmem:[%s1260_s1] ss:$0 sm:$0xff] (!%p933_p12) }
  0x2c   : > { %336 = vadd.xlane.f32.xlu0 (!%p933_p12), %v335_v18  ;;  %v935_v52 = vld [vmem:[%s1261_s2] ss:$0 sm:$0xff] (!%p933_p12) }
  0x30   : > { %339 = vadd.xlane.f32.xlu0 %v338_v19 }
  0xb9   : > { %v337_v20 = vpop.xlane.xlu0 %336 }
  0xba   : > { %v342_v21 = vmul.f32 0.03125, %v337_v20 }
  0xbc   : > { %v344_v22 = vsub.f32 %v332_v16, %v342_v21 }
  0xbd   : > { %v340_v23 = vpop.xlane.xlu0 %339 }
  0xbe   : > { %v343_v24 = vmul.f32 0.03125, %v340_v23  ;;  %v346_v25 = vmul.f32 %v344_v22, %v344_v22  ;;  %v377_v48 = vmul.f32 %v934_v46, %v344_v22 }
  0xc0   : > { %v345_v26 = vsub.f32 %v333_v17, %v343_v24  ;;  %v348_v27 = vsel %vm334_vm0, %v346_v25, 0.0 }
  0xc1   : > { %349 = vadd.xlane.f32.xlu1 %v348_v27 }
  0xc2   : > { %v347_v28 = vmul.f32 %v345_v26, %v345_v26  ;;  %v378_v49 = vmul.f32 %v934_v46, %v345_v26 }
  0xc4   : > { %v351_v29 = vsel %vm334_vm0, %v347_v28, 0.0 }
  0xc5   : > { %352 = vadd.xlane.f32.xlu1 %v351_v29 }
 0x14e   : > { %v350_v30 = vpop.xlane.xlu1 %349 }
 0x14f   : > { %v354_v31 = vmul.f32 0.032258064, %v350_v30 }
 0x151   : > { %1020 = vrsqrt.f32 %v354_v31  ;;  %vm358_vm1 = vcmp.eq.f32.partialorder %v354_v31, inf  ;;  %v361_v36 = vand.u32 2147483648, %v354_v31  ;;  %vm360_vm2 = vcmp.eq.f32.partialorder %v354_v31, 0.0 }
 0x152   : > { %v353_v32 = vpop.xlane.xlu1 %352 }
 0x153   : > { %v355_v33 = vmul.f32 0.032258064, %v353_v32 }
 0x155   : > { %1022 = vrsqrt.f32 %v355_v33  ;;  %vm365_vm3 = vcmp.eq.f32.partialorder %v355_v33, inf  ;;  %v368_v42 = vand.u32 2147483648, %v355_v33  ;;  %vm367_vm4 = vcmp.eq.f32.partialorder %v355_v33, 0.0 }
 0x15b   : > { %v1021_v34 = vpop.eup %1020 }
 0x15c   : > { %v357_v35 = vmul.f32 %v1021_v34, %v354_v31 }
 0x15e   : > { %v359_v37 = vsel %vm358_vm1, %v354_v31, %v357_v35 }
 0x15f   : > { %v1023_v38 = vpop.eup %1022  ;;  %v362_v39 = vsel %vm360_vm2, %v361_v36, %v359_v37 }
 0x160   : > { %v379_v40 = vadd.f32 1e-06, %v362_v39  ;;  %v364_v41 = vmul.f32 %v1023_v38, %v355_v33 }
 0x162   : > { %1024 = vrcp.f32 %v379_v40  ;;  %v366_v43 = vsel %vm365_vm3, %v355_v33, %v364_v41 }
 0x163   : > { %v369_v44 = vsel %vm367_vm4, %v368_v42, %v366_v43 }
 0x164   : > { %v380_v45 = vadd.f32 1e-06, %v369_v44 }
 0x166   : > { %1026 = vrcp.f32 %v380_v45 }
 0x16c   : > { %v1025_v47 = vpop.eup %1024 }
 0x16d   : > { %v385_v50 = vmul.f32 %v1025_v47, %v377_v48 }
 0x16f   : > { %v394_v54 = vadd.f32 %v935_v52, %v385_v50 }
 0x170   : > { %v1027_v51 = vpop.eup %1026 }
 0x171   : > { %v386_v53 = vmul.f32 %v1027_v51, %v378_v49 }
 0x173   : > { %v395_v55 = vadd.f32 %v935_v52, %v386_v53 }
 0x175   : > { %v396_v56 = vpack.c.bf16 %v395_v55, %v394_v54 }
 0x177   : > { %397 = vst.msk [vmem:[#allocation2] sm:$0xff] %vm334_vm0, %v396_v56 }
 0x178 PF: > { %v399_v57 = vld [vmem:[%s1175_s24] sm:$0xff]  ;;  %v400_v59 = vld [vmem:[%s1175_s24 + $0x8] sm:$0xff]  ;;  %v1068_v1 = vmov 0   ;;  %v401_v8 = vld [vmem:[%s1175_s24 + $0x10] sm:$0xff]  ;;  %vm537_vm5 = vcmask 261120   ;;  %v417_v27 = vlaneseq  ;;  %s978_s12 = sshll.u32 (%p1134_p6), %s1058_s20, 5 }
 0x179   : > { %v403_v58 = vld [vmem:[%s1175_s24 + $0x20] sm:$0xff]  ;;  %v404_v61 = vld [vmem:[%s1175_s24 + $0x28] sm:$0xff]  ;;  %573 = vmatprep.mubr.bf16.mxu0 %v1068_v1  ;;  %616 = vmatprep.mubr.bf16.mxu1 %v1068_v1  ;;  %v405_v9 = vld [vmem:[%s1175_s24 + $0x30] sm:$0xff]  ;;  %s797_s15 = scalar_lea.vmem (%p1134_p6), %s1264_s5, %s978_s12 }
 0x17a   : > { %v937_v60 = vcombine.high %v399_v57, %v403_v58  ;;  %v936_v62 = vcombine.low %v399_v57, %v403_v58  ;;  %v407_v63 = vld [vmem:[%s1175_s24 + $0x40] sm:$0xff]  ;;  %v939_v2 = vcombine.high %v400_v59, %v404_v61  ;;  %v938_v3 = vcombine.low %v400_v59, %v404_v61  ;;  %v408_v5 = vld [vmem:[%s1175_s24 + $0x48] sm:$0xff]  ;;  %v402_v10 = vld [vmem:[%s1175_s24 + $0x18] sm:$0xff] }
 0x17b   : > { %v411_v0 = vld [vmem:[%s1175_s24 + $0x60] sm:$0xff]  ;;  %v412_v6 = vld [vmem:[%s1175_s24 + $0x68] sm:$0xff]  ;;  %v406_v12 = vld [vmem:[%s1175_s24 + $0x38] sm:$0xff]  ;;  %v941_v14 = vcombine.high %v401_v8, %v405_v9  ;;  %v940_v21 = vcombine.low %v401_v8, %v405_v9  ;;  %v418_v28 = vshrl.u32 %v417_v27, 7 }
 0x17c   : > { %v945_v4 = vcombine.high %v407_v63, %v411_v0  ;;  %541 = vmatprep.subr.bf16.mxu0 %v937_v60  ;;  %v947_v7 = vcombine.high %v408_v5, %v412_v6  ;;  %584 = vmatprep.subr.bf16.mxu1 %v939_v2  ;;  %v944_v11 = vcombine.low %v407_v63, %v411_v0  ;;  %v409_v16 = vld [vmem:[%s1175_s24 + $0x50] sm:$0xff]  ;;  %v410_v18 = vld [vmem:[%s1175_s24 + $0x58] sm:$0xff] }
 0x17d   : > { %542 = vmatpush1.bf16.msra.mxu0 %v936_v62  ;;  %585 = vmatpush1.bf16.msra.mxu1 %v938_v3  ;;  %v946_v13 = vcombine.low %v408_v5, %v412_v6  ;;  %v943_v15 = vcombine.high %v402_v10, %v406_v12  ;;  %v413_v17 = vld [vmem:[%s1175_s24 + $0x70] sm:$0xff]  ;;  %v414_v19 = vld [vmem:[%s1175_s24 + $0x78] sm:$0xff]  ;;  %v942_v22 = vcombine.low %v402_v10, %v406_v12  ;;  %v419_v29 = vsub.s32 0, %v418_v28 }
 0x17e   : > { %543 = vmatprep.subr.bf16.mxu0 %v945_v4  ;;  %586 = vmatprep.subr.bf16.mxu1 %v947_v7  ;;  %v398_v20 = vld [vmem:[#allocation2] sm:$0xff]  ;;  %v949_v23 = vcombine.high %v409_v16, %v413_v17  ;;  %v951_v24 = vcombine.high %v410_v18, %v414_v19  ;;  %v948_v25 = vcombine.low %v409_v16, %v413_v17  ;;  %v427_v31 = vsub.s32 2, %v418_v28 }
 0x17f   : > { %v950_v26 = vcombine.low %v410_v18, %v414_v19  ;;  %v415_v30 = vld [vmem:[%s323_s17] sm:$0xff]  ;;  %v423_v32 = vsub.s32 1, %v418_v28  ;;  %v431_v33 = vsub.s32 3, %v418_v28  ;;  %v435_v38 = vsub.s32 4, %v418_v28 }
 0x180   : > { %v420_v34 = vrot.slane %v415_v30, %v419_v29  ;;  %v428_v35 = vrot.slane %v415_v30, %v427_v31  ;;  %v443_v43 = vsub.s32 6, %v418_v28  ;;  %v439_v48 = vsub.s32 5, %v418_v28 }
 0x181   : > { %544 = vmatpush1.bf16.msra.mxu0 %v944_v11  ;;  %587 = vmatpush1.bf16.msra.mxu1 %v946_v13  ;;  %v424_v36 = vrot.slane %v415_v30, %v423_v32  ;;  %v432_v37 = vrot.slane %v415_v30, %v431_v33  ;;  %v447_v49 = vsub.s32 7, %v418_v28  ;;  %v436_v55 = vrot.slane %v415_v30, %v435_v38 }
 0x182   : > { %627 = vmatprep.subr.bf16.mxu0 %v941_v14  ;;  %670 = vmatprep.subr.bf16.mxu1 %v943_v15  ;;  %v444_v0 = vrot.slane %v415_v30, %v443_v43  ;;  %v440_v4 = vrot.slane %v415_v30, %v439_v48 }
 0x183   : > { %v448_v7 = vrot.slane %v415_v30, %v447_v49 }
 0x184   : > { %952 = vmatmul.mubr.msk.bf16.vlgmr.msra.gmra.mrb[0].mxu0 %vm537_vm5, %v398_v20  ;;  %953 = vmatmul.mubr.msk.bf16.vlgmr.msra.gmra.mrb[0].mxu1 %vm537_vm5, %v398_v20 }
 0x185   : > { %628 = vmatpush1.bf16.msra.mxu0 %v940_v21  ;;  %671 = vmatpush1.bf16.msra.mxu1 %v942_v22 }
 0x186   : > { %629 = vmatprep.subr.bf16.mxu0 %v949_v23  ;;  %672 = vmatprep.subr.bf16.mxu1 %v951_v24 }
 0x187   : > { %659 = vmatprep.mubr.bf16.mxu0 %v1068_v1  ;;  %702 = vmatprep.mubr.bf16.mxu1 %v1068_v1 }
 0x189   : > { %630 = vmatpush1.bf16.msra.mxu0 %v948_v25  ;;  %673 = vmatpush1.bf16.msra.mxu1 %v950_v26 }
 0x18c   : > { %954 = vmatmul.mubr.msk.bf16.vlgmr.msra.gmra.mrb[4].mxu0 %vm537_vm5, %v398_v20  ;;  %955 = vmatmul.mubr.msk.bf16.vlgmr.msra.gmra.mrb[4].mxu1 %vm537_vm5, %v398_v20 }
 0x257   : > { %v575_v39 = vpop.f32.mrb[0].mxu0  ;;  %v618_v41 = vpop.f32.mrb[0].mxu1 }
 0x258   : > { %v576_v40 = vadd.f32 %v575_v39, %v420_v34  ;;  %v577_v42 = vpop.f32.mrb[1].mxu0  ;;  %v619_v44 = vadd.f32 %v618_v41, %v428_v35  ;;  %v620_v46 = vpop.f32.mrb[1].mxu1 }
 0x259   : > { %v578_v45 = vadd.f32 %v577_v42, %v424_v36  ;;  %v579_v47 = vpop.f32.mrb[2].mxu0  ;;  %v621_v51 = vadd.f32 %v620_v46, %v432_v37  ;;  %v622_v53 = vpop.f32.mrb[2].mxu1 }
 0x25a   : > { %v713_v50 = vmax.f32 %v576_v40, 0.0  ;;  %v580_v52 = vadd.f32 %v579_v47, %v420_v34  ;;  %v581_v54 = vpop.f32.mrb[3].mxu0  ;;  %v715_v56 = vmax.f32 %v619_v44, 0.0  ;;  %v623_v58 = vadd.f32 %v622_v53, %v428_v35  ;;  %v624_v60 = vpop.f32.mrb[3].mxu1 }
 0x25b   : > { %v714_v57 = vmax.f32 %v578_v45, 0.0  ;;  %v582_v59 = vadd.f32 %v581_v54, %v424_v36  ;;  %v716_v61 = vmax.f32 %v621_v51, 0.0  ;;  %v625_v63 = vadd.f32 %v624_v60, %v432_v37 }
 0x25c   : > { %v721_v62 = vmax.f32 %v580_v52, 0.0  ;;  %v723_v2 = vmax.f32 %v623_v58, 0.0 }
 0x25d   : > { %v970_v1 = vpack.c.bf16 %v714_v57, %v713_v50  ;;  %v722_v3 = vmax.f32 %v582_v59, 0.0  ;;  %v971_v5 = vpack.c.bf16 %v716_v61, %v715_v56  ;;  %v724_v6 = vmax.f32 %v625_v63, 0.0 }
 0x25f   : > { %777 = vst [vmem:[%s1177_s25] sm:$0xff] %v970_v1  ;;  %v974_v8 = vpack.c.bf16 %v722_v3, %v721_v62  ;;  %v661_v9 = vpop.f32.mrb[4].mxu0  ;;  %778 = vst [vmem:[%s1177_s25 + $0x8] sm:$0xff] %v971_v5  ;;  %v975_v10 = vpack.c.bf16 %v724_v6, %v723_v2  ;;  %v704_v12 = vpop.f32.mrb[4].mxu1 }
 0x260   : > { %v662_v11 = vadd.f32 %v661_v9, %v436_v55  ;;  %v663_v13 = vpop.f32.mrb[5].mxu0  ;;  %v705_v14 = vadd.f32 %v704_v12, %v444_v0  ;;  %v706_v16 = vpop.f32.mrb[5].mxu1 }
 0x261   : > { %781 = vst [vmem:[%s1177_s25 + $0x20] sm:$0xff] %v974_v8  ;;  %v664_v15 = vadd.f32 %v663_v13, %v440_v4  ;;  %v665_v17 = vpop.f32.mrb[6].mxu0  ;;  %782 = vst [vmem:[%s1177_s25 + $0x28] sm:$0xff] %v975_v10  ;;  %v707_v19 = vadd.f32 %v706_v16, %v448_v7  ;;  %v708_v21 = vpop.f32.mrb[6].mxu1 }
 0x262   : > { %v717_v18 = vmax.f32 %v662_v11, 0.0  ;;  %v666_v20 = vadd.f32 %v665_v17, %v436_v55  ;;  %v667_v22 = vpop.f32.mrb[7].mxu0  ;;  %v719_v23 = vmax.f32 %v705_v14, 0.0  ;;  %v709_v25 = vadd.f32 %v708_v21, %v444_v0  ;;  %v710_v27 = vpop.f32.mrb[7].mxu1 }
 0x263   : > { %v718_v24 = vmax.f32 %v664_v15, 0.0  ;;  %v668_v26 = vadd.f32 %v667_v22, %v440_v4  ;;  %v720_v28 = vmax.f32 %v707_v19, 0.0  ;;  %v711_v30 = vadd.f32 %v710_v27, %v448_v7  ;;  %791 = sbr.rel (!%p1134_p6) target bundleno = 626 (0x272), region = 71 }
 0x264   : > { %v725_v29 = vmax.f32 %v666_v20, 0.0  ;;  %v727_v32 = vmax.f32 %v709_v25, 0.0 }
 0x265   : > { %v972_v31 = vpack.c.bf16 %v718_v24, %v717_v18  ;;  %v726_v33 = vmax.f32 %v668_v26, 0.0  ;;  %v973_v34 = vpack.c.bf16 %v720_v28, %v719_v23  ;;  %v728_v35 = vmax.f32 %v711_v30, 0.0 }
 0x266   : > { %v810_v38 = vld [vmem:[%s1177_s25] sm:$0xff] (%p1134_p6)  ;;  %v812_v39 = vld [vmem:[%s1177_s25 + $0x8] sm:$0xff] (%p1134_p6) }
 0x267   : > { %779 = vst [vmem:[%s1177_s25 + $0x10] sm:$0xff] %v972_v31  ;;  %v976_v36 = vpack.c.bf16 %v726_v33, %v725_v29  ;;  %780 = vst [vmem:[%s1177_s25 + $0x18] sm:$0xff] %v973_v34  ;;  %v977_v37 = vpack.c.bf16 %v728_v35, %v727_v32 }
 0x268   : > { %v818_v42 = vld [vmem:[%s1177_s25 + $0x20] sm:$0xff] (%p1134_p6)  ;;  %v820_v43 = vld [vmem:[%s1177_s25 + $0x28] sm:$0xff] (%p1134_p6)  ;;  %811 = vst [vmem:[%s797_s15] sm:$0xff] (%p1134_p6), %v810_v38  ;;  %813 = vst [vmem:[%s797_s15 + $0x8] sm:$0xff] (%p1134_p6), %v812_v39 }
 0x269   : > { %783 = vst [vmem:[%s1177_s25 + $0x30] sm:$0xff] %v976_v36  ;;  %784 = vst [vmem:[%s1177_s25 + $0x38] sm:$0xff] %v977_v37 }
 0x26a   : > { %819 = vst [vmem:[%s797_s15 + $0x40] sm:$0xff] %v818_v42  ;;  %821 = vst [vmem:[%s797_s15 + $0x48] sm:$0xff] %v820_v43 }
 0x26e   : > { %v814_v40 = vld [vmem:[%s1177_s25 + $0x10] sm:$0xff]  ;;  %v816_v41 = vld [vmem:[%s1177_s25 + $0x18] sm:$0xff] }
 0x26f   : > { %815 = vst [vmem:[%s797_s15 + $0x10] sm:$0xff] %v814_v40  ;;  %817 = vst [vmem:[%s797_s15 + $0x18] sm:$0xff] %v816_v41 }
 0x270   : > { %v822_v44 = vld [vmem:[%s1177_s25 + $0x30] sm:$0xff]  ;;  %v824_v45 = vld [vmem:[%s1177_s25 + $0x38] sm:$0xff] }
 0x271   : > { %823 = vst [vmem:[%s797_s15 + $0x50] sm:$0xff] %v822_v44  ;;  %825 = vst [vmem:[%s797_s15 + $0x58] sm:$0xff] %v824_v45 }
 0x272 PF: > { %s15_s22 = sadd.s32 1, %s1066_s22   ;;  %s1266_s18 = smov %s1054_s19 }
 0x273   : > { %p12_p13 = scmp.ge.s32.totalorder %s15_s22, 4   ;;  %s1267_s19 = smov %s1139_s28 }
 0x274   : > { %s1268_s20 = smov %s1062_s21  ;;  %s1269_s21 = smov %s1271_s23 }
 0x275   :  { %14 = sbr.rel (!%p12_p13) target bundleno = 3 (0x3), region = 131 }

// kernel: decoder_forward.19
= control target key start
LH: loop header
LB: loop body
LE: loop exit
PB: predicated region body
PF: predicated region fallthrough
CT: control target
= control target key end

     0   :  { %s1234_s24 = smov 0   ;;  %s1367_s0 = inlined_call_operand.vmem [shape: bf16[2,8,32], index: 0, kind: input, shape index: {}]   ;;  %s1368_s1 = inlined_call_operand.vmem [shape: bf16[2,8,64], index: 1, kind: input, shape index: {}]   ;;  %s1369_s2 = inlined_call_operand.vmem [shape: f32[2,8,1], index: 2, kind: input, shape index: {}]   ;;  %s1370_s3 = inlined_call_operand.vmem [shape: f32[2,1,8], index: 3, kind: input, shape index: {}]   ;;  %s1371_s4 = inlined_call_operand.vmem [shape: bf16[32,32], index: 4, kind: input, shape index: {}]   ;;  %s1372_s5 = inlined_call_operand.vmem [shape: f32[1,32], index: 5, kind: input, shape index: {}]   ;;  %s1373_s6 = inlined_call_operand.vmem [shape: f32[2,8,32], index: 6, kind: input, shape index: {}]   ;;  %s1374_s7 = inlined_call_operand.vmem [shape: f32[2,8,32], index: 7, kind: output, shape index: {}]  }
   0x1 LB: > { %s1019_s25 = sadd.s32 4294967295, %s1179_s24   ;;  %p1023_p0 = scmp.ge.s32.totalorder %s1179_s24, 1  ;;  %s1179_s24 = sphi %s1234_s24, %s17_s24  }
   0x2   : > { %p271_p1 = scmp.lt.s32.totalorder %s1179_s24, 3 }
   0x4   : > { %p272_p2 = pnand %p1023_p0, %p271_p1 }
   0x5   : > { %p316_p3 = scmp.lt.s32.totalorder (!%p272_p2), %s1019_s25, 1  ;;  %v1181_v0 = vmov (!%p272_p2), 0.0   ;;  %vm1182_vm0 = vmmov (!%p272_p2), 0   ;;  %v1183_v1 = vmov (!%p272_p2), 0   ;;  %vm357_vm1 = vcmask (!%p272_p2), 64512   ;;  %s1184_s14 = smov (!%p272_p2), 96  }
   0x6   : > { %275 = sbr.rel (%p272_p2) target bundleno = 1710 (0x6ae), region = 48  ;;  %1070 = vmatprep.subr.bf16.mxu0 (!%p272_p2), %v1181_v0  ;;  %1072 = vmatprep.mubr.msk.bf16.mxu0 (!%p272_p2), %vm1182_vm0, %v1181_v0  ;;  %s1185_s15 = smov (!%p272_p2), 120   ;;  %vm426_vm3 = vcmask (!%p272_p2), 1043456   ;;  %vm595_vm4 = vcmask (!%p272_p2), 130112   ;;  %vm721_vm5 = vcmask (!%p272_p2), 195712   ;;  %vm847_vm6 = vcmask (!%p272_p2), 261312  }
   0x7   : > { %1147 = vset.pattern.permute.xlu0 (!%p272_p2), %v1183_v1  ;;  %1076 = vmatprep.subr.bf16.mxu1 (!%p272_p2), %v1181_v0  ;;  %s1186_s19 = smov (!%p272_p2), 104   ;;  %s1187_s20 = smov (!%p272_p2), 112   ;;  %vm874_vm7 = vcmask (!%p272_p2), 261120  }
   0x8   : > { %1078 = vmatprep.mubr.msk.bf16.mxu1 (!%p272_p2), %vm1182_vm0, %v1181_v0  ;;  %s1188_s21 = smov (!%p272_p2), 88   ;;  %s1189_s22 = smov (!%p272_p2), 80  }
   0x9   : > { %s1190_s23 = smov (!%p272_p2), 72   ;;  %s1192_s8 = smov (!%p272_p2), 16  }
   0xa   : > { %s1193_s9 = smov (!%p272_p2), 24  }
   0xd   : > { %s1376_s25 = smov (!%p316_p3, %s1019_s25), 1 }
   0xe   : > { %s1024_s26 = sshll.u32 %s1376_s25, 2  ;;  %s1248_s27 = sshll.u32 %s1376_s25, 3 }
   0xf   : > { %s1253_s30 = scalar_lea.vmem %s1368_s1, %s1024_s26  ;;  %s1259_s10 = scalar_lea.vmem %s1367_s0, %s1024_s26 }
  0x10   : > { %v356_v2 = vld [vmem:[%s1253_s30] sm:$0xf]  ;;  %s327_s13 = scalar_lea.vmem %s1369_s2, %s1248_s27  ;;  %s330_s18 = scalar_lea.vmem %s1370_s3, %s1376_s25 }
  0x11   : > { %v362_v3 = vsel %vm357_vm1, %v356_v2, 0  ;;  %v340_v4 = vld [vmem:[%s327_s13] sm:$0xff]  ;;  %v1031_v6 = vcombine.low %v356_v2, %v356_v2  ;;  %s1191_s25 = smov 8   ;;  %s334_s12 = scalar_lea.vmem %s1373_s6, %s1248_s27 }
  0x12   : > { %1071 = vmatpush3.bf16.xpose.msra.mxu0 %v362_v3  ;;  %344 = vperm.xlu0 %1147, %v340_v4   ;;  %v355_v5 = vld [vmem:[%s1259_s10] sm:$0xf]  ;;  %s338_s17 = scalar_lea.vmem %s1374_s7, %s1248_s27 }
  0x13   : > { %1088 = vmatprep.subr.bf16.mxu0 %v1181_v0  ;;  %421 = vrot.lane.b32.xlu1 %v1031_v6, %s1184_s14  ;;  %v1272_v7 = vld [vmem:[%s1253_s30] ss:$0 sps:$4 sm:$0xff]  }
  0x14   : > { %v1029_v8 = vld [vmem:[%s330_s18] ss:$0 sm:$0xff] }
  0x15   : > { %v1286_v18 = vld [vmem:[%s1253_s30] ss:$0 sps:$4 sm:$0xff]  }
  0x16   : > { %v1150_v26 = vld [vmem:[%s1259_s10] ss:$0 sps:$4 sm:$0xff]  }
  0x17   : > { %481 = vrot.lane.b32.xlu1 %v1272_v7, %s1185_s15  ;;  %v1295_v27 = vld [vmem:[%s1253_s30] ss:$0 sps:$4 sm:$0xff]  }
  0x18   : > { %v1153_v28 = vld [vmem:[%s1259_s10] ss:$0 sps:$4 sm:$0xff]  }
  0x19   : > { %1073 = vmatmul.mubr.msk.bf16.vlgmr.msra.gmra.mrb[0].mxu0 %vm357_vm1, %v355_v5  ;;  %v1154_v29 = vld [vmem:[%s1259_s10] ss:$0 sps:$4 sm:$0xff]  }
  0x1a   : > { %1090 = vmatprep.mubr.msk.bf16.mxu0 %vm1182_vm0, %v1181_v0 }
  0x85   : > { %v422_v19 = vpop.permute.xlu1 %421 }
  0x86   : > { %v428_v20 = vsel %vm426_vm3, %v422_v19, 0 }
  0x87   : > { %1077 = vmatpush3.bf16.msra.mxu1 %v428_v20 }
  0x88   : > { %1082 = vmatprep.subr.bf16.mxu1 %v1181_v0 }
  0x89   : > { %v482_v30 = vpop.permute.xlu1 %481 }
  0x8a   : > { %v487_v36 = vsel %vm357_vm1, %v482_v30, 0 }
  0x91   : > { %v345_v9 = vpop.permute.xlu0 %344 }
  0x92   : > { %v1279_v10 = vmul.f32 %v1029_v8, %v345_v9 }
  0x94   : > { %vm354_vm2 = vcmp.eq.f32.partialorder %v1279_v10, 0.0 }
  0xec   : > { %v398_v11 = vpop.f32.mrb[0].mxu0 }
  0xed   : > { %v404_v12 = vmul.f32 0.35355338, %v398_v11  ;;  %v1074_v13 = vpop.f32.mrb[1].mxu0 }
  0xee   : > { %v401_v14 = vpop.f32.mrb[2].mxu0 }
  0xef   : > { %v1075_v15 = vpop.f32.mrb[3].mxu0  ;;  %v405_v16 = vsel %vm354_vm2, -1e+09, %v404_v12 }
  0xf0   : > { %v406_v17 = vsel %vm357_vm1, %v405_v16, -inf }
  0xf1   : > { %407 = vmax.xlane.f32.xlu0 %v406_v17 }
 0x107   : > { %733 = vrot.lane.b32.xlu0 %v1286_v18, %s1186_s19 }
 0x17e   : > { %v408_v21 = vpop.xlane.xlu0 %407 }
 0x17f   : > { %v409_v22 = vsub.f32 %v405_v16, %v408_v21 }
 0x181   : > { %v410_v23 = vmul.f32 1.442695, %v409_v22 }
 0x182   : > { %v734_v39 = vpop.permute.xlu0 %733 }
 0x183   : > { %1157 = vpow2.f32 %v410_v23  ;;  %v739_v41 = vsel %vm357_vm1, %v734_v39, 0 }
 0x18d   : > { %v1158_v24 = vpop.eup %1157 }
 0x18e   : > { %v412_v25 = vsel %vm357_vm1, %v1158_v24, 0.0 }
 0x18f   : > { %413 = vadd.xlane.f32.xlu1 %v412_v25 }
 0x1a0   : > { %476 = vrot.lane.b32.xlu1 %v1150_v26, %s1185_s15 }
 0x1a4   : > { %607 = vrot.lane.b32.xlu1 %v1295_v27, %s1187_s20 }
 0x1a8   : > { %602 = vrot.lane.b32.xlu1 %v1153_v28, %s1187_s20 }
 0x1ac   : > { %728 = vrot.lane.b32.xlu1 %v1154_v29, %s1186_s19 }
 0x21c   : > { %v414_v31 = vpop.xlane.xlu1 %413 }
 0x21d   : > { %1159 = vrcp.f32 %v414_v31 }
 0x220   : > { %v477_v34 = vpop.permute.xlu1 %476 }
 0x224   : > { %v608_v37 = vpop.permute.xlu1 %607 }
 0x225   : > { %v613_v38 = vsel %vm357_vm1, %v608_v37, 0 }
 0x227   : > { %v1160_v32 = vpop.eup %1159 }
 0x228   : > { %v416_v33 = vmul.f32 %v1160_v32, %v1158_v24  ;;  %v603_v40 = vpop.permute.xlu1 %602 }
 0x22a   : > { %v417_v35 = vpack.c.bf16 %v416_v33, %v416_v33 }
 0x22c   : > { %1079 = vmatmul.mubr.msk.bf16.vlgmr.msra.gmra.mrb[0].mxu1 %vm357_vm1, %v417_v35  ;;  %v729_v42 = vpop.permute.xlu1 %728 }
 0x22d   : > { %1083 = vmatpush3.bf16.xpose.msra.mxu1 %v487_v36  ;;  %1084 = vmatprep.mubr.msk.bf16.mxu1 %vm1182_vm0, %v1181_v0 }
 0x22e   : > { %1094 = vmatprep.subr.bf16.mxu1 %v1181_v0 }
 0x234   : > { %1085 = vmatmul.mubr.msk.bf16.vlgmr.msra.gmra.mrb[4].mxu1 %vm357_vm1, %v477_v34 }
 0x235   : > { %1095 = vmatpush3.bf16.xpose.msra.mxu1 %v613_v38  ;;  %1096 = vmatprep.mubr.msk.bf16.mxu1 %vm1182_vm0, %v1181_v0 }
 0x236   : > { %1106 = vmatprep.subr.bf16.mxu1 %v1181_v0 }
 0x23c   : > { %1097 = vmatmul.mubr.msk.bf16.vlgmr.msra.gmra.mrb[8].mxu1 %vm357_vm1, %v603_v40 }
 0x23d   : > { %1107 = vmatpush3.bf16.xpose.msra.mxu1 %v739_v41  ;;  %1108 = vmatprep.mubr.msk.bf16.mxu1 %vm1182_vm0, %v1181_v0 }
 0x23e   : > { %1118 = vmatprep.subr.bf16.mxu1 %v1181_v0 }
 0x244   : > { %1109 = vmatmul.mubr.msk.bf16.vlgmr.msra.gmra.mrb[12].mxu1 %vm357_vm1, %v729_v42  ;;  %v1155_v42 = vld [vmem:[%s1371_s4] sm:$0xff]  }
 0x245   : > { %1122 = vmatprep.mubr.msk.bf16.mxu1 %vm1182_vm0, %v1181_v0  ;;  %1119 = vmatpush3.bf16.msra.mxu1 %v1155_v42 }
 0x246   : > { %1120 = vmatprep.subr.bf16.mxu1 %v1181_v0 }
 0x2ff   : > { %v464_v43 = vpop.f32.mrb[0].mxu1 }
 0x300   : > { %470 = vst.msk [vmem:[#allocation2] sm:$0xff] %vm357_vm1, %v464_v43  ;;  %v1080_v44 = vpop.f32.mrb[1].mxu1  ;;  %v1156_v43 = vld [vmem:[%s1371_s4 + $0x8] sm:$0xff]  }
 0x301   : > { %v467_v45 = vpop.f32.mrb[2].mxu1  ;;  %1121 = vmatpush3.bf16.msra.mxu1 %v1156_v43 }
 0x302   : > { %v1081_v46 = vpop.f32.mrb[3].mxu1 }
 0x307   : > { %v523_v47 = vpop.f32.mrb[4].mxu1 }
 0x308   : > { %v529_v48 = vmul.f32 0.35355338, %v523_v47  ;;  %v1086_v49 = vpop.f32.mrb[5].mxu1 }
 0x309   : > { %v526_v50 = vpop.f32.mrb[6].mxu1 }
 0x30a   : > { %v1087_v51 = vpop.f32.mrb[7].mxu1  ;;  %v530_v52 = vsel %vm354_vm2, -1e+09, %v529_v48 }
 0x30b   : > { %v531_v53 = vsel %vm357_vm1, %v530_v52, -inf }
 0x30c   : > { %532 = vmax.xlane.f32.xlu1 %v531_v53 }
 0x30f   : > { %v649_v54 = vpop.f32.mrb[8].mxu1 }
 0x310   : > { %v655_v55 = vmul.f32 0.35355338, %v649_v54  ;;  %v1098_v56 = vpop.f32.mrb[9].mxu1 }
 0x311   : > { %v652_v57 = vpop.f32.mrb[10].mxu1  ;;  %v1045_v56 = vld [vmem:[%s1372_s5] ss:$0 sm:$0xff] }
 0x312   : > { %v656_v58 = vsel %vm354_vm2, -1e+09, %v655_v55  ;;  %v1099_v59 = vpop.f32.mrb[11].mxu1 }
 0x313   : > { %v657_v60 = vsel %vm357_vm1, %v656_v58, -inf }
 0x314   : > { %658 = vmax.xlane.f32.xlu0 %v657_v60 }
 0x317   : > { %v775_v61 = vpop.f32.mrb[12].mxu1 }
 0x318   : > { %v781_v62 = vmul.f32 0.35355338, %v775_v61  ;;  %v1110_v63 = vpop.f32.mrb[13].mxu1 }
 0x319   : > { %v778_v1 = vpop.f32.mrb[14].mxu1 }
 0x31a   : > { %v782_v2 = vsel %vm354_vm2, -1e+09, %v781_v62  ;;  %v1111_v3 = vpop.f32.mrb[15].mxu1 }
 0x31b   : > { %v783_v4 = vsel %vm357_vm1, %v782_v2, -inf }
 0x31c   : > { %784 = vmax.xlane.f32.xlu1 %v783_v4 }
 0x399   : > { %v533_v5 = vpop.xlane.xlu1 %532 }
 0x39a   : > { %v534_v6 = vsub.f32 %v530_v52, %v533_v5 }
 0x39c   : > { %v535_v8 = vmul.f32 1.442695, %v534_v6 }
 0x39e   : > { %1161 = vpow2.f32 %v535_v8 }
 0x3a1   : > { %v659_v16 = vpop.xlane.xlu0 %658 }
 0x3a2   : > { %v660_v17 = vsub.f32 %v656_v58, %v659_v16  ;;  %v918_v58 = vld [vmem:[%s334_s12] sm:$0xff] }
 0x3a4   : > { %v661_v19 = vmul.f32 1.442695, %v660_v17 }
 0x3a8   : > { %v1162_v9 = vpop.eup %1161 }
 0x3a9   : > { %v785_v11 = vpop.xlane.xlu1 %784  ;;  %v537_v12 = vsel %vm357_vm1, %v1162_v9, 0.0 }
 0x3aa   : > { %v786_v13 = vsub.f32 %v782_v2, %v785_v11  ;;  %538 = vadd.xlane.f32.xlu1 %v537_v12 }
 0x3ac   : > { %v787_v14 = vmul.f32 1.442695, %v786_v13 }
 0x3ae   : > { %1163 = vpow2.f32 %v787_v14 }
 0x3af   : > { %1165 = vpow2.f32 %v661_v19 }
 0x3b8   : > { %v1164_v15 = vpop.eup %1163 }
 0x3b9   : > { %v789_v10 = vsel %vm357_vm1, %v1164_v15, 0.0  ;;  %v1166_v20 = vpop.eup %1165 }
 0x3ba   : > { %790 = vadd.xlane.f32.xlu0 %v789_v10  ;;  %v663_v21 = vsel %vm357_vm1, %v1166_v20, 0.0 }
 0x3bb   : > { %543 = vrot.lane.b32.xlu1 %v1272_v7, %s1188_s21 }
 0x3d0   : > { %669 = vrot.lane.b32.xlu0 %v1295_v27, %s1189_s22 }
 0x3df   : > { %664 = vadd.xlane.f32.xlu1 %v663_v21 }
 0x3f0   : > { %795 = vrot.lane.b32.xlu1 %v1286_v18, %s1190_s23 }
 0x437   : > { %v539_v22 = vpop.xlane.xlu1 %538 }
 0x438   : > { %1167 = vrcp.f32 %v539_v22 }
 0x43b   : > { %v544_v23 = vpop.permute.xlu1 %543 }
 0x43c   : > { %v549_v24 = vsel %vm426_vm3, %v544_v23, 0 }
 0x43d   : > { %1089 = vmatpush3.bf16.msra.mxu0 %v549_v24 }
 0x43e   : > { %1100 = vmatprep.subr.bf16.mxu0 %v1181_v0 }
 0x442   : > { %v1168_v7 = vpop.eup %1167 }
 0x443   : > { %v541_v25 = vmul.f32 %v1168_v7, %v1162_v9 }
 0x445   : > { %v542_v26 = vpack.c.bf16 %v541_v25, %v541_v25 }
 0x447   : > { %1091 = vmatmul.mubr.msk.bf16.vlgmr.msra.gmra.mrb[4].mxu0 %vm357_vm1, %v542_v26  ;;  %v791_v27 = vpop.xlane.xlu0 %790 }
 0x448   : > { %1102 = vmatprep.mubr.msk.bf16.mxu0 %vm1182_vm0, %v1181_v0 }
 0x44b   : > { %v670_v28 = vpop.permute.xlu0 %669 }
 0x44c   : > { %v675_v18 = vsel %vm426_vm3, %v670_v28, 0 }
 0x44d   : > { %1101 = vmatpush3.bf16.msra.mxu0 %v675_v18 }
 0x44e   : > { %1112 = vmatprep.subr.bf16.mxu0 %v1181_v0 }
 0x46c   : > { %v665_v29 = vpop.xlane.xlu1 %664 }
 0x46d   : > { %1169 = vrcp.f32 %v665_v29 }
 0x46e   : > { %1171 = vrcp.f32 %v791_v27 }
 0x470   : > { %v796_v31 = vpop.permute.xlu1 %795 }
 0x471   : > { %v801_v33 = vsel %vm426_vm3, %v796_v31, 0 }
 0x477   : > { %v1170_v30 = vpop.eup %1169 }
 0x478   : > { %v667_v32 = vmul.f32 %v1170_v30, %v1166_v20  ;;  %v1172_v35 = vpop.eup %1171 }
 0x479   : > { %v793_v36 = vmul.f32 %v1172_v35, %v1164_v15 }
 0x47a   : > { %v668_v34 = vpack.c.bf16 %v667_v32, %v667_v32 }
 0x47b   : > { %v794_v37 = vpack.c.bf16 %v793_v36, %v793_v36 }
 0x47c   : > { %1103 = vmatmul.mubr.msk.bf16.vlgmr.msra.gmra.mrb[8].mxu0 %vm357_vm1, %v668_v34 }
 0x47d   : > { %1113 = vmatpush3.bf16.msra.mxu0 %v801_v33  ;;  %1114 = vmatprep.mubr.msk.bf16.mxu0 %vm1182_vm0, %v1181_v0 }
 0x484   : > { %1115 = vmatmul.mubr.msk.bf16.vlgmr.msra.gmra.mrb[12].mxu0 %vm357_vm1, %v794_v37 }
 0x51a   : > { %v585_v38 = vpop.f32.mrb[4].mxu0 }
 0x51b   : > { %592 = vrot.lane.b32.xlu1 %v585_v38, %s1191_s25  ;;  %v1092_v39 = vpop.f32.mrb[5].mxu0 }
 0x51c   : > { %v588_v40 = vpop.f32.mrb[6].mxu0 }
 0x51d   : > { %v1093_v41 = vpop.f32.mrb[7].mxu0 }
 0x54f   : > { %v711_v44 = vpop.f32.mrb[8].mxu0 }
 0x550   : > { %718 = vrot.lane.b32.xlu0 %v711_v44, %s1192_s8  ;;  %v1104_v45 = vpop.f32.mrb[9].mxu0 }
 0x551   : > { %v714_v46 = vpop.f32.mrb[10].mxu0 }
 0x552   : > { %v1105_v47 = vpop.f32.mrb[11].mxu0 }
 0x557   : > { %v837_v48 = vpop.f32.mrb[12].mxu0 }
 0x558   : > { %844 = vrot.lane.b32.xlu1 %v837_v48, %s1193_s9  ;;  %v1116_v49 = vpop.f32.mrb[13].mxu0 }
 0x559   : > { %v840_v50 = vpop.f32.mrb[14].mxu0 }
 0x55a   : > { %v1117_v51 = vpop.f32.mrb[15].mxu0 }
 0x58d   : > { %v593_v52 = vpop.permute.xlu1 %592 }
 0x58e   : > { %596 = vst.msk [vmem:[#allocation2] sm:$0xff] %vm595_vm4, %v593_v52 }
 0x5c2   : > { %v719_v0 = vpop.permute.xlu0 %718 }
 0x5c3   : > { %722 = vst.msk [vmem:[#allocation2] sm:$0xff] %vm721_vm5, %v719_v0 }
 0x5ca   : > { %v845_v53 = vpop.permute.xlu1 %844 }
 0x5cb   : > { %848 = vst.msk [vmem:[#allocation2] sm:$0xff] %vm847_vm6, %v845_v53 }
 0x5d2   : > { %v849_v54 = vld [vmem:[#allocation2] sm:$0xff] }
 0x5d3   : > { %v850_v55 = vpack.c.bf16 %v849_v54, %v849_v54 }
 0x5d5   : > { %1123 = vmatmul.mubr.msk.bf16.vlgmr.msra.gmra.mrb[16].mxu1 %vm874_vm7, %v850_v55 }
 0x6a8   : > { %v912_v57 = vpop.f32.mrb[16].mxu1 }
 0x6a9   : > { %v913_v59 = vadd.f32 %v1045_v56, %v912_v57  ;;  %v1124_v60 = vpop.f32.mrb[17].mxu1 }
 0x6aa   : > { %v915_v61 = vpop.f32.mrb[18].mxu1 }
 0x6ab   : > { %v919_v62 = vadd.f32 %v918_v58, %v913_v59  ;;  %v1125_v63 = vpop.f32.mrb[19].mxu1 }
 0x6ad   : > { %920 = vst.msk [vmem:[%s338_s17] sm:$0xff] %vm874_vm7, %v919_v62 }
 0x6ae PF: > { %s17_s24 = sadd.s32 1, %s1179_s24  }
 0x6af   : > { %p14_p4 = scmp.ge.s32.totalorder %s17_s24, 4  }
 0x6b1   :  { %16 = sbr.rel (!%p14_p4) target bundleno = 1 (0x1), region = 90 }

// kernel: decoder_forward.21
= control target key start
LH: loop header
LB: loop body
LE: loop exit
PB: predicated region body
PF: predicated region fallthrough
CT: control target
= control target key end

     0   :  { %s1587_s15 = smov 0   ;;  %s1589_s16 = smov 0   ;;  %s1749_s0 = inlined_call_operand.vmem [shape: bf16[16,2048], index: 0, kind: input, shape index: {}]   ;;  %s1750_s1 = inlined_call_operand.vmem [shape: bf16[2048,32], index: 1, kind: input, shape index: {}]   ;;  %s1751_s2 = inlined_call_operand.vmem [shape: f32[1,32], index: 2, kind: input, shape index: {}]   ;;  %s1752_s3 = inlined_call_operand.vmem [shape: f32[16,32], index: 3, kind: input, shape index: {}]   ;;  %s1753_s4 = inlined_call_operand.vmem [shape: f32[16,32], index: 4, kind: output, shape index: {}]  }
   0x1   :  { %s1591_s17 = smov 0   ;;  %s1593_s18 = smov 0  }
   0x2   :  { %s1595_s19 = smov 0  }
   0x3 LB: > { %s26_s20 = sadd.s32 1, %s1555_s18  ;;  %p49_p1 = scmp.ne.s32.totalorder %s1547_s16, %s1543_s15  ;;  %s1559_s19 = sphi %s1595_s19, %s14_s19   ;;  %s1555_s18 = sphi %s1593_s18, %s1757_s18   ;;  %s1551_s17 = sphi %s1591_s17, %s1756_s17   ;;  %s1547_s16 = sphi %s1589_s16, %s1755_s16   ;;  %s1543_s15 = sphi %s1587_s15, %s1754_s15  }
   0x4   : > { %p27_p0 = scmp.ge.s32.totalorder %s26_s20, 2  ;;  %p50_p2 = scmp.eq.s32.totalorder %s1559_s19, 0 }
   0x5   : > { %s42_s22 = sadd.s32 1, %s1547_s16  ;;  %p1240_p5 = scmp.ge.s32.totalorder %s1559_s19, 2 }
   0x6   : > { %s1759_s20 = smov (%p27_p0, %s26_s20), 0  ;;  %p51_p3 = por %p50_p2, %p49_p1 }
   0x7   : > { %s38_s21 = ssub.s32 %s1555_s18, %s1759_s20  ;;  %203 = sbr.rel (%p1240_p5) target bundleno = 22 (0x16), region = 24 }
   0x8   : > { %p40_p4 = scmp.eq.s32.totalorder %s38_s21, 0 }
   0xa   : > { %s1622_s23 = scalar_select %p40_p4, %s1547_s16, %s42_s22  }
   0xe   : > { %206 = sbr.rel (!%p51_p3) target bundleno = 22 (0x16), region = 28  ;;  %s208_s24 = sand.u32 (%p51_p3), 1, %s1547_s16  }
   0xf   : > { %s1327_s25 = sshll.u32 (%p51_p3), %s1555_s18, 5  ;;  %s1241_s26 = sshll.u32 (%p51_p3), %s208_s24, 6 }
  0x10   : > { %s216_s29 = scalar_lea.vmem (%p51_p3), %s1749_s0, %s1327_s25  ;;  %s210_s30 = scalar_lea.vmem (%p51_p3), [#allocation3], %s1241_s26 }
  0x11   : > { %v229_v0 = vld [vmem:[%s216_s29] sm:$0xff] (%p51_p3)  ;;  %v231_v1 = vld [vmem:[%s216_s29 + $0x8] sm:$0xff] (%p51_p3)  ;;  %v233_v2 = vld [vmem:[%s216_s29 + $0x10] sm:$0xff] (%p51_p3) }
  0x12   : > { %230 = vst [vmem:[%s210_s30] sm:$0xff] (%p51_p3), %v229_v0  ;;  %232 = vst [vmem:[%s210_s30 + $0x8] sm:$0xff] (%p51_p3), %v231_v1  ;;  %v235_v3 = vld [vmem:[%s216_s29 + $0x18] sm:$0xff] (%p51_p3)  ;;  %v237_v4 = vld [vmem:[%s216_s29 + $0x40] sm:$0xff] (%p51_p3) }
  0x13   : > { %234 = vst [vmem:[%s210_s30 + $0x10] sm:$0xff] (%p51_p3), %v233_v2  ;;  %v239_v5 = vld [vmem:[%s216_s29 + $0x48] sm:$0xff] (%p51_p3)  ;;  %236 = vst [vmem:[%s210_s30 + $0x18] sm:$0xff] (%p51_p3), %v235_v3  ;;  %v241_v6 = vld [vmem:[%s216_s29 + $0x50] sm:$0xff] (%p51_p3) }
  0x14   : > { %238 = vst [vmem:[%s210_s30 + $0x20] sm:$0xff] (%p51_p3), %v237_v4  ;;  %240 = vst [vmem:[%s210_s30 + $0x28] sm:$0xff] (%p51_p3), %v239_v5  ;;  %v243_v7 = vld [vmem:[%s216_s29 + $0x58] sm:$0xff] (%p51_p3) }
  0x15   : > { %242 = vst [vmem:[%s210_s30 + $0x30] sm:$0xff] %v241_v6  ;;  %244 = vst [vmem:[%s210_s30 + $0x38] sm:$0xff] %v243_v7 }
  0x16 PF: > { %p1244_p6 = scmp.ge.s32.totalorder %s1559_s19, 1  ;;  %p261_p7 = scmp.lt.s32.totalorder %s1559_s19, 3 }
  0x18   : > { %p262_p8 = pnand %p1244_p6, %p261_p7 }
  0x19   : > { %s268_s5 = sand.u32 (!%p262_p8), 1, %s1543_s15   ;;  %s1246_s6 = sshll.u32 (!%p262_p8), %s1551_s17, 7 }
  0x1a   : > { %265 = sbr.rel (%p262_p8) target bundleno = 342 (0x156), region = 55  ;;  %s1245_s7 = sshll.u32 (!%p262_p8), %s268_s5, 6 }
  0x1b   : > { %p318_p9 = scmp.lt.s32.totalorder (!%p262_p8), %s1246_s6, 255  ;;  %s1639_s12 = scalar_lea.vmem (!%p262_p8), [#allocation3], %s1245_s7 }
  0x1c   : > { %p1248_p10 = scmp.ne.s32.totalorder (!%p262_p8), %s1551_s17, 0 }
  0x21   : > { %s1761_s6 = smov (!%p318_p9, %s1246_s6), 255  ;;  %351 = sbr.rel (%p1248_p10) target bundleno = 40 (0x28), region = 63 }
  0x22   : > { %s1247_s8 = sshll.u32 %s1761_s6, 2  ;;  %vm352_vm0 = vcmask (!%p1248_p10), 261120   ;;  %v1561_v8 = vmov (!%p1248_p10), 0.0  }
  0x23   : > { %s1637_s11 = scalar_lea.vmem %s1750_s1, %s1247_s8  ;;  %353 = vst.msk [vmem:[#allocation2] sm:$0xff] (!%p1248_p10), %vm352_vm0, %v1561_v8  ;;  %354 = vst.msk [vmem:[#allocation2 + $0x8] sm:$0xff] (!%p1248_p10), %vm352_vm0, %v1561_v8 }
  0x28 PF: > { %v1457_v9 = vld [vmem:[%s1637_s11 + $0x40] sm:$0xff]   ;;  %v1461_v13 = vld [vmem:[%s1637_s11 + $0x48] sm:$0xff]   ;;  %v1465_v17 = vld [vmem:[%s1637_s11 + $0x50] sm:$0xff]   ;;  %vm1083_vm1 = vcmask 261120   ;;  %p1321_p11 = scmp.ne.s32.totalorder %s1551_s17, 1 }
  0x29   : > { %v1458_v10 = vld [vmem:[%s1637_s11 + $0xc0] sm:$0xff]   ;;  %1328 = vmatprep.subr.bf16.mxu0 %v1457_v9  ;;  %v1462_v14 = vld [vmem:[%s1637_s11 + $0xc8] sm:$0xff]   ;;  %v1466_v18 = vld [vmem:[%s1637_s11 + $0xd0] sm:$0xff]  }
  0x2a   : > { %v1459_v11 = vld [vmem:[%s1637_s11] sm:$0xff]   ;;  %1350 = vmatprep.subr.bf16.mxu1 %v1458_v10  ;;  %v1463_v15 = vld [vmem:[%s1637_s11 + $0x8] sm:$0xff]   ;;  %v1467_v19 = vld [vmem:[%s1637_s11 + $0x10] sm:$0xff]  }
  0x2b   : > { %v1460_v12 = vld [vmem:[%s1637_s11 + $0x80] sm:$0xff]   ;;  %1329 = vmatpush3.bf16.msra.mxu0 %v1459_v11  ;;  %v1464_v16 = vld [vmem:[%s1637_s11 + $0x88] sm:$0xff]   ;;  %v1468_v20 = vld [vmem:[%s1637_s11 + $0x90] sm:$0xff]  }
  0x2c   : > { %1351 = vmatpush3.bf16.msra.mxu1 %v1460_v12  ;;  %1330 = vmatprep.subr.bf16.mxu0 %v1461_v13  ;;  %v1469_v21 = vld [vmem:[%s1637_s11 + $0x58] sm:$0xff]   ;;  %v1473_v25 = vld [vmem:[%s1637_s11 + $0x60] sm:$0xff]   ;;  %v1477_v29 = vld [vmem:[%s1637_s11 + $0x68] sm:$0xff]  }
  0x2d   : > { %1352 = vmatprep.subr.bf16.mxu1 %v1462_v14  ;;  %v1470_v22 = vld [vmem:[%s1637_s11 + $0xd8] sm:$0xff]   ;;  %v1474_v26 = vld [vmem:[%s1637_s11 + $0xe0] sm:$0xff]   ;;  %v1478_v30 = vld [vmem:[%s1637_s11 + $0xe8] sm:$0xff]  }
  0x2e   : > { %v1471_v23 = vld [vmem:[%s1637_s11 + $0x18] sm:$0xff]   ;;  %v1475_v27 = vld [vmem:[%s1637_s11 + $0x20] sm:$0xff]   ;;  %v1479_v31 = vld [vmem:[%s1637_s11 + $0x28] sm:$0xff]  }
  0x2f   : > { %1331 = vmatpush3.bf16.msra.mxu0 %v1463_v15  ;;  %v1472_v24 = vld [vmem:[%s1637_s11 + $0x98] sm:$0xff]   ;;  %v1476_v28 = vld [vmem:[%s1637_s11 + $0xa0] sm:$0xff]   ;;  %v1480_v32 = vld [vmem:[%s1637_s11 + $0xa8] sm:$0xff]  }
  0x30   : > { %1353 = vmatpush3.bf16.msra.mxu1 %v1464_v16  ;;  %1332 = vmatprep.subr.bf16.mxu0 %v1465_v17  ;;  %v1481_v33 = vld [vmem:[%s1637_s11 + $0x70] sm:$0xff]   ;;  %v1485_v37 = vld [vmem:[%s1637_s11 + $0x78] sm:$0xff]   ;;  %v1489_v49 = vld [vmem:[%s1637_s11 + $0x140] sm:$0xff]  }
  0x31   : > { %1354 = vmatprep.subr.bf16.mxu1 %v1466_v18  ;;  %v1482_v34 = vld [vmem:[%s1637_s11 + $0xf0] sm:$0xff]   ;;  %v1486_v38 = vld [vmem:[%s1637_s11 + $0xf8] sm:$0xff]   ;;  %v1490_v50 = vld [vmem:[%s1637_s11 + $0x1c0] sm:$0xff]  }
  0x32   : > { %v1483_v35 = vld [vmem:[%s1637_s11 + $0x30] sm:$0xff]   ;;  %v1487_v39 = vld [vmem:[%s1637_s11 + $0x38] sm:$0xff]   ;;  %v1491_v51 = vld [vmem:[%s1637_s11 + $0x100] sm:$0xff]  }
  0x33   : > { %1333 = vmatpush3.bf16.msra.mxu0 %v1467_v19  ;;  %v1484_v36 = vld [vmem:[%s1637_s11 + $0xb0] sm:$0xff]   ;;  %v1488_v40 = vld [vmem:[%s1637_s11 + $0xb8] sm:$0xff]   ;;  %v1492_v52 = vld [vmem:[%s1637_s11 + $0x180] sm:$0xff]  }
  0x34   : > { %1355 = vmatpush3.bf16.msra.mxu1 %v1468_v20  ;;  %1334 = vmatprep.subr.bf16.mxu0 %v1469_v21  ;;  %v357_v41 = vld [vmem:[%s1639_s12] sm:$0xff]  ;;  %v358_v43 = vld [vmem:[%s1639_s12 + $0x8] sm:$0xff]  ;;  %v1493_v53 = vld [vmem:[%s1637_s11 + $0x148] sm:$0xff]  }
  0x35   : > { %1356 = vmatprep.subr.bf16.mxu1 %v1470_v22  ;;  %v361_v42 = vld [vmem:[%s1639_s12 + $0x20] sm:$0xff]  ;;  %v362_v46 = vld [vmem:[%s1639_s12 + $0x28] sm:$0xff]  ;;  %v1494_v54 = vld [vmem:[%s1637_s11 + $0x1c8] sm:$0xff]  }
  0x36   : > { %v1249_v44 = vcombine.low %v357_v41, %v361_v42  ;;  %v1250_v45 = vcombine.high %v357_v41, %v361_v42  ;;  %v1251_v47 = vcombine.low %v358_v43, %v362_v46  ;;  %v1252_v48 = vcombine.high %v358_v43, %v362_v46  ;;  %v1495_v55 = vld [vmem:[%s1637_s11 + $0x108] sm:$0xff]   ;;  %v1497_v57 = vld [vmem:[%s1637_s11 + $0x150] sm:$0xff]   ;;  %v1501_v61 = vld [vmem:[%s1637_s11 + $0x158] sm:$0xff]  }
  0x37   : > { %1335 = vmatpush3.bf16.msra.mxu0 %v1471_v23  ;;  %v1496_v56 = vld [vmem:[%s1637_s11 + $0x188] sm:$0xff]   ;;  %v1498_v58 = vld [vmem:[%s1637_s11 + $0x1d0] sm:$0xff]   ;;  %v1502_v62 = vld [vmem:[%s1637_s11 + $0x1d8] sm:$0xff]  }
  0x38   : > { %1357 = vmatpush3.bf16.msra.mxu1 %v1472_v24  ;;  %1336 = vmatprep.subr.bf16.mxu0 %v1473_v25  ;;  %v1499_v59 = vld [vmem:[%s1637_s11 + $0x110] sm:$0xff]   ;;  %v1503_v63 = vld [vmem:[%s1637_s11 + $0x118] sm:$0xff]   ;;  %v1505_v1 = vld [vmem:[%s1637_s11 + $0x160] sm:$0xff]  }
  0x39   : > { %1358 = vmatprep.subr.bf16.mxu1 %v1474_v26  ;;  %949 = vmatprep.mubr.bf16.mxu0 %v1250_v45  ;;  %v1500_v60 = vld [vmem:[%s1637_s11 + $0x190] sm:$0xff]   ;;  %v1504_v0 = vld [vmem:[%s1637_s11 + $0x198] sm:$0xff]   ;;  %v1506_v2 = vld [vmem:[%s1637_s11 + $0x1e0] sm:$0xff]  }
  0x3a   : > { %990 = vmatprep.mubr.bf16.mxu1 %v1252_v48  ;;  %v1507_v3 = vld [vmem:[%s1637_s11 + $0x120] sm:$0xff]   ;;  %v1509_v5 = vld [vmem:[%s1637_s11 + $0x168] sm:$0xff]   ;;  %v1513_v9 = vld [vmem:[%s1637_s11 + $0x170] sm:$0xff]  }
  0x3b   : > { %1337 = vmatpush3.bf16.msra.mxu0 %v1475_v27  ;;  %v1508_v4 = vld [vmem:[%s1637_s11 + $0x1a0] sm:$0xff]   ;;  %v1510_v6 = vld [vmem:[%s1637_s11 + $0x1e8] sm:$0xff]   ;;  %v1514_v10 = vld [vmem:[%s1637_s11 + $0x1f0] sm:$0xff]  }
  0x3c   : > { %1359 = vmatpush3.bf16.msra.mxu1 %v1476_v28  ;;  %1338 = vmatprep.subr.bf16.mxu0 %v1477_v29  ;;  %v1511_v7 = vld [vmem:[%s1637_s11 + $0x128] sm:$0xff]   ;;  %v1515_v11 = vld [vmem:[%s1637_s11 + $0x130] sm:$0xff]   ;;  %v1517_v13 = vld [vmem:[%s1637_s11 + $0x178] sm:$0xff]  }
  0x3d   : > { %1360 = vmatprep.subr.bf16.mxu1 %v1478_v30  ;;  %v1512_v8 = vld [vmem:[%s1637_s11 + $0x1a8] sm:$0xff]   ;;  %v1516_v12 = vld [vmem:[%s1637_s11 + $0x1b0] sm:$0xff]   ;;  %v1518_v14 = vld [vmem:[%s1637_s11 + $0x1f8] sm:$0xff]  }
  0x3e   : > { %v1519_v15 = vld [vmem:[%s1637_s11 + $0x138] sm:$0xff]   ;;  %v359_v17 = vld [vmem:[%s1639_s12 + $0x10] sm:$0xff]  ;;  %v360_v21 = vld [vmem:[%s1639_s12 + $0x18] sm:$0xff] }
  0x3f   : > { %1339 = vmatpush3.bf16.msra.mxu0 %v1479_v31  ;;  %v1520_v16 = vld [vmem:[%s1637_s11 + $0x1b8] sm:$0xff]   ;;  %v363_v18 = vld [vmem:[%s1639_s12 + $0x30] sm:$0xff]  ;;  %v364_v22 = vld [vmem:[%s1639_s12 + $0x38] sm:$0xff] }
  0x40   : > { %1361 = vmatpush3.bf16.msra.mxu1 %v1480_v32  ;;  %1340 = vmatprep.subr.bf16.mxu0 %v1481_v33  ;;  %v1253_v19 = vcombine.low %v359_v17, %v363_v18  ;;  %v1254_v20 = vcombine.high %v359_v17, %v363_v18  ;;  %v1255_v23 = vcombine.low %v360_v21, %v364_v22 }
  0x41   : > { %1362 = vmatprep.subr.bf16.mxu1 %v1482_v34  ;;  %v1256_v24 = vcombine.high %v360_v21, %v364_v22 }
  0x43   : > { %1341 = vmatpush3.bf16.msra.mxu0 %v1483_v35 }
  0x44   : > { %1363 = vmatpush3.bf16.msra.mxu1 %v1484_v36  ;;  %1342 = vmatprep.subr.bf16.mxu0 %v1485_v37 }
  0x45   : > { %1364 = vmatprep.subr.bf16.mxu1 %v1486_v38 }
  0x47   : > { %1343 = vmatpush3.bf16.msra.mxu0 %v1487_v39 }
  0x48   : > { %1365 = vmatpush3.bf16.msra.mxu1 %v1488_v40  ;;  %1372 = vmatprep.subr.bf16.mxu0 %v1489_v49 }
  0x49   : > { %1394 = vmatprep.subr.bf16.mxu1 %v1490_v50 }
  0x4a   : > { %950 = vmatmul.mubr.bf16.vlgmr.msra.gmra.mrb[0].mxu0 %v1249_v44 }
  0x4b   : > { %991 = vmatmul.mubr.bf16.vlgmr.msra.gmra.mrb[0].mxu1 %v1251_v47  ;;  %1373 = vmatpush3.bf16.msra.mxu0 %v1491_v51  ;;  %v355_v51 = vld [vmem:[#allocation2] sm:$0xff] }
  0x4c   : > { %1395 = vmatpush3.bf16.msra.mxu1 %v1492_v52  ;;  %1374 = vmatprep.subr.bf16.mxu0 %v1493_v53 }
  0x4d   : > { %1396 = vmatprep.subr.bf16.mxu1 %v1494_v54  ;;  %1031 = vmatprep.mubr.bf16.mxu0 %v1254_v20 }
  0x4e   : > { %1072 = vmatprep.mubr.bf16.mxu1 %v1256_v24 }
  0x4f   : > { %1375 = vmatpush3.bf16.msra.mxu0 %v1495_v55  ;;  %v356_v55 = vld [vmem:[#allocation2 + $0x8] sm:$0xff] }
  0x50   : > { %1397 = vmatpush3.bf16.msra.mxu1 %v1496_v56  ;;  %1376 = vmatprep.subr.bf16.mxu0 %v1497_v57 }
  0x51   : > { %1398 = vmatprep.subr.bf16.mxu1 %v1498_v58 }
  0x53   : > { %1377 = vmatpush3.bf16.msra.mxu0 %v1499_v59 }
  0x54   : > { %1399 = vmatpush3.bf16.msra.mxu1 %v1500_v60  ;;  %1378 = vmatprep.subr.bf16.mxu0 %v1501_v61  ;;  %v1322_v60 = vld [vmem:[%s1751_s2] ss:$0 sm:$0xff] (!%p1321_p11) }
  0x55   : > { %1400 = vmatprep.subr.bf16.mxu1 %v1502_v62  ;;  %v1101_v61 = vld [vmem:[%s1752_s3] sm:$0xff] (!%p1321_p11) }
  0x57   : > { %1379 = vmatpush3.bf16.msra.mxu0 %v1503_v63 }
  0x58   : > { %1401 = vmatpush3.bf16.msra.mxu1 %v1504_v0  ;;  %1380 = vmatprep.subr.bf16.mxu0 %v1505_v1  ;;  %v1102_v0 = vld [vmem:[%s1752_s3 + $0x8] sm:$0xff] (!%p1321_p11) }
  0x59   : > { %1402 = vmatprep.subr.bf16.mxu1 %v1506_v2 }
  0x5b   : > { %1381 = vmatpush3.bf16.msra.mxu0 %v1507_v3 }
  0x5c   : > { %1403 = vmatpush3.bf16.msra.mxu1 %v1508_v4  ;;  %1382 = vmatprep.subr.bf16.mxu0 %v1509_v5 }
  0x5d   : > { %1404 = vmatprep.subr.bf16.mxu1 %v1510_v6 }
  0x5f   : > { %1383 = vmatpush3.bf16.msra.mxu0 %v1511_v7 }
  0x60   : > { %1405 = vmatpush3.bf16.msra.mxu1 %v1512_v8  ;;  %1384 = vmatprep.subr.bf16.mxu0 %v1513_v9 }
  0x61   : > { %1406 = vmatprep.subr.bf16.mxu1 %v1514_v10 }
  0x63   : > { %1385 = vmatpush3.bf16.msra.mxu0 %v1515_v11 }
  0x64   : > { %1407 = vmatpush3.bf16.msra.mxu1 %v1516_v12  ;;  %1386 = vmatprep.subr.bf16.mxu0 %v1517_v13 }
  0x65   : > { %1408 = vmatprep.subr.bf16.mxu1 %v1518_v14 }
  0x67   : > { %1387 = vmatpush3.bf16.msra.mxu0 %v1519_v15 }
  0x68   : > { %1409 = vmatpush3.bf16.msra.mxu1 %v1520_v16 }
  0x6a   : > { %1032 = vmatmul.mubr.bf16.vlgmr.msra.gmra.mrb[4].mxu0 %v1253_v19 }
  0x6b   : > { %1073 = vmatmul.mubr.bf16.vlgmr.msra.gmra.mrb[4].mxu1 %v1255_v23 }
 0x11d   : > { %v1344_v25 = vpop.f32.mrb[0].mxu0 }
 0x11e   : > { %v1366_v26 = vpop.f32.mrb[0].mxu1  ;;  %v1345_v27 = vpop.f32.mrb[1].mxu0 }
 0x11f   : > { %v1346_v28 = vadd.f32 %v1345_v27, %v1344_v25  ;;  %v1367_v29 = vpop.f32.mrb[1].mxu1  ;;  %v1347_v30 = vpop.f32.mrb[2].mxu0 }
 0x120   : > { %v1368_v31 = vadd.f32 %v1367_v29, %v1366_v26  ;;  %v1369_v32 = vpop.f32.mrb[2].mxu1  ;;  %v1348_v33 = vpop.f32.mrb[3].mxu0 }
 0x121   : > { %v1349_v34 = vadd.f32 %v1348_v33, %v1347_v30  ;;  %v1370_v35 = vpop.f32.mrb[3].mxu1 }
 0x122   : > { %v993_v36 = vadd.f32 %v1368_v31, %v1346_v28  ;;  %v1371_v37 = vadd.f32 %v1370_v35, %v1369_v32 }
 0x124   : > { %v996_v38 = vadd.f32 %v1371_v37, %v1349_v34 }
 0x13d   : > { %v1388_v39 = vpop.f32.mrb[4].mxu0 }
 0x13e   : > { %v1410_v40 = vpop.f32.mrb[4].mxu1  ;;  %v1389_v41 = vpop.f32.mrb[5].mxu0 }
 0x13f   : > { %v1390_v42 = vadd.f32 %v1389_v41, %v1388_v39  ;;  %v1411_v43 = vpop.f32.mrb[5].mxu1  ;;  %v1391_v44 = vpop.f32.mrb[6].mxu0 }
 0x140   : > { %v1412_v45 = vadd.f32 %v1411_v43, %v1410_v40  ;;  %v1413_v46 = vpop.f32.mrb[6].mxu1  ;;  %v1392_v47 = vpop.f32.mrb[7].mxu0 }
 0x141   : > { %v1034_v48 = vadd.f32 %v1390_v42, %v993_v36  ;;  %v1393_v49 = vadd.f32 %v1392_v47, %v1391_v44  ;;  %v1414_v50 = vpop.f32.mrb[7].mxu1 }
 0x142   : > { %v1415_v52 = vadd.f32 %v1414_v50, %v1413_v46 }
 0x143   : > { %v1075_v53 = vadd.f32 %v1412_v45, %v1034_v48  ;;  %v1037_v54 = vadd.f32 %v1393_v49, %v996_v38  ;;  %1089 = sbr.rel (%p1321_p11) target bundleno = 342 (0x156), region = 67 }
 0x145   : > { %v1081_v56 = vadd.f32 %v1075_v53, %v355_v51  ;;  %v1078_v57 = vadd.f32 %v1415_v52, %v1037_v54 }
 0x147   : > { %1084 = vst.msk [vmem:[#allocation2] sm:$0xff] %vm1083_vm1, %v1081_v56  ;;  %v1082_v58 = vadd.f32 %v1078_v57, %v356_v55 }
 0x149   : > { %1085 = vst.msk [vmem:[#allocation2 + $0x8] sm:$0xff] %vm1083_vm1, %v1082_v58 }
 0x14e   : > { %v1090_v59 = vld [vmem:[#allocation2] sm:$0xff] }
 0x14f   : > { %v1099_v62 = vadd.f32 %v1322_v60, %v1090_v59 }
 0x150   : > { %v1091_v63 = vld [vmem:[#allocation2 + $0x8] sm:$0xff] }
 0x151   : > { %v1100_v1 = vadd.f32 %v1322_v60, %v1091_v63  ;;  %v1103_v2 = vadd.f32 %v1101_v61, %v1099_v62 }
 0x153   : > { %v1104_v3 = vadd.f32 %v1102_v0, %v1100_v1  ;;  %1105 = vst.msk [vmem:[%s1753_s4] sm:$0xff] %vm1083_vm1, %v1103_v2 }
 0x155   : > { %1106 = vst.msk [vmem:[%s1753_s4 + $0x8] sm:$0xff] %vm1083_vm1, %v1104_v3 }
 0x156 PF: > { %s14_s19 = sadd.s32 1, %s1559_s19   ;;  %s1754_s15 = smov %s1547_s16 }
 0x157   : > { %p11_p12 = scmp.ge.s32.totalorder %s14_s19, 4   ;;  %s1755_s16 = smov %s1622_s23 }
 0x158   : > { %s1756_s17 = smov %s1555_s18  ;;  %s1757_s18 = smov %s1759_s20 }
 0x159   :  { %13 = sbr.rel (!%p11_p12) target bundleno = 3 (0x3), region = 111 }

// kernel: decoder_forward.29
= control target key start
LH: loop header
LB: loop body
LE: loop exit
PB: predicated region body
PF: predicated region fallthrough
CT: control target
= control target key end

     0   :  { %vm17_vm0 = vcmask 261120   ;;  %s187_s0 = inlined_call_operand.vmem [shape: f32[16,32], index: 0, kind: input, shape index: {}]   ;;  %s188_s1 = inlined_call_operand.vmem [shape: f32[1,32], index: 1, kind: input, shape index: {}]   ;;  %s189_s2 = inlined_call_operand.vmem [shape: f32[1,32], index: 2, kind: input, shape index: {}]   ;;  %s190_s3 = inlined_call_operand.hbm [shape: f32[16,32], index: 3, kind: output, shape index: {}]  }
   0x1   :  { %v15_v0 = vld [vmem:[%s187_s0] sm:$0xff]  ;;  %v16_v1 = vld [vmem:[%s187_s0 + $0x8] sm:$0xff] }
   0x2   :  { %v18_v2 = vsel %vm17_vm0, %v15_v0, 0.0 }
   0x3   :  { %8 = vsyncpa [#allocation3], 0  ;;  %19 = vadd.xlane.f32.xlu0 %v18_v2  ;;  %v21_v3 = vsel %vm17_vm0, %v16_v1, 0.0  ;;  %v97_v30 = vld [vmem:[%s188_s1] ss:$0 sm:$0xff]  ;;  %s134_s19 = smov [#allocation2]  }
   0x4   :  { %v98_v33 = vld [vmem:[%s189_s2] ss:$0 sm:$0xff]  ;;  %s86_s20 = sshll.u32 %s134_s19, 4  ;;  %s87_s20 = int_to_ptr.vmem [resolvable:$true] %s86_s20 }
   0x5   :  { %s110_s1 = scalar_lea.vmem %s87_s20, 256  ;;  %p115_p1 = scmp.lt.s32.totalorder %s87_s20, %s87_s20 }
   0x6   :  { %p111_p0 = scmp.ne.s32.totalorder %s87_s20, %s110_s1  ;;  %p116_p2 = scmp.lt.s32.totalorder %s110_s1, %s110_s1 }
   0x7   :  { %22 = vadd.xlane.f32.xlu0 %v21_v3 }
   0x8   :  { %p117_p3 = por %p116_p2, %p115_p1 }
   0xa   :  { %p118_p4 = pnand %p117_p3, %p111_p0 }
  0x90   :  { %v20_v4 = vpop.xlane.xlu0 %19 }
  0x91   :  { %v25_v5 = vmul.f32 0.03125, %v20_v4 }
  0x93   :  { %v27_v6 = vsub.f32 %v15_v0, %v25_v5 }
  0x94   :  { %v23_v7 = vpop.xlane.xlu0 %22 }
  0x95   :  { %v26_v8 = vmul.f32 0.03125, %v23_v7  ;;  %v29_v9 = vmul.f32 %v27_v6, %v27_v6  ;;  %v60_v31 = vmul.f32 %v97_v30, %v27_v6 }
  0x97   :  { %v28_v10 = vsub.f32 %v16_v1, %v26_v8  ;;  %v31_v11 = vsel %vm17_vm0, %v29_v9, 0.0 }
  0x98   :  { %32 = vadd.xlane.f32.xlu1 %v31_v11 }
  0x99   :  { %v30_v12 = vmul.f32 %v28_v10, %v28_v10  ;;  %v61_v35 = vmul.f32 %v97_v30, %v28_v10 }
  0x9b   :  { %v34_v13 = vsel %vm17_vm0, %v30_v12, 0.0 }
  0x9c   :  { %35 = vadd.xlane.f32.xlu1 %v34_v13 }
 0x125   :  { %v33_v14 = vpop.xlane.xlu1 %32 }
 0x126   :  { %v37_v15 = vmul.f32 0.032258064, %v33_v14 }
 0x128   :  { %102 = vrsqrt.f32 %v37_v15  ;;  %vm41_vm1 = vcmp.eq.f32.partialorder %v37_v15, inf  ;;  %v44_v20 = vand.u32 2147483648, %v37_v15  ;;  %vm43_vm2 = vcmp.eq.f32.partialorder %v37_v15, 0.0 }
 0x129   :  { %v36_v16 = vpop.xlane.xlu1 %35 }
 0x12a   :  { %v38_v17 = vmul.f32 0.032258064, %v36_v16 }
 0x12c   :  { %104 = vrsqrt.f32 %v38_v17  ;;  %vm48_vm3 = vcmp.eq.f32.partialorder %v38_v17, inf  ;;  %v51_v26 = vand.u32 2147483648, %v38_v17  ;;  %vm50_vm4 = vcmp.eq.f32.partialorder %v38_v17, 0.0 }
 0x132   :  { %v103_v18 = vpop.eup %102 }
 0x133   :  { %v40_v19 = vmul.f32 %v103_v18, %v37_v15 }
 0x135   :  { %v42_v21 = vsel %vm41_vm1, %v37_v15, %v40_v19 }
 0x136   :  { %v105_v22 = vpop.eup %104  ;;  %v45_v23 = vsel %vm43_vm2, %v44_v20, %v42_v21 }
 0x137   :  { %v62_v24 = vadd.f32 1e-06, %v45_v23  ;;  %v47_v25 = vmul.f32 %v105_v22, %v38_v17 }
 0x139   :  { %106 = vrcp.f32 %v62_v24  ;;  %v49_v27 = vsel %vm48_vm3, %v38_v17, %v47_v25 }
 0x13a   :  { %v52_v28 = vsel %vm50_vm4, %v51_v26, %v49_v27 }
 0x13b   :  { %v63_v29 = vadd.f32 1e-06, %v52_v28 }
 0x13d   :  { %108 = vrcp.f32 %v63_v29 }
 0x143   :  { %v107_v32 = vpop.eup %106 }
 0x144   :  { %v68_v34 = vmul.f32 %v107_v32, %v60_v31 }
 0x146   :  { %v77_v36 = vadd.f32 %v98_v33, %v68_v34 }
 0x147   :  { %v109_v37 = vpop.eup %108 }
 0x148   :  { %v69_v38 = vmul.f32 %v109_v37, %v61_v35  ;;  %79 = vst.msk [vmem:[#allocation2] sm:$0xff] %vm17_vm0, %v77_v36 }
 0x14a   :  { %v78_v39 = vadd.f32 %v98_v33, %v69_v38 }
 0x14c   :  { %80 = vst.msk [vmem:[#allocation2 + $0x8] sm:$0xff] %vm17_vm0, %v78_v39 }
 0x14d   :  { %121 = shalt.err (!%p118_p4)
}
 0x14e   :  { %s122_s22 = scalar_lea.hbm %s190_s3, 256 }
 0x14f   :  { %p123_p5 = scmp.ne.s32.totalorder %s190_s3, %s122_s22  ;;  %p126_p6 = scmp.lt.u32.totalorder %s122_s22, %s190_s3 }
 0x151   :  { %p128_p7 = pnand %p126_p6, %p123_p5 }
 0x153   :  { %131 = shalt.err (!%p128_p7)
}
 0x154   :  { %s135_s27 = smov 128   ;;  %s136_s28 = smov 8  }
 0x155   :  { %92 = dma.vmem_to_hbm [thread:$0]  %s87_s20, 256, %s190_s3, [#allocation3], %s135_s27, %s135_s27, %s136_s28  }
 0x156   :  { %132 = dma.done.wait [#allocation3], 256  }
 0x157   :  { %133 = vsyncadd [#allocation3], 4294967040 }
 0x158   :  { %96 = vsyncpa [#allocation3], 1 }

// kernel: decoder_forward.25
= control target key start
LH: loop header
LB: loop body
LE: loop exit
PB: predicated region body
PF: predicated region fallthrough
CT: control target
= control target key end

     0   :  { %vm19_vm0 = vcmask 523264   ;;  %v145_v0 = vmov 0.0   ;;  %vm146_vm1 = vmmov 0   ;;  %vm43_vm2 = vcmask 261120   ;;  %s192_s1 = inlined_call_operand.vmem [shape: bf16[32,64], index: 1, kind: input, shape index: {}]   ;;  %s193_s0 = inlined_call_operand.vmem [shape: f32[16,32], index: 0, kind: input, shape index: {}]   ;;  %s194_s2 = inlined_call_operand.vmem [shape: f32[1,64], index: 2, kind: input, shape index: {}]   ;;  %s195_s3 = inlined_call_operand.vmem [shape: bf16[16,64], index: 3, kind: output, shape index: {}]  }
   0x1   :  { %133 = vmatprep.subr.bf16.mxu0 %v145_v0  ;;  %v143_v1 = vld [vmem:[%s192_s1] sm:$0xff]   ;;  %137 = vmatprep.mubr.msk.bf16.mxu0 %vm146_vm1, %v145_v0  ;;  %20 = vst.msk [vmem:[#allocation2] sm:$0xff] %vm19_vm0, %v145_v0  ;;  %21 = vst.msk [vmem:[#allocation2 + $0x8] sm:$0xff] %vm19_vm0, %v145_v0  ;;  %v144_v2 = vld [vmem:[%s192_s1 + $0x8] sm:$0xff]   ;;  %vm115_vm3 = vcmask 519168  }
   0x2   :  { %134 = vmatpush3.bf16.msra.mxu0 %v143_v1  ;;  %v24_v3 = vld [vmem:[%s193_s0] sm:$0xff]  ;;  %v25_v4 = vld [vmem:[%s193_s0 + $0x8] sm:$0xff] }
   0x3   :  { %135 = vmatprep.subr.bf16.mxu0 %v145_v0  ;;  %v26_v5 = vpack.c.bf16 %v25_v4, %v24_v3  ;;  %v125_v14 = vld [vmem:[%s194_s2] ss:$0 sm:$0xff] }
   0x6   :  { %136 = vmatpush3.bf16.msra.mxu0 %v144_v2 }
   0x8   :  { %v22_v6 = vld [vmem:[#allocation2] sm:$0xff]  ;;  %v23_v8 = vld [vmem:[#allocation2 + $0x8] sm:$0xff] }
   0x9   :  { %138 = vmatmul.mubr.msk.bf16.vlgmr.msra.gmra.mrb[0].mxu0 %vm43_vm2, %v26_v5 }
  0xdc   :  { %v81_v7 = vpop.f32.mrb[0].mxu0 }
  0xdd   :  { %v88_v9 = vadd.f32 %v81_v7, %v22_v6  ;;  %v139_v10 = vpop.f32.mrb[1].mxu0 }
  0xde   :  { %v84_v11 = vpop.f32.mrb[2].mxu0 }
  0xdf   :  { %91 = vst.msk [vmem:[#allocation2] sm:$0xff] %vm19_vm0, %v88_v9  ;;  %v89_v12 = vadd.f32 %v84_v11, %v23_v8  ;;  %v140_v13 = vpop.f32.mrb[3].mxu0 }
  0xe1   :  { %92 = vst.msk [vmem:[#allocation2 + $0x8] sm:$0xff] %vm19_vm0, %v89_v12 }
  0xe6   :  { %v96_v15 = vld [vmem:[#allocation2] sm:$0xff] }
  0xe7   :  { %v105_v16 = vadd.f32 %v125_v14, %v96_v15 }
  0xe8   :  { %v97_v17 = vld [vmem:[#allocation2 + $0x8] sm:$0xff] }
  0xe9   :  { %v128_v18 = vpack.c.bf16 %v105_v16, %v105_v16  ;;  %v106_v19 = vadd.f32 %v125_v14, %v97_v17 }
  0xeb   :  { %116 = vst.msk [vmem:[%s195_s3] sm:$0xf] %vm115_vm3, %v128_v18  ;;  %v129_v20 = vpack.c.bf16 %v106_v19, %v106_v19 }
  0xed   :  { %117 = vst.msk [vmem:[%s195_s3 + $0x4] sm:$0xf] %vm115_vm3, %v129_v20 }

</bundles_post_ra>
